<compile_context>
chip_gen: v6e
topology: v6e:2x2x1
jax: 0.10.0
libtpu: 0.0.40
codegen_flags: <defaults>
</compile_context>

<pallas_src>
import functools

import jax
import jax.numpy as jnp
from jax.experimental import pallas as pl
from jax.experimental.pallas import tpu as pltpu

_TAPS = tuple((ky, kx) for ky in range(3) for kx in range(3))  # 3x3, pad=1


def _bottleneck_kernel(x_ref, w1_ref, b1_ref, w2_ref, b2_ref, w3_ref, b3_ref,
                       o_ref, y2p_ref, *, TH, W):
    """One (image, row-tile) per grid step.

    x_ref  : (1, TH+4, W+2, Cin)  zero-padded input rows incl. 2-row halo
    w1_ref : (9, Cin, C1p)        BN-folded conv1 taps (C1 zero-padded to C1p)
    w2_ref : (C1p, C1p)           BN-folded 1x1 conv
    w3_ref : (9, C1p, C3)         BN-folded conv3 taps
    b*_ref : (1, C)               f32 biases
    y2p_ref: (TH+2, W+2, C1p)     VMEM scratch: y2 with 1-px spatial zero pad
    o_ref  : (1, TH, W, C3)
    """
    Cin = x_ref.shape[-1]
    C1p = w1_ref.shape[-1]
    C3 = w3_ref.shape[-1]
    TH2 = TH + 2            # y1/y2 rows computed this step (1-row halo each side)
    M2 = TH2 * W
    M = TH * W
    t = pl.program_id(1)

    # --- conv1 (3x3): nine per-tap MXU matmuls, f32 accumulation -------------
    acc1 = jnp.zeros((M2, C1p), jnp.float32)
    for tap, (ky, kx) in enumerate(_TAPS):
        win = x_ref[0, ky:ky + TH2, kx:kx + W, :].reshape(M2, Cin)
        acc1 = acc1 + jnp.dot(win, w1_ref[tap],
                              preferred_element_type=jnp.float32)
    y1 = jnp.maximum(acc1 + b1_ref[...], 0.0)

    # --- conv2 (1x1): single MXU matmul ---------------------------------------
    y2 = jnp.maximum(
        jnp.dot(y1.astype(w2_ref.dtype), w2_ref[...],
                preferred_element_type=jnp.float32) + b2_ref[...], 0.0)

    # --- stage y2 in a W-padded scratch so conv3 taps are plain static slices --
    y2p_ref[:, 1:W + 1, :] = y2.astype(y2p_ref.dtype).reshape(TH2, W, C1p)
    zcol = jnp.zeros((TH2, 1, C1p), y2p_ref.dtype)
    y2p_ref[:, 0:1, :] = zcol               # zero only the 1-px border columns
    y2p_ref[:, W + 1:W + 2, :] = zcol
    zrow = jnp.zeros((1, W + 2, C1p), y2p_ref.dtype)

    @pl.when(t == 0)                        # top of the image: halo row is pad
    def _():
        y2p_ref[0:1, :, :] = zrow

    @pl.when(t == pl.num_programs(1) - 1)   # bottom of the image
    def _():
        y2p_ref[TH2 - 1:TH2, :, :] = zrow

    # --- conv3 (3x3): nine per-tap MXU matmuls, f32 accumulation ---------------
    acc3 = jnp.zeros((M, C3), jnp.float32)
    for tap, (ky, kx) in enumerate(_TAPS):
        win = y2p_ref[ky:ky + TH, kx:kx + W, :].reshape(M, C1p)
        acc3 = acc3 + jnp.dot(win, w3_ref[tap],
                              preferred_element_type=jnp.float32)
    y3 = acc3 + b3_ref[...]

    # --- identity residual (Cin == C3) + final ReLU -----------------------------
    ident = x_ref[0, 2:2 + TH, 1:1 + W, :].reshape(M, Cin).astype(jnp.float32)
    o_ref[0] = jnp.maximum(ident + y3, 0.0).reshape(TH, W, C3).astype(o_ref.dtype)


def _pick_row_tile(H, W):
    """Largest divisor of H giving ~<=2k matmul rows/step and >=2 tiles when H>=16."""
    target = min(H, max(8, 2048 // max(W, 1)))
    if H >= 16:
        target = min(target, H // 2)
    for th in range(target, 0, -1):
        if H % th == 0:
            return th
    return H


def bottleneck_forward_nhwc(x_nhwc, params, *, compute_dtype=jnp.bfloat16,
                            out_dtype=None, row_tile=None):
    """Fused Bottleneck forward, NHWC in / NHWC out (stride=1, reduce=None)."""
    # TODO(synk): stride > 1 and a non-None `reduce` (downsample) path are not implemented.
    w1, s1, b1, w2, s2, b2, w3, s3, b3 = params
    N, H, W, Cin = x_nhwc.shape
    C1 = w1.shape[-1]
    C3 = w3.shape[-1]
    assert Cin == C3, "identity residual (reduce=None) requires inch == ouch * expand"
    assert W % 8 == 0, "keep W a multiple of 8 so in-kernel reshapes stay layout no-ops"
    out_dtype = compute_dtype if out_dtype is None else out_dtype

    TH = _pick_row_tile(H, W) if row_tile is None else row_tile
    assert H % TH == 0, (H, TH)
    NT = H // TH

    # Pad mid channels to a lane-dense multiple of 128 (y1/y2 stores, conv3 K dim).
    # TODO(synk): C3 (= Cin) is left unpadded; at production scale it is >= 128.
    C1p = ((C1 + 127) // 128) * 128

    # Fold BN scale into the conv weights; keep only the bias add in-kernel.
    w1f = (w1 * s1.reshape(1, 1, 1, C1)).astype(compute_dtype)
    w1e = jnp.zeros((3, 3, Cin, C1p), compute_dtype).at[..., :C1].set(w1f)
    w1e = w1e.reshape(9, Cin, C1p)
    w2f = (w2 * s2.reshape(1, C1)).astype(compute_dtype)
    w2e = jnp.zeros((C1p, C1p), compute_dtype).at[:C1, :C1].set(w2f)
    w3f = (w3 * s3.reshape(1, 1, 1, C3)).astype(compute_dtype)
    w3e = jnp.zeros((3, 3, C1p, C3), compute_dtype).at[:, :, :C1, :].set(w3f)
    w3e = w3e.reshape(9, C1p, C3)
    b1e = jnp.zeros((1, C1p), jnp.float32).at[:, :C1].set(b1.reshape(1, C1))
    b2e = jnp.zeros((1, C1p), jnp.float32).at[:, :C1].set(b2.reshape(1, C1))
    b3e = b3.reshape(1, C3).astype(jnp.float32)

    # Zero-pad spatially (2 rows top/bottom = conv1->conv3 halo, 1 col left/right)
    # and pre-slice overlapping row tiles of TH+4 rows so the grid blocks are plain.
    xp = jnp.pad(x_nhwc.astype(compute_dtype), ((0, 0), (2, 2), (1, 1), (0, 0)))
    rows = jnp.arange(NT)[:, None] * TH + jnp.arange(TH + 4)[None, :]
    xt = xp[:, rows].reshape(N * NT, TH + 4, W + 2, Cin)

    itemsize = jnp.dtype(compute_dtype).itemsize
    flops = 2 * N * H * W * (9 * Cin * C1p + C1p * C1p + 9 * C1p * C3)
    bytes_accessed = int(
        xt.size * itemsize
        + N * H * W * C3 * jnp.dtype(out_dtype).itemsize
        + (w1e.size + w2e.size + w3e.size) * itemsize
        + (b1e.size + b2e.size + b3e.size) * 4)

    rep3 = lambda n, t: (0, 0, 0)
    rep2 = lambda n, t: (0, 0)
    out = pl.pallas_call(
        functools.partial(_bottleneck_kernel, TH=TH, W=W),
        out_shape=jax.ShapeDtypeStruct((N, H, W, C3), out_dtype),
        grid=(N, NT),
        in_specs=[
            pl.BlockSpec((1, TH + 4, W + 2, Cin),
                         lambda n, t: (n * NT + t, 0, 0, 0)),
            pl.BlockSpec((9, Cin, C1p), rep3),
            pl.BlockSpec((1, C1p), rep2),
            pl.BlockSpec((C1p, C1p), rep2),
            pl.BlockSpec((1, C1p), rep2),
            pl.BlockSpec((9, C1p, C3), rep3),
            pl.BlockSpec((1, C3), rep2),
        ],
        out_specs=pl.BlockSpec((1, TH, W, C3), lambda n, t: (n, t, 0, 0)),
        scratch_shapes=[pltpu.VMEM((TH + 2, W + 2, C1p), compute_dtype)],
        compiler_params=pltpu.CompilerParams(
            dimension_semantics=("parallel", "parallel"),
            vmem_limit_bytes=32 * 1024 * 1024),
        cost_estimate=pl.CostEstimate(
            flops=flops, transcendentals=0, bytes_accessed=bytes_accessed),
    )(xt, w1e, b1e, w2e, b2e, w3e, b3e)
    return out


def bottleneck_forward(x_nchw, params, *, compute_dtype=jnp.bfloat16,
                       row_tile=None):
    """PyTorch-parity NCHW boundary. Prefer bottleneck_forward_nhwc inside a
    network so the layout transposes are not paid per block."""
    x = jnp.transpose(x_nchw, (0, 2, 3, 1))
    y = bottleneck_forward_nhwc(x, params, compute_dtype=compute_dtype,
                                row_tile=row_tile)
    return jnp.transpose(y, (0, 3, 1, 2)).astype(x_nchw.dtype)


def _bn_fold(c, salt, eps=1e-5):
    i = jnp.arange(c, dtype=jnp.float32)
    gamma = 1.0 + 0.05 * jnp.cos(i + salt)
    beta = 0.05 * jnp.sin(i - salt)
    mean = 0.1 * jnp.sin(0.5 * i + salt)
    var = 1.0 + 0.1 * (i % 3.0)
    scale = gamma * jax.lax.rsqrt(var + eps)
    bias = beta - mean * scale
    return scale.reshape(1, c), bias.reshape(1, c)


def make_params(key, inch, ouch, expand=4):
    k1, k2, k3 = jax.random.split(key, 3)
    w1 = 0.1 * jax.random.normal(k1, (3, 3, inch, ouch), jnp.float32)           # HWIO
    w2 = 0.1 * jax.random.normal(k2, (ouch, ouch), jnp.float32)                 # 1x1 conv
    w3 = 0.1 * jax.random.normal(k3, (3, 3, ouch, ouch * expand), jnp.float32)  # HWIO
    s1, b1 = _bn_fold(ouch, 1.0)
    s2, b2 = _bn_fold(ouch, 2.0)
    s3, b3 = _bn_fold(ouch * expand, 3.0)
    return (w1, s1, b1, w2, s2, b2, w3, s3, b3)


def bottleneck_reference(x_nchw, params):
    # Pure-JAX reference (XLA convs) for correctness checking.
    w1, s1, b1, w2, s2, b2, w3, s3, b3 = params
    x = jnp.transpose(x_nchw, (0, 2, 3, 1)).astype(jnp.float32)   # NHWC
    conv = lambda v, w: jax.lax.conv_general_dilated(
        v, w, (1, 1), 'SAME', dimension_numbers=('NHWC', 'HWIO', 'NHWC'))
    y1 = jnp.maximum(conv(x, w1) * s1 + b1, 0.0)
    y2 = jnp.maximum(jnp.einsum('nhwc,cd->nhwd', y1, w2) * s2 + b2, 0.0)
    y3 = conv(y2, w3) * s3 + b3
    out = jnp.maximum(x + y3, 0.0)
    return jnp.transpose(out, (0, 3, 1, 2))


if __name__ == "__main__":
    key = jax.random.PRNGKey(0)
    kx, kp = jax.random.split(key)

    N, ouch, expand = 2, 4, 4
    inch = ouch * expand          # 16, so the identity residual is shape-compatible
    H = W = 16

    x = jax.random.normal(kx, (N, inch, H, W), jnp.float32)
    params = make_params(kp, inch, ouch, expand)
    ref = bottleneck_reference(x, params)

    # f32 compute path: tight check against the XLA reference.
    out_f32 = jax.block_until_ready(
        bottleneck_forward(x, params, compute_dtype=jnp.float32))
    assert out_f32.shape == (N, ouch * expand, H, W), out_f32.shape
    err_f32 = float(jnp.max(jnp.abs(out_f32 - ref)))
    assert err_f32 < 5e-4, f"f32 max abs err = {err_f32}"

    # Default bf16 compute path (MXU-native operands): looser tolerance.
    out_bf16 = jax.block_until_ready(bottleneck_forward(x, params))
    err_bf16 = float(jnp.max(jnp.abs(out_bf16 - ref)))
    assert err_bf16 < 0.25, f"bf16 max abs err = {err_bf16}"

    print("KERNEL_OK")
</pallas_src>

<mosaic_0001>
module attributes {stable_mosaic.version = 11 : i64} {
  func.func @_bottleneck_kernel(%arg0: i32, %arg1: i32, %arg2: memref<1x12x18x16xf32, #tpu.memory_space<vmem>>, %arg3: memref<9x16x128xf32, #tpu.memory_space<vmem>>, %arg4: memref<1x128xf32, #tpu.memory_space<vmem>>, %arg5: memref<128x128xf32, #tpu.memory_space<vmem>>, %arg6: memref<1x128xf32, #tpu.memory_space<vmem>>, %arg7: memref<9x128x16xf32, #tpu.memory_space<vmem>>, %arg8: memref<1x16xf32, #tpu.memory_space<vmem>>, %arg9: memref<1x8x16x16xf32, #tpu.memory_space<vmem>>, %arg10: memref<10x18x128xf32, #tpu.memory_space<vmem>>) attributes {dimension_semantics = [#tpu.dimension_semantics<parallel>, #tpu.dimension_semantics<parallel>], iteration_bounds = array<i64: 2, 2>, scalar_prefetch = 0 : i64, scratch_operands = 1 : i64, tpu.core_type = #tpu.core_type<tc>, window_params = [{transform_indices = @transform_0, window_bounds = array<i64: 1, 12, 18, 16>}, {pipeline_mode = #tpu.pipeline_mode<synchronous>, transform_indices = @transform_1, window_bounds = array<i64: 9, 16, 128>}, {pipeline_mode = #tpu.pipeline_mode<synchronous>, transform_indices = @transform_2, window_bounds = array<i64: 1, 128>}, {pipeline_mode = #tpu.pipeline_mode<synchronous>, transform_indices = @transform_3, window_bounds = array<i64: 128, 128>}, {pipeline_mode = #tpu.pipeline_mode<synchronous>, transform_indices = @transform_4, window_bounds = array<i64: 1, 128>}, {pipeline_mode = #tpu.pipeline_mode<synchronous>, transform_indices = @transform_5, window_bounds = array<i64: 9, 128, 16>}, {pipeline_mode = #tpu.pipeline_mode<synchronous>, transform_indices = @transform_6, window_bounds = array<i64: 1, 16>}, {transform_indices = @transform_7, window_bounds = array<i64: 1, 8, 16, 16>}]} {
    %cst = arith.constant 0.000000e+00 : f32
    %0 = vector.broadcast %cst : f32 to vector<160x128xf32>
    %c0 = arith.constant 0 : index
    %c0_0 = arith.constant 0 : index
    %c0_1 = arith.constant 0 : index
    %c0_2 = arith.constant 0 : index
    %1 = vector.load %arg2[%c0, %c0_0, %c0_1, %c0_2] : memref<1x12x18x16xf32, #tpu.memory_space<vmem>>, vector<1x10x16x16xf32>
    %2 = vector.shape_cast %1 : vector<1x10x16x16xf32> to vector<10x16x16xf32>
    %3 = vector.shape_cast %2 : vector<10x16x16xf32> to vector<160x16xf32>
    %c0_3 = arith.constant 0 : index
    %c0_4 = arith.constant 0 : index
    %c0_5 = arith.constant 0 : index
    %4 = vector.load %arg3[%c0_3, %c0_4, %c0_5] : memref<9x16x128xf32, #tpu.memory_space<vmem>>, vector<1x16x128xf32>
    %5 = vector.shape_cast %4 : vector<1x16x128xf32> to vector<16x128xf32>
    %cst_6 = arith.constant dense<0.000000e+00> : vector<160x128xf32>
    %6 = tpu.matmul %3, %5, %cst_6 {dimension_numbers = #tpu.dot_dimension_numbers<[1], [0], [0], [1], [0, 0, 1, 1], [], []>} : vector<160x16xf32>, vector<16x128xf32>, vector<160x128xf32> -> vector<160x128xf32>
    %7 = arith.addf %0, %6 : vector<160x128xf32>
    %c0_7 = arith.constant 0 : index
    %c0_8 = arith.constant 0 : index
    %c1 = arith.constant 1 : index
    %c0_9 = arith.constant 0 : index
    %8 = vector.load %arg2[%c0_7, %c0_8, %c1, %c0_9] : memref<1x12x18x16xf32, #tpu.memory_space<vmem>>, vector<1x10x16x16xf32>
    %9 = vector.shape_cast %8 : vector<1x10x16x16xf32> to vector<10x16x16xf32>
    %10 = vector.shape_cast %9 : vector<10x16x16xf32> to vector<160x16xf32>
    %c1_10 = arith.constant 1 : index
    %c0_11 = arith.constant 0 : index
    %c0_12 = arith.constant 0 : index
    %11 = vector.load %arg3[%c1_10, %c0_11, %c0_12] : memref<9x16x128xf32, #tpu.memory_space<vmem>>, vector<1x16x128xf32>
    %12 = vector.shape_cast %11 : vector<1x16x128xf32> to vector<16x128xf32>
    %cst_13 = arith.constant dense<0.000000e+00> : vector<160x128xf32>
    %13 = tpu.matmul %10, %12, %cst_13 {dimension_numbers = #tpu.dot_dimension_numbers<[1], [0], [0], [1], [0, 0, 1, 1], [], []>} : vector<160x16xf32>, vector<16x128xf32>, vector<160x128xf32> -> vector<160x128xf32>
    %14 = arith.addf %7, %13 : vector<160x128xf32>
    %c0_14 = arith.constant 0 : index
    %c0_15 = arith.constant 0 : index
    %c2 = arith.constant 2 : index
    %c0_16 = arith.constant 0 : index
    %15 = vector.load %arg2[%c0_14, %c0_15, %c2, %c0_16] : memref<1x12x18x16xf32, #tpu.memory_space<vmem>>, vector<1x10x16x16xf32>
    %16 = vector.shape_cast %15 : vector<1x10x16x16xf32> to vector<10x16x16xf32>
    %17 = vector.shape_cast %16 : vector<10x16x16xf32> to vector<160x16xf32>
    %c2_17 = arith.constant 2 : index
    %c0_18 = arith.constant 0 : index
    %c0_19 = arith.constant 0 : index
    %18 = vector.load %arg3[%c2_17, %c0_18, %c0_19] : memref<9x16x128xf32, #tpu.memory_space<vmem>>, vector<1x16x128xf32>
    %19 = vector.shape_cast %18 : vector<1x16x128xf32> to vector<16x128xf32>
    %cst_20 = arith.constant dense<0.000000e+00> : vector<160x128xf32>
    %20 = tpu.matmul %17, %19, %cst_20 {dimension_numbers = #tpu.dot_dimension_numbers<[1], [0], [0], [1], [0, 0, 1, 1], [], []>} : vector<160x16xf32>, vector<16x128xf32>, vector<160x128xf32> -> vector<160x128xf32>
    %21 = arith.addf %14, %20 : vector<160x128xf32>
    %c0_21 = arith.constant 0 : index
    %c1_22 = arith.constant 1 : index
    %c0_23 = arith.constant 0 : index
    %c0_24 = arith.constant 0 : index
    %22 = vector.load %arg2[%c0_21, %c1_22, %c0_23, %c0_24] : memref<1x12x18x16xf32, #tpu.memory_space<vmem>>, vector<1x10x16x16xf32>
    %23 = vector.shape_cast %22 : vector<1x10x16x16xf32> to vector<10x16x16xf32>
    %24 = vector.shape_cast %23 : vector<10x16x16xf32> to vector<160x16xf32>
    %c3 = arith.constant 3 : index
    %c0_25 = arith.constant 0 : index
    %c0_26 = arith.constant 0 : index
    %25 = vector.load %arg3[%c3, %c0_25, %c0_26] : memref<9x16x128xf32, #tpu.memory_space<vmem>>, vector<1x16x128xf32>
    %26 = vector.shape_cast %25 : vector<1x16x128xf32> to vector<16x128xf32>
    %cst_27 = arith.constant dense<0.000000e+00> : vector<160x128xf32>
    %27 = tpu.matmul %24, %26, %cst_27 {dimension_numbers = #tpu.dot_dimension_numbers<[1], [0], [0], [1], [0, 0, 1, 1], [], []>} : vector<160x16xf32>, vector<16x128xf32>, vector<160x128xf32> -> vector<160x128xf32>
    %28 = arith.addf %21, %27 : vector<160x128xf32>
    %c0_28 = arith.constant 0 : index
    %c1_29 = arith.constant 1 : index
    %c1_30 = arith.constant 1 : index
    %c0_31 = arith.constant 0 : index
    %29 = vector.load %arg2[%c0_28, %c1_29, %c1_30, %c0_31] : memref<1x12x18x16xf32, #tpu.memory_space<vmem>>, vector<1x10x16x16xf32>
    %30 = vector.shape_cast %29 : vector<1x10x16x16xf32> to vector<10x16x16xf32>
    %31 = vector.shape_cast %30 : vector<10x16x16xf32> to vector<160x16xf32>
    %c4 = arith.constant 4 : index
    %c0_32 = arith.constant 0 : index
    %c0_33 = arith.constant 0 : index
    %32 = vector.load %arg3[%c4, %c0_32, %c0_33] : memref<9x16x128xf32, #tpu.memory_space<vmem>>, vector<1x16x128xf32>
    %33 = vector.shape_cast %32 : vector<1x16x128xf32> to vector<16x128xf32>
    %cst_34 = arith.constant dense<0.000000e+00> : vector<160x128xf32>
    %34 = tpu.matmul %31, %33, %cst_34 {dimension_numbers = #tpu.dot_dimension_numbers<[1], [0], [0], [1], [0, 0, 1, 1], [], []>} : vector<160x16xf32>, vector<16x128xf32>, vector<160x128xf32> -> vector<160x128xf32>
    %35 = arith.addf %28, %34 : vector<160x128xf32>
    %c0_35 = arith.constant 0 : index
    %c1_36 = arith.constant 1 : index
    %c2_37 = arith.constant 2 : index
    %c0_38 = arith.constant 0 : index
    %36 = vector.load %arg2[%c0_35, %c1_36, %c2_37, %c0_38] : memref<1x12x18x16xf32, #tpu.memory_space<vmem>>, vector<1x10x16x16xf32>
    %37 = vector.shape_cast %36 : vector<1x10x16x16xf32> to vector<10x16x16xf32>
    %38 = vector.shape_cast %37 : vector<10x16x16xf32> to vector<160x16xf32>
    %c5 = arith.constant 5 : index
    %c0_39 = arith.constant 0 : index
    %c0_40 = arith.constant 0 : index
    %39 = vector.load %arg3[%c5, %c0_39, %c0_40] : memref<9x16x128xf32, #tpu.memory_space<vmem>>, vector<1x16x128xf32>
    %40 = vector.shape_cast %39 : vector<1x16x128xf32> to vector<16x128xf32>
    %cst_41 = arith.constant dense<0.000000e+00> : vector<160x128xf32>
    %41 = tpu.matmul %38, %40, %cst_41 {dimension_numbers = #tpu.dot_dimension_numbers<[1], [0], [0], [1], [0, 0, 1, 1], [], []>} : vector<160x16xf32>, vector<16x128xf32>, vector<160x128xf32> -> vector<160x128xf32>
    %42 = arith.addf %35, %41 : vector<160x128xf32>
    %c0_42 = arith.constant 0 : index
    %c2_43 = arith.constant 2 : index
    %c0_44 = arith.constant 0 : index
    %c0_45 = arith.constant 0 : index
    %43 = vector.load %arg2[%c0_42, %c2_43, %c0_44, %c0_45] : memref<1x12x18x16xf32, #tpu.memory_space<vmem>>, vector<1x10x16x16xf32>
    %44 = vector.shape_cast %43 : vector<1x10x16x16xf32> to vector<10x16x16xf32>
    %45 = vector.shape_cast %44 : vector<10x16x16xf32> to vector<160x16xf32>
    %c6 = arith.constant 6 : index
    %c0_46 = arith.constant 0 : index
    %c0_47 = arith.constant 0 : index
    %46 = vector.load %arg3[%c6, %c0_46, %c0_47] : memref<9x16x128xf32, #tpu.memory_space<vmem>>, vector<1x16x128xf32>
    %47 = vector.shape_cast %46 : vector<1x16x128xf32> to vector<16x128xf32>
    %cst_48 = arith.constant dense<0.000000e+00> : vector<160x128xf32>
    %48 = tpu.matmul %45, %47, %cst_48 {dimension_numbers = #tpu.dot_dimension_numbers<[1], [0], [0], [1], [0, 0, 1, 1], [], []>} : vector<160x16xf32>, vector<16x128xf32>, vector<160x128xf32> -> vector<160x128xf32>
    %49 = arith.addf %42, %48 : vector<160x128xf32>
    %c0_49 = arith.constant 0 : index
    %c2_50 = arith.constant 2 : index
    %c1_51 = arith.constant 1 : index
    %c0_52 = arith.constant 0 : index
    %50 = vector.load %arg2[%c0_49, %c2_50, %c1_51, %c0_52] : memref<1x12x18x16xf32, #tpu.memory_space<vmem>>, vector<1x10x16x16xf32>
    %51 = vector.shape_cast %50 : vector<1x10x16x16xf32> to vector<10x16x16xf32>
    %52 = vector.shape_cast %51 : vector<10x16x16xf32> to vector<160x16xf32>
    %c7 = arith.constant 7 : index
    %c0_53 = arith.constant 0 : index
    %c0_54 = arith.constant 0 : index
    %53 = vector.load %arg3[%c7, %c0_53, %c0_54] : memref<9x16x128xf32, #tpu.memory_space<vmem>>, vector<1x16x128xf32>
    %54 = vector.shape_cast %53 : vector<1x16x128xf32> to vector<16x128xf32>
    %cst_55 = arith.constant dense<0.000000e+00> : vector<160x128xf32>
    %55 = tpu.matmul %52, %54, %cst_55 {dimension_numbers = #tpu.dot_dimension_numbers<[1], [0], [0], [1], [0, 0, 1, 1], [], []>} : vector<160x16xf32>, vector<16x128xf32>, vector<160x128xf32> -> vector<160x128xf32>
    %56 = arith.addf %49, %55 : vector<160x128xf32>
    %c0_56 = arith.constant 0 : index
    %c2_57 = arith.constant 2 : index
    %c2_58 = arith.constant 2 : index
    %c0_59 = arith.constant 0 : index
    %57 = vector.load %arg2[%c0_56, %c2_57, %c2_58, %c0_59] : memref<1x12x18x16xf32, #tpu.memory_space<vmem>>, vector<1x10x16x16xf32>
    %58 = vector.shape_cast %57 : vector<1x10x16x16xf32> to vector<10x16x16xf32>
    %59 = vector.shape_cast %58 : vector<10x16x16xf32> to vector<160x16xf32>
    %c8 = arith.constant 8 : index
    %c0_60 = arith.constant 0 : index
    %c0_61 = arith.constant 0 : index
    %60 = vector.load %arg3[%c8, %c0_60, %c0_61] : memref<9x16x128xf32, #tpu.memory_space<vmem>>, vector<1x16x128xf32>
    %61 = vector.shape_cast %60 : vector<1x16x128xf32> to vector<16x128xf32>
    %cst_62 = arith.constant dense<0.000000e+00> : vector<160x128xf32>
    %62 = tpu.matmul %59, %61, %cst_62 {dimension_numbers = #tpu.dot_dimension_numbers<[1], [0], [0], [1], [0, 0, 1, 1], [], []>} : vector<160x16xf32>, vector<16x128xf32>, vector<160x128xf32> -> vector<160x128xf32>
    %63 = arith.addf %56, %62 : vector<160x128xf32>
    %c0_63 = arith.constant 0 : index
    %c0_64 = arith.constant 0 : index
    %64 = vector.load %arg4[%c0_63, %c0_64] : memref<1x128xf32, #tpu.memory_space<vmem>>, vector<1x128xf32>
    %65 = vector.broadcast %64 : vector<1x128xf32> to vector<160x128xf32>
    %66 = arith.addf %63, %65 : vector<160x128xf32>
    %cst_65 = arith.constant 0.000000e+00 : f32
    %67 = vector.broadcast %cst_65 : f32 to vector<160x128xf32>
    %68 = arith.maximumf %66, %67 : vector<160x128xf32>
    %c0_66 = arith.constant 0 : index
    %c0_67 = arith.constant 0 : index
    %69 = vector.load %arg5[%c0_66, %c0_67] : memref<128x128xf32, #tpu.memory_space<vmem>>, vector<128x128xf32>
    %cst_68 = arith.constant dense<0.000000e+00> : vector<160x128xf32>
    %70 = tpu.matmul %68, %69, %cst_68 {dimension_numbers = #tpu.dot_dimension_numbers<[1], [0], [0], [1], [0, 0, 1, 1], [], []>} : vector<160x128xf32>, vector<128x128xf32>, vector<160x128xf32> -> vector<160x128xf32>
    %c0_69 = arith.constant 0 : index
    %c0_70 = arith.constant 0 : index
    %71 = vector.load %arg6[%c0_69, %c0_70] : memref<1x128xf32, #tpu.memory_space<vmem>>, vector<1x128xf32>
    %72 = vector.broadcast %71 : vector<1x128xf32> to vector<160x128xf32>
    %73 = arith.addf %70, %72 : vector<160x128xf32>
    %cst_71 = arith.constant 0.000000e+00 : f32
    %74 = vector.broadcast %cst_71 : f32 to vector<160x128xf32>
    %75 = arith.maximumf %73, %74 : vector<160x128xf32>
    %76 = vector.shape_cast %75 : vector<160x128xf32> to vector<10x16x128xf32>
    %c0_72 = arith.constant 0 : index
    %c1_73 = arith.constant 1 : index
    %c0_74 = arith.constant 0 : index
    %77 = vector.load %arg10[%c0_72, %c1_73, %c0_74] : memref<10x18x128xf32, #tpu.memory_space<vmem>>, vector<10x16x128xf32>
    tpu.vector_store %arg10[%c0_72, %c1_73, %c0_74], %76 {strides = array<i32>} : memref<10x18x128xf32, #tpu.memory_space<vmem>>, vector<10x16x128xf32>,
    %cst_75 = arith.constant 0.000000e+00 : f32
    %78 = vector.broadcast %cst_75 : f32 to vector<10x1x128xf32>
    %c0_76 = arith.constant 0 : index
    %c0_77 = arith.constant 0 : index
    %c0_78 = arith.constant 0 : index
    %79 = vector.load %arg10[%c0_76, %c0_77, %c0_78] : memref<10x18x128xf32, #tpu.memory_space<vmem>>, vector<10x1x128xf32>
    tpu.vector_store %arg10[%c0_76, %c0_77, %c0_78], %78 {strides = array<i32>} : memref<10x18x128xf32, #tpu.memory_space<vmem>>, vector<10x1x128xf32>,
    %c0_79 = arith.constant 0 : index
    %c17 = arith.constant 17 : index
    %c0_80 = arith.constant 0 : index
    %80 = vector.load %arg10[%c0_79, %c17, %c0_80] : memref<10x18x128xf32, #tpu.memory_space<vmem>>, vector<10x1x128xf32>
    tpu.vector_store %arg10[%c0_79, %c17, %c0_80], %78 {strides = array<i32>} : memref<10x18x128xf32, #tpu.memory_space<vmem>>, vector<10x1x128xf32>,
    %cst_81 = arith.constant 0.000000e+00 : f32
    %81 = vector.broadcast %cst_81 : f32 to vector<1x18x128xf32>
    %c0_i32 = arith.constant 0 : i32
    %82 = arith.cmpi eq, %arg1, %c0_i32 : i32
    %83 = arith.extui %82 : i1 to i32
    %c0_i32_82 = arith.constant 0 : i32
    %84 = arith.cmpi ne, %83, %c0_i32_82 : i32
    scf.if %84 {
      %c0_159 = arith.constant 0 : index
      %c0_160 = arith.constant 0 : index
      %c0_161 = arith.constant 0 : index
      %156 = vector.load %arg10[%c0_159, %c0_160, %c0_161] : memref<10x18x128xf32, #tpu.memory_space<vmem>>, vector<1x18x128xf32>
      tpu.vector_store %arg10[%c0_159, %c0_160, %c0_161], %81 {strides = array<i32>} : memref<10x18x128xf32, #tpu.memory_space<vmem>>, vector<1x18x128xf32>,
    } else {
    }
    %c1_i32 = arith.constant 1 : i32
    %85 = arith.cmpi eq, %arg1, %c1_i32 : i32
    %86 = arith.extui %85 : i1 to i32
    %c0_i32_83 = arith.constant 0 : i32
    %87 = arith.cmpi ne, %86, %c0_i32_83 : i32
    scf.if %87 {
      %c9 = arith.constant 9 : index
      %c0_159 = arith.constant 0 : index
      %c0_160 = arith.constant 0 : index
      %156 = vector.load %arg10[%c9, %c0_159, %c0_160] : memref<10x18x128xf32, #tpu.memory_space<vmem>>, vector<1x18x128xf32>
      tpu.vector_store %arg10[%c9, %c0_159, %c0_160], %81 {strides = array<i32>} : memref<10x18x128xf32, #tpu.memory_space<vmem>>, vector<1x18x128xf32>,
    } else {
    }
    %cst_84 = arith.constant 0.000000e+00 : f32
    %88 = vector.broadcast %cst_84 : f32 to vector<128x16xf32>
    %c0_85 = arith.constant 0 : index
    %c0_86 = arith.constant 0 : index
    %c0_87 = arith.constant 0 : index
    %89 = vector.load %arg10[%c0_85, %c0_86, %c0_87] : memref<10x18x128xf32, #tpu.memory_space<vmem>>, vector<8x16x128xf32>
    %90 = vector.shape_cast %89 : vector<8x16x128xf32> to vector<128x128xf32>
    %c0_88 = arith.constant 0 : index
    %c0_89 = arith.constant 0 : index
    %c0_90 = arith.constant 0 : index
    %91 = vector.load %arg7[%c0_88, %c0_89, %c0_90] : memref<9x128x16xf32, #tpu.memory_space<vmem>>, vector<1x128x16xf32>
    %92 = vector.shape_cast %91 : vector<1x128x16xf32> to vector<128x16xf32>
    %cst_91 = arith.constant dense<0.000000e+00> : vector<128x16xf32>
    %93 = tpu.matmul %90, %92, %cst_91 {dimension_numbers = #tpu.dot_dimension_numbers<[1], [0], [0], [1], [0, 0, 1, 1], [], []>} : vector<128x128xf32>, vector<128x16xf32>, vector<128x16xf32> -> vector<128x16xf32>
    %94 = arith.addf %88, %93 : vector<128x16xf32>
    %c0_92 = arith.constant 0 : index
    %c1_93 = arith.constant 1 : index
    %c0_94 = arith.constant 0 : index
    %95 = vector.load %arg10[%c0_92, %c1_93, %c0_94] : memref<10x18x128xf32, #tpu.memory_space<vmem>>, vector<8x16x128xf32>
    %96 = vector.shape_cast %95 : vector<8x16x128xf32> to vector<128x128xf32>
    %c1_95 = arith.constant 1 : index
    %c0_96 = arith.constant 0 : index
    %c0_97 = arith.constant 0 : index
    %97 = vector.load %arg7[%c1_95, %c0_96, %c0_97] : memref<9x128x16xf32, #tpu.memory_space<vmem>>, vector<1x128x16xf32>
    %98 = vector.shape_cast %97 : vector<1x128x16xf32> to vector<128x16xf32>
    %cst_98 = arith.constant dense<0.000000e+00> : vector<128x16xf32>
    %99 = tpu.matmul %96, %98, %cst_98 {dimension_numbers = #tpu.dot_dimension_numbers<[1], [0], [0], [1], [0, 0, 1, 1], [], []>} : vector<128x128xf32>, vector<128x16xf32>, vector<128x16xf32> -> vector<128x16xf32>
    %100 = arith.addf %94, %99 : vector<128x16xf32>
    %c0_99 = arith.constant 0 : index
    %c2_100 = arith.constant 2 : index
    %c0_101 = arith.constant 0 : index
    %101 = vector.load %arg10[%c0_99, %c2_100, %c0_101] : memref<10x18x128xf32, #tpu.memory_space<vmem>>, vector<8x16x128xf32>
    %102 = vector.shape_cast %101 : vector<8x16x128xf32> to vector<128x128xf32>
    %c2_102 = arith.constant 2 : index
    %c0_103 = arith.constant 0 : index
    %c0_104 = arith.constant 0 : index
    %103 = vector.load %arg7[%c2_102, %c0_103, %c0_104] : memref<9x128x16xf32, #tpu.memory_space<vmem>>, vector<1x128x16xf32>
    %104 = vector.shape_cast %103 : vector<1x128x16xf32> to vector<128x16xf32>
    %cst_105 = arith.constant dense<0.000000e+00> : vector<128x16xf32>
    %105 = tpu.matmul %102, %104, %cst_105 {dimension_numbers = #tpu.dot_dimension_numbers<[1], [0], [0], [1], [0, 0, 1, 1], [], []>} : vector<128x128xf32>, vector<128x16xf32>, vector<128x16xf32> -> vector<128x16xf32>
    %106 = arith.addf %100, %105 : vector<128x16xf32>
    %c1_106 = arith.constant 1 : index
    %c0_107 = arith.constant 0 : index
    %c0_108 = arith.constant 0 : index
    %107 = vector.load %arg10[%c1_106, %c0_107, %c0_108] : memref<10x18x128xf32, #tpu.memory_space<vmem>>, vector<8x16x128xf32>
    %108 = vector.shape_cast %107 : vector<8x16x128xf32> to vector<128x128xf32>
    %c3_109 = arith.constant 3 : index
    %c0_110 = arith.constant 0 : index
    %c0_111 = arith.constant 0 : index
    %109 = vector.load %arg7[%c3_109, %c0_110, %c0_111] : memref<9x128x16xf32, #tpu.memory_space<vmem>>, vector<1x128x16xf32>
    %110 = vector.shape_cast %109 : vector<1x128x16xf32> to vector<128x16xf32>
    %cst_112 = arith.constant dense<0.000000e+00> : vector<128x16xf32>
    %111 = tpu.matmul %108, %110, %cst_112 {dimension_numbers = #tpu.dot_dimension_numbers<[1], [0], [0], [1], [0, 0, 1, 1], [], []>} : vector<128x128xf32>, vector<128x16xf32>, vector<128x16xf32> -> vector<128x16xf32>
    %112 = arith.addf %106, %111 : vector<128x16xf32>
    %c1_113 = arith.constant 1 : index
    %c1_114 = arith.constant 1 : index
    %c0_115 = arith.constant 0 : index
    %113 = vector.load %arg10[%c1_113, %c1_114, %c0_115] : memref<10x18x128xf32, #tpu.memory_space<vmem>>, vector<8x16x128xf32>
    %114 = vector.shape_cast %113 : vector<8x16x128xf32> to vector<128x128xf32>
    %c4_116 = arith.constant 4 : index
    %c0_117 = arith.constant 0 : index
    %c0_118 = arith.constant 0 : index
    %115 = vector.load %arg7[%c4_116, %c0_117, %c0_118] : memref<9x128x16xf32, #tpu.memory_space<vmem>>, vector<1x128x16xf32>
    %116 = vector.shape_cast %115 : vector<1x128x16xf32> to vector<128x16xf32>
    %cst_119 = arith.constant dense<0.000000e+00> : vector<128x16xf32>
    %117 = tpu.matmul %114, %116, %cst_119 {dimension_numbers = #tpu.dot_dimension_numbers<[1], [0], [0], [1], [0, 0, 1, 1], [], []>} : vector<128x128xf32>, vector<128x16xf32>, vector<128x16xf32> -> vector<128x16xf32>
    %118 = arith.addf %112, %117 : vector<128x16xf32>
    %c1_120 = arith.constant 1 : index
    %c2_121 = arith.constant 2 : index
    %c0_122 = arith.constant 0 : index
    %119 = vector.load %arg10[%c1_120, %c2_121, %c0_122] : memref<10x18x128xf32, #tpu.memory_space<vmem>>, vector<8x16x128xf32>
    %120 = vector.shape_cast %119 : vector<8x16x128xf32> to vector<128x128xf32>
    %c5_123 = arith.constant 5 : index
    %c0_124 = arith.constant 0 : index
    %c0_125 = arith.constant 0 : index
    %121 = vector.load %arg7[%c5_123, %c0_124, %c0_125] : memref<9x128x16xf32, #tpu.memory_space<vmem>>, vector<1x128x16xf32>
    %122 = vector.shape_cast %121 : vector<1x128x16xf32> to vector<128x16xf32>
    %cst_126 = arith.constant dense<0.000000e+00> : vector<128x16xf32>
    %123 = tpu.matmul %120, %122, %cst_126 {dimension_numbers = #tpu.dot_dimension_numbers<[1], [0], [0], [1], [0, 0, 1, 1], [], []>} : vector<128x128xf32>, vector<128x16xf32>, vector<128x16xf32> -> vector<128x16xf32>
    %124 = arith.addf %118, %123 : vector<128x16xf32>
    %c2_127 = arith.constant 2 : index
    %c0_128 = arith.constant 0 : index
    %c0_129 = arith.constant 0 : index
    %125 = vector.load %arg10[%c2_127, %c0_128, %c0_129] : memref<10x18x128xf32, #tpu.memory_space<vmem>>, vector<8x16x128xf32>
    %126 = vector.shape_cast %125 : vector<8x16x128xf32> to vector<128x128xf32>
    %c6_130 = arith.constant 6 : index
    %c0_131 = arith.constant 0 : index
    %c0_132 = arith.constant 0 : index
    %127 = vector.load %arg7[%c6_130, %c0_131, %c0_132] : memref<9x128x16xf32, #tpu.memory_space<vmem>>, vector<1x128x16xf32>
    %128 = vector.shape_cast %127 : vector<1x128x16xf32> to vector<128x16xf32>
    %cst_133 = arith.constant dense<0.000000e+00> : vector<128x16xf32>
    %129 = tpu.matmul %126, %128, %cst_133 {dimension_numbers = #tpu.dot_dimension_numbers<[1], [0], [0], [1], [0, 0, 1, 1], [], []>} : vector<128x128xf32>, vector<128x16xf32>, vector<128x16xf32> -> vector<128x16xf32>
    %130 = arith.addf %124, %129 : vector<128x16xf32>
    %c2_134 = arith.constant 2 : index
    %c1_135 = arith.constant 1 : index
    %c0_136 = arith.constant 0 : index
    %131 = vector.load %arg10[%c2_134, %c1_135, %c0_136] : memref<10x18x128xf32, #tpu.memory_space<vmem>>, vector<8x16x128xf32>
    %132 = vector.shape_cast %131 : vector<8x16x128xf32> to vector<128x128xf32>
    %c7_137 = arith.constant 7 : index
    %c0_138 = arith.constant 0 : index
    %c0_139 = arith.constant 0 : index
    %133 = vector.load %arg7[%c7_137, %c0_138, %c0_139] : memref<9x128x16xf32, #tpu.memory_space<vmem>>, vector<1x128x16xf32>
    %134 = vector.shape_cast %133 : vector<1x128x16xf32> to vector<128x16xf32>
    %cst_140 = arith.constant dense<0.000000e+00> : vector<128x16xf32>
    %135 = tpu.matmul %132, %134, %cst_140 {dimension_numbers = #tpu.dot_dimension_numbers<[1], [0], [0], [1], [0, 0, 1, 1], [], []>} : vector<128x128xf32>, vector<128x16xf32>, vector<128x16xf32> -> vector<128x16xf32>
    %136 = arith.addf %130, %135 : vector<128x16xf32>
    %c2_141 = arith.constant 2 : index
    %c2_142 = arith.constant 2 : index
    %c0_143 = arith.constant 0 : index
    %137 = vector.load %arg10[%c2_141, %c2_142, %c0_143] : memref<10x18x128xf32, #tpu.memory_space<vmem>>, vector<8x16x128xf32>
    %138 = vector.shape_cast %137 : vector<8x16x128xf32> to vector<128x128xf32>
    %c8_144 = arith.constant 8 : index
    %c0_145 = arith.constant 0 : index
    %c0_146 = arith.constant 0 : index
    %139 = vector.load %arg7[%c8_144, %c0_145, %c0_146] : memref<9x128x16xf32, #tpu.memory_space<vmem>>, vector<1x128x16xf32>
    %140 = vector.shape_cast %139 : vector<1x128x16xf32> to vector<128x16xf32>
    %cst_147 = arith.constant dense<0.000000e+00> : vector<128x16xf32>
    %141 = tpu.matmul %138, %140, %cst_147 {dimension_numbers = #tpu.dot_dimension_numbers<[1], [0], [0], [1], [0, 0, 1, 1], [], []>} : vector<128x128xf32>, vector<128x16xf32>, vector<128x16xf32> -> vector<128x16xf32>
    %142 = arith.addf %136, %141 : vector<128x16xf32>
    %c0_148 = arith.constant 0 : index
    %c0_149 = arith.constant 0 : index
    %143 = vector.load %arg8[%c0_148, %c0_149] : memref<1x16xf32, #tpu.memory_space<vmem>>, vector<1x16xf32>
    %144 = vector.broadcast %143 : vector<1x16xf32> to vector<128x16xf32>
    %145 = arith.addf %142, %144 : vector<128x16xf32>
    %c0_150 = arith.constant 0 : index
    %c2_151 = arith.constant 2 : index
    %c1_152 = arith.constant 1 : index
    %c0_153 = arith.constant 0 : index
    %146 = vector.load %arg2[%c0_150, %c2_151, %c1_152, %c0_153] : memref<1x12x18x16xf32, #tpu.memory_space<vmem>>, vector<1x8x16x16xf32>
    %147 = vector.shape_cast %146 : vector<1x8x16x16xf32> to vector<8x16x16xf32>
    %148 = vector.shape_cast %147 : vector<8x16x16xf32> to vector<128x16xf32>
    %149 = arith.addf %148, %145 : vector<128x16xf32>
    %cst_154 = arith.constant 0.000000e+00 : f32
    %150 = vector.broadcast %cst_154 : f32 to vector<128x16xf32>
    %151 = arith.maximumf %149, %150 : vector<128x16xf32>
    %152 = vector.shape_cast %151 : vector<128x16xf32> to vector<8x16x16xf32>
    %c0_155 = arith.constant 0 : index
    %c0_156 = arith.constant 0 : index
    %c0_157 = arith.constant 0 : index
    %c0_158 = arith.constant 0 : index
    %153 = vector.load %arg9[%c0_155, %c0_156, %c0_157, %c0_158] : memref<1x8x16x16xf32, #tpu.memory_space<vmem>>, vector<1x8x16x16xf32>
    %154 = vector.shape_cast %153 : vector<1x8x16x16xf32> to vector<8x16x16xf32>
    %155 = vector.shape_cast %152 : vector<8x16x16xf32> to vector<1x8x16x16xf32>
    tpu.vector_store %arg9[%c0_155, %c0_156, %c0_157, %c0_158], %155 {strides = array<i32>} : memref<1x8x16x16xf32, #tpu.memory_space<vmem>>, vector<1x8x16x16xf32>,
    return
  }
  func.func @transform_0(%arg0: i32, %arg1: i32) -> (i32, i32, i32, i32) {
    %c2_i32 = arith.constant 2 : i32
    %0 = arith.muli %arg0, %c2_i32 : i32
    %1 = arith.addi %0, %arg1 : i32
    %c0_i32 = arith.constant 0 : i32
    %c0_i32_0 = arith.constant 0 : i32
    %c0_i32_1 = arith.constant 0 : i32
    %c0_i32_2 = arith.constant 0 : i32
    return %1, %c0_i32, %c0_i32_0, %c0_i32_1 : i32, i32, i32, i32
  }
  func.func @transform_1(%arg0: i32, %arg1: i32) -> (i32, i32, i32) {
    %c0_i32 = arith.constant 0 : i32
    %c0_i32_0 = arith.constant 0 : i32
    %c0_i32_1 = arith.constant 0 : i32
    %c0_i32_2 = arith.constant 0 : i32
    return %c0_i32, %c0_i32_0, %c0_i32_1 : i32, i32, i32
  }
  func.func @transform_2(%arg0: i32, %arg1: i32) -> (i32, i32) {
    %c0_i32 = arith.constant 0 : i32
    %c0_i32_0 = arith.constant 0 : i32
    %c0_i32_1 = arith.constant 0 : i32
    return %c0_i32, %c0_i32_0 : i32, i32
  }
  func.func @transform_3(%arg0: i32, %arg1: i32) -> (i32, i32) {
    %c0_i32 = arith.constant 0 : i32
    %c0_i32_0 = arith.constant 0 : i32
    %c0_i32_1 = arith.constant 0 : i32
    return %c0_i32, %c0_i32_0 : i32, i32
  }
  func.func @transform_4(%arg0: i32, %arg1: i32) -> (i32, i32) {
    %c0_i32 = arith.constant 0 : i32
    %c0_i32_0 = arith.constant 0 : i32
    %c0_i32_1 = arith.constant 0 : i32
    return %c0_i32, %c0_i32_0 : i32, i32
  }
  func.func @transform_5(%arg0: i32, %arg1: i32) -> (i32, i32, i32) {
    %c0_i32 = arith.constant 0 : i32
    %c0_i32_0 = arith.constant 0 : i32
    %c0_i32_1 = arith.constant 0 : i32
    %c0_i32_2 = arith.constant 0 : i32
    return %c0_i32, %c0_i32_0, %c0_i32_1 : i32, i32, i32
  }
  func.func @transform_6(%arg0: i32, %arg1: i32) -> (i32, i32) {
    %c0_i32 = arith.constant 0 : i32
    %c0_i32_0 = arith.constant 0 : i32
    %c0_i32_1 = arith.constant 0 : i32
    return %c0_i32, %c0_i32_0 : i32, i32
  }
  func.func @transform_7(%arg0: i32, %arg1: i32) -> (i32, i32, i32, i32) {
    %c0_i32 = arith.constant 0 : i32
    %c0_i32_0 = arith.constant 0 : i32
    %c0_i32_1 = arith.constant 0 : i32
    return %arg0, %arg1, %c0_i32, %c0_i32_0 : i32, i32, i32, i32
  }
}

</mosaic_0001>

<bundles_post_ra>
// kernel: tpu_custom_call.1
= control target key start
LH: loop header
LB: loop body
LE: loop exit
PB: predicated region body
PF: predicated region fallthrough
CT: control target
= control target key end

     0   :  { %s9015_s0 = inlined_call_operand.vmem [shape: f32[4,12,18,16], index: 0, kind: input, shape index: {}]   ;;  %s9016_s1 = inlined_call_operand.vmem [shape: f32[9,16,128], index: 1, kind: input, shape index: {}]   ;;  %s9017_s2 = inlined_call_operand.vmem [shape: f32[1,128], index: 2, kind: input, shape index: {}]   ;;  %s9018_s3 = inlined_call_operand.vmem [shape: f32[128,128], index: 3, kind: input, shape index: {}]   ;;  %s9019_s4 = inlined_call_operand.vmem [shape: f32[1,128], index: 4, kind: input, shape index: {}]   ;;  %s9020_s5 = inlined_call_operand.vmem [shape: f32[9,128,16], index: 5, kind: input, shape index: {}]   ;;  %s9021_s6 = inlined_call_operand.vmem [shape: f32[1,16], index: 6, kind: input, shape index: {}]   ;;  %s9022_s7 = inlined_call_operand.hbm [shape: f32[2,16,16,16], index: 7, kind: output, shape index: {}]  }
   0x1   :  { %9024 = sst [smem:[#allocation34_spill]] %s9015_s0 }
   0x2   :  { %9025 = sst [smem:[#allocation35_spill]] %s9016_s1 }
   0x3   :  { %12 = vsyncpa [#allocation4], 0 }
   0x4   :  { %14 = vsyncpa [#allocation4 + $0x1], 0  ;;  %s6983_s24 = smov 0   ;;  %s6985_s25 = smov 0  }
   0x5   :  { %s6987_s26 = smov 0   ;;  %s6989_s27 = smov 0  }
   0x6   :  { %s6991_s28 = smov 0   ;;  %s6993_s29 = smov 0  }
   0x7   :  { %s6995_s30 = smov 0   ;;  %s6997_s8 = smov 0  }
   0x8 LB: > { %s4885_s9 = sadd.s32 4294967295, %s6935_s8   ;;  %s4886_s10 = sadd.s32 4294967294, %s6935_s8   ;;  %s6935_s8 = sphi %s6997_s8, %s20_s8   ;;  %s6931_s30 = sphi %s6995_s30, %s9115_s30   ;;  %s6927_s29 = sphi %s6993_s29, %s9114_s29   ;;  %s6923_s28 = sphi %s6991_s28, %s9113_s28   ;;  %s6919_s27 = sphi %s6989_s27, %s9112_s27   ;;  %s6915_s26 = sphi %s6987_s26, %s9111_s26   ;;  %s6911_s25 = sphi %s6985_s25, %s9110_s25   ;;  %s6907_s24 = sphi %s6983_s24, %s9109_s24  }
   0x9   : > { %s29_s11 = sadd.s32 1, %s6927_s29  ;;  %s32_s12 = sadd.s32 1, %s6931_s30 }
   0xa   : > { %p30_p0 = scmp.ge.s32.totalorder %s29_s11, 2  ;;  %p207_p1 = scmp.ne.s32.totalorder %s6915_s26, %s6911_s25 }
   0xb   : > { %p208_p2 = scmp.eq.s32.totalorder %s4885_s9, 3  ;;  %p213_p5 = scmp.ne.s32.totalorder %s6911_s25, %s6907_s24 }
   0xc   : > { %s9117_s11 = smov (%p30_p0, %s29_s11), 0  ;;  %s9119_s12 = smov (!%p30_p0, %s32_s12), %s6931_s30 }
   0xd   : > { %s193_s13 = ssub.s32 %s6927_s29, %s9117_s11  ;;  %p7034_p3 = por %p208_p2, %p207_p1 }
   0xe   : > { %p34_p4 = scmp.ge.s32.totalorder %s9119_s12, 2  ;;  %p214_p6 = scmp.eq.s32.totalorder %s4886_s10, 3 }
   0xf   : > { %p4891_p7 = scmp.ge.s32.totalorder %s6935_s8, 1  ;;  %p262_p9 = scmp.lt.s32.totalorder %s6935_s8, 5 }
  0x10   : > { %s9121_s12 = smov (%p34_p4, %s9119_s12), 0  ;;  %p7043_p8 = por %p214_p6, %p213_p5 }
  0x11   : > { %s192_s16 = ssub.s32 %s6931_s30, %s9121_s12  ;;  %s197_s17 = sadd.s32 1, %s6915_s26 }
  0x12   : > { %s194_s18 = sor.u32 %s193_s13, %s192_s16  ;;  %p263_p10 = pnand %p4891_p7, %p262_p9 }
  0x13   : > { %p195_p11 = scmp.eq.s32.totalorder %s194_s18, 0 }
  0x14   : > { %266 = sbr.rel (%p263_p10) target bundleno = 1089 (0x441), region = 48 }
  0x15   : > { %s7052_s19 = scalar_select %p195_p11, %s6915_s26, %s197_s17  }
  0x19   : > { %s9023_s20 = sand.u32 1, %s6911_s25   ;;  %s9028_s1 = sld [smem:[#allocation35_spill]]  ;;  %vm351_vm0 = vcmask 130048  }
  0x1a   : > { %s4893_s10 = sshll.u32 %s6923_s28, 1  ;;  %s7064_s13 = sshll.u32 %s9023_s20, 7 }
  0x1b   : > { %s297_s16 = sadd.s32 %s6919_s27, %s4893_s10  ;;  %s9029_s0 = sld [smem:[#allocation34_spill]] }
  0x1c   : > { %p298_p12 = scmp.lt.s32.totalorder %s297_s16, 3  ;;  %p5213_p13 = scmp.ne.s32.totalorder %s6919_s27, 0 }
  0x1e   : > { %s9123_s16 = smov (!%p298_p12, %s297_s16), 3 }
  0x1f   : > { %v4896_v0 = vld [vmem:[%s9028_s1 + $0x18] sm:$0xff]  ;;  %v4895_v1 = vld [vmem:[%s9028_s1 + $0x10] sm:$0xff]  ;;  %v4938_v2 = vld [vmem:[%s9028_s1 + $0x28] sm:$0xff]  ;;  %s6766_s23 = smul.u32 288, %s9123_s16  ;;  %s7979_s16 = scalar_lea.vmem [#allocation3], %s7064_s13 }
  0x20   : > { %5890 = vmatprep.subr.mxu0 %v4896_v0  ;;  %6762 = vmatprep.subr.mxu1 %v4896_v0  ;;  %v327_v3 = vld [vmem:[%s9028_s1 + $0x8] sm:$0xff]  ;;  %v4937_v10 = vld [vmem:[%s9028_s1 + $0x20] sm:$0xff]  ;;  %v4980_v16 = vld [vmem:[%s9028_s1 + $0x38] sm:$0xff] }
  0x21   : > { %5891 = vmatpush3.msra.mxu0 %v4896_v0  ;;  %6764 = vmatpush3.msra.mxu1 %v4896_v0  ;;  %s7076_s20 = scalar_lea.vmem %s9029_s0, %s6766_s23  ;;  %v326_v11 = vld [vmem:[%s9028_s1] sm:$0xff]  ;;  %v5022_v17 = vld [vmem:[%s9028_s1 + $0x48] sm:$0xff]  ;;  %v4979_v30 = vld [vmem:[%s9028_s1 + $0x30] sm:$0xff] }
  0x22   : > { %5892 = vmatprep.subr.mxu0 %v4895_v1  ;;  %6763 = vmatprep.subr.mxu1 %v4895_v1  ;;  %v328_v4 = vld [vmem:[%s7076_s20 + $0x1] sm:$0xff]  ;;  %v7080_v5 = vld [vmem:[%s7076_s20 + $0x91] sm:$0xff]  ;;  %v329_v6 = vld [vmem:[%s7076_s20 + $0x9] sm:$0xff] }
  0x23   : > { %5893 = vmatpush3.msra.mxu0 %v4895_v1  ;;  %6765 = vmatpush3.msra.mxu1 %v4895_v1  ;;  %v7087_v7 = vld [vmem:[%s7076_s20 + $0x99] sm:$0xff]  ;;  %v7093_v9 = vld [vmem:[%s7076_s20 + $0xa9] sm:$0xff]  ;;  %v7107_v12 = vld [vmem:[%s7076_s20 + $0x21] sm:$0xff] }
  0x24   : > { %5958 = vmatprep.subr.mxu0 %v4938_v2  ;;  %5924 = vmatprep.subr.mxu1 %v327_v3  ;;  %v7090_v8 = vld [vmem:[%s7076_s20 + $0x19] sm:$0xff]  ;;  %v7110_v13 = vld [vmem:[%s7076_s20 + $0xb1] sm:$0xff]  ;;  %v7118_v15 = vld [vmem:[%s7076_s20 + $0xc1] sm:$0xff] }
  0x25   : > { %5894 = vmatprep.mubr.msk.f32.mxu0 %vm351_vm0, %v328_v4  ;;  %5912 = vmatprep.mubr.msk.f32.mxu1 %vm351_vm0, %v7080_v5  ;;  %v7115_v14 = vld [vmem:[%s7076_s20 + $0x31] sm:$0xff]  ;;  %v7135_v18 = vld [vmem:[%s7076_s20 + $0x39] sm:$0xff]  ;;  %v7138_v19 = vld [vmem:[%s7076_s20 + $0xc9] sm:$0xff] }
  0x26   : > { %5895 = vmatmul.mubr.msk.f32.vlgmr.msra.gmra.mxu0 %vm351_vm0, %v329_v6  ;;  %5913 = vmatmul.mubr.msk.f32.vlgmr.msra.gmra.mxu1 %vm351_vm0, %v7087_v7  ;;  %v7141_v20 = vld [vmem:[%s7076_s20 + $0x49] sm:$0xff]  ;;  %v7144_v21 = vld [vmem:[%s7076_s20 + $0xd9] sm:$0xff]  ;;  %v7155_v22 = vld [vmem:[%s7076_s20 + $0x51] sm:$0xff] }
  0x27   : > { %5959 = vmatpush3.msra.mxu0 %v4938_v2  ;;  %5897 = vmatprep.mubr.msk.f32.mxu0 %vm351_vm0, %v7090_v8  ;;  %v7158_v23 = vld [vmem:[%s7076_s20 + $0xe1] sm:$0xff]  ;;  %v7172_v26 = vld [vmem:[%s7076_s20 + $0x69] sm:$0xff]  ;;  %v7176_v28 = vld [vmem:[%s7076_s20 + $0x79] sm:$0xff] }
  0x28   : > { %5915 = vmatprep.mubr.msk.f32.mxu1 %vm351_vm0, %v7093_v9  ;;  %5925 = vmatpush3.msra.mxu1 %v327_v3  ;;  %v7161_v24 = vld [vmem:[%s7076_s20 + $0x61] sm:$0xff]  ;;  %v7179_v29 = vld [vmem:[%s7076_s20 + $0x18] sm:$0xff]  ;;  %v7198_v33 = vld [vmem:[%s7076_s20 + $0x30] sm:$0xff] }
  0x29   : > { %5960 = vmatprep.subr.mxu0 %v4937_v10  ;;  %5926 = vmatprep.subr.mxu1 %v326_v11  ;;  %v306_v25 = vld [vmem:[%s7076_s20] sm:$0xff]  ;;  %v307_v27 = vld [vmem:[%s7076_s20 + $0x8] sm:$0xff]  ;;  %v7208_v35 = vld [vmem:[%s9028_s1 + $0x58] sm:$0xff] }
  0x2a   : > { %5898 = vmatmul.mubr.msk.f32.gmra.mxu0 %vm351_vm0, %v7107_v12  ;;  %5916 = vmatmul.mubr.msk.f32.gmra.mxu1 %vm351_vm0, %v7110_v13  ;;  %v7192_v31 = vld [vmem:[%s7076_s20 + $0x81] sm:$0xff]  ;;  %v7214_v36 = vld [vmem:[%s7076_s20 + $0x38] sm:$0xff]  ;;  %v803_v37 = vld [vmem:[%s7076_s20 + $0xa] sm:$0xff] }
  0x2b   : > { %5900 = vmatprep.mubr.msk.f32.mxu0 %vm351_vm0, %v7115_v14  ;;  %5918 = vmatprep.mubr.msk.f32.mxu1 %vm351_vm0, %v7118_v15  ;;  %v7195_v32 = vld [vmem:[%s7076_s20 + $0x20] sm:$0xff]  ;;  %v7218_v38 = vld [vmem:[%s7076_s20 + $0x48] sm:$0xff]  ;;  %v7233_v41 = vld [vmem:[%s7076_s20 + $0x50] sm:$0xff] }
  0x2c   : > { %5961 = vmatpush3.msra.mxu0 %v4937_v10  ;;  %5927 = vmatpush3.msra.mxu1 %v326_v11  ;;  %v802_v34 = vld [vmem:[%s7076_s20 + $0x2] sm:$0xff]  ;;  %v7221_v39 = vld [vmem:[%s7076_s20 + $0x1a] sm:$0xff]  ;;  %v7244_v44 = vld [vmem:[%s7076_s20 + $0x32] sm:$0xff] }
  0x2d   : > { %5992 = vmatprep.subr.mxu1 %v4980_v16  ;;  %6026 = vmatprep.subr.mxu0 %v5022_v17  ;;  %v5021_v40 = vld [vmem:[%s9028_s1 + $0x40] sm:$0xff]  ;;  %v7249_v45 = vld [vmem:[%s9028_s1 + $0x68] sm:$0xff]  ;;  %v7266_v48 = vld [vmem:[%s7076_s20 + $0x78] sm:$0xff] }
  0x2e   : > { %5901 = vmatmul.mubr.msk.f32.gmra.mxu0 %vm351_vm0, %v7135_v18  ;;  %5919 = vmatmul.mubr.msk.f32.gmra.mxu1 %vm351_vm0, %v7138_v19  ;;  %v7236_v42 = vld [vmem:[%s7076_s20 + $0x22] sm:$0xff]  ;;  %v7263_v47 = vld [vmem:[%s7076_s20 + $0x3a] sm:$0xff]  ;;  %v7269_v49 = vld [vmem:[%s7076_s20 + $0x4a] sm:$0xff] }
  0x2f   : > { %5903 = vmatprep.mubr.msk.f32.mxu0 %vm351_vm0, %v7141_v20  ;;  %5921 = vmatprep.mubr.msk.f32.mxu1 %vm351_vm0, %v7144_v21  ;;  %v7241_v43 = vld [vmem:[%s7076_s20 + $0x60] sm:$0xff]  ;;  %v7260_v46 = vld [vmem:[%s7076_s20 + $0x68] sm:$0xff]  ;;  %v7284_v51 = vld [vmem:[%s7076_s20 + $0x52] sm:$0xff] }
  0x30   : > { %v7281_v50 = vld [vmem:[%s7076_s20 + $0x80] sm:$0xff]  ;;  %v7287_v52 = vld [vmem:[%s7076_s20 + $0x90] sm:$0xff]  ;;  %v7301_v54 = vld [vmem:[%s7076_s20 + $0x98] sm:$0xff] }
  0x31   : > { %v7290_v53 = vld [vmem:[%s7076_s20 + $0x62] sm:$0xff]  ;;  %v7304_v55 = vld [vmem:[%s7076_s20 + $0x6a] sm:$0xff]  ;;  %v7310_v57 = vld [vmem:[%s7076_s20 + $0x7a] sm:$0xff] }
  0x32   : > { %5904 = vmatmul.mubr.msk.f32.gmra.mxu0 %vm351_vm0, %v7155_v22  ;;  %5922 = vmatmul.mubr.msk.f32.gmra.mxu1 %vm351_vm0, %v7158_v23  ;;  %v7307_v56 = vld [vmem:[%s7076_s20 + $0xa8] sm:$0xff]  ;;  %v7321_v58 = vld [vmem:[%s7076_s20 + $0xb0] sm:$0xff]  ;;  %v7327_v60 = vld [vmem:[%s7076_s20 + $0xc0] sm:$0xff] }
  0x33   : > { %5906 = vmatprep.mubr.msk.f32.mxu0 %vm351_vm0, %v7161_v24  ;;  %5928 = vmatprep.mubr.msk.f32.mxu1 %vm351_vm0, %v306_v25  ;;  %v7324_v59 = vld [vmem:[%s7076_s20 + $0x82] sm:$0xff]  ;;  %v7330_v61 = vld [vmem:[%s7076_s20 + $0x92] sm:$0xff]  ;;  %v7344_v63 = vld [vmem:[%s7076_s20 + $0x9a] sm:$0xff] }
  0x34   : > { %v7341_v62 = vld [vmem:[%s7076_s20 + $0xc8] sm:$0xff]  ;;  %v7347_v0 = vld [vmem:[%s7076_s20 + $0xd8] sm:$0xff]  ;;  %v7361_v2 = vld [vmem:[%s7076_s20 + $0xe0] sm:$0xff] }
  0x35   : > { %v7350_v1 = vld [vmem:[%s7076_s20 + $0xaa] sm:$0xff]  ;;  %v7364_v3 = vld [vmem:[%s7076_s20 + $0xb2] sm:$0xff]  ;;  %v7367_v4 = vld [vmem:[%s7076_s20 + $0xc2] sm:$0xff] }
  0x36   : > { %5907 = vmatmul.mubr.msk.f32.gmra.mxu0 %vm351_vm0, %v7172_v26  ;;  %5929 = vmatmul.mubr.msk.f32.vlgmr.msra.gmra.mxu1 %vm351_vm0, %v307_v27  ;;  %v7378_v6 = vld [vmem:[%s7076_s20 + $0xca] sm:$0xff]  ;;  %v7381_v10 = vld [vmem:[%s7076_s20 + $0xda] sm:$0xff] }
  0x37   : > { %5909 = vmatprep.mubr.msk.f32.mxu0 %vm351_vm0, %v7176_v28  ;;  %5931 = vmatprep.mubr.msk.f32.mxu1 %vm351_vm0, %v7179_v29  ;;  %v5063_v11 = vld [vmem:[%s9028_s1 + $0x50] sm:$0xff]  ;;  %v5105_v25 = vld [vmem:[%s9028_s1 + $0x60] sm:$0xff]  ;;  %v4978_v27 = vld [vmem:[%s7076_s20 + $0xf8] sm:$0xff] }
  0x38   : > { %5993 = vmatpush3.msra.mxu1 %v4980_v16  ;;  %v7395_v16 = vld [vmem:[%s7076_s20 + $0xe2] sm:$0xff] }
  0x39   : > { %5994 = vmatprep.subr.mxu1 %v4979_v30 }
  0x3a   : > { %5910 = vmatmul.mubr.msk.f32.gmra.mxu0 %vm351_vm0, %v7192_v31  ;;  %5932 = vmatmul.mubr.msk.f32.gmra.mxu1 %vm351_vm0, %v7195_v32 }
  0x3b   : > { %5934 = vmatprep.mubr.msk.f32.mxu1 %vm351_vm0, %v7198_v33  ;;  %5962 = vmatprep.mubr.msk.f32.mxu0 %vm351_vm0, %v802_v34  ;;  %v5189_v34 = vld [vmem:[%s9028_s1 + $0x80] sm:$0xff] }
  0x3c   : > { %5995 = vmatpush3.msra.mxu1 %v4979_v30  ;;  %v5147_v30 = vld [vmem:[%s9028_s1 + $0x70] sm:$0xff] }
  0x3d   : > { %6060 = vmatprep.subr.mxu1 %v7208_v35 }
  0x3e   : > { %5935 = vmatmul.mubr.msk.f32.gmra.mxu1 %vm351_vm0, %v7214_v36  ;;  %5963 = vmatmul.mubr.msk.f32.vlgmr.msra.gmra.mxu0 %vm351_vm0, %v803_v37  ;;  %v5104_v37 = vld [vmem:[%s7076_s20 + $0x110] sm:$0xff] }
  0x3f   : > { %6027 = vmatpush3.msra.mxu0 %v5022_v17  ;;  %5937 = vmatprep.mubr.msk.f32.mxu1 %vm351_vm0, %v7218_v38  ;;  %v5148_v17 = vld [vmem:[%s9028_s1 + $0x78] sm:$0xff] }
  0x40   : > { %5965 = vmatprep.mubr.msk.f32.mxu0 %vm351_vm0, %v7221_v39  ;;  %6028 = vmatprep.subr.mxu0 %v5021_v40 }
  0x41   : > { %6029 = vmatpush3.msra.mxu0 %v5021_v40  ;;  %v2734_v40 = vld [vmem:[%s9018_s3 + $0x38] sm:$0xff] }
  0x42   : > { %5938 = vmatmul.mubr.msk.f32.gmra.mxu1 %vm351_vm0, %v7233_v41  ;;  %5966 = vmatmul.mubr.msk.f32.gmra.mxu0 %vm351_vm0, %v7236_v42 }
  0x43   : > { %5940 = vmatprep.mubr.msk.f32.mxu1 %vm351_vm0, %v7241_v43  ;;  %5968 = vmatprep.mubr.msk.f32.mxu0 %vm351_vm0, %v7244_v44 }
  0x44   : > { %6094 = vmatprep.subr.mxu0 %v7249_v45 }
  0x46   : > { %5941 = vmatmul.mubr.msk.f32.gmra.mxu1 %vm351_vm0, %v7260_v46  ;;  %5969 = vmatmul.mubr.msk.f32.gmra.mxu0 %vm351_vm0, %v7263_v47 }
  0x47   : > { %5943 = vmatprep.mubr.msk.f32.mxu1 %vm351_vm0, %v7266_v48  ;;  %5971 = vmatprep.mubr.msk.f32.mxu0 %vm351_vm0, %v7269_v49 }
  0x4a   : > { %5944 = vmatmul.mubr.msk.f32.gmra.mxu1 %vm351_vm0, %v7281_v50  ;;  %5972 = vmatmul.mubr.msk.f32.gmra.mxu0 %vm351_vm0, %v7284_v51 }
  0x4b   : > { %5946 = vmatprep.mubr.msk.f32.mxu1 %vm351_vm0, %v7287_v52  ;;  %5974 = vmatprep.mubr.msk.f32.mxu0 %vm351_vm0, %v7290_v53 }
  0x4e   : > { %5947 = vmatmul.mubr.msk.f32.gmra.mxu1 %vm351_vm0, %v7301_v54  ;;  %5975 = vmatmul.mubr.msk.f32.gmra.mxu0 %vm351_vm0, %v7304_v55 }
  0x4f   : > { %5949 = vmatprep.mubr.msk.f32.mxu1 %vm351_vm0, %v7307_v56  ;;  %5977 = vmatprep.mubr.msk.f32.mxu0 %vm351_vm0, %v7310_v57 }
  0x52   : > { %5950 = vmatmul.mubr.msk.f32.gmra.mxu1 %vm351_vm0, %v7321_v58  ;;  %5978 = vmatmul.mubr.msk.f32.gmra.mxu0 %vm351_vm0, %v7324_v59 }
  0x53   : > { %5952 = vmatprep.mubr.msk.f32.mxu1 %vm351_vm0, %v7327_v60  ;;  %5980 = vmatprep.mubr.msk.f32.mxu0 %vm351_vm0, %v7330_v61 }
  0x56   : > { %5953 = vmatmul.mubr.msk.f32.gmra.mxu1 %vm351_vm0, %v7341_v62  ;;  %5981 = vmatmul.mubr.msk.f32.gmra.mxu0 %vm351_vm0, %v7344_v63 }
  0x57   : > { %5955 = vmatprep.mubr.msk.f32.mxu1 %vm351_vm0, %v7347_v0  ;;  %5983 = vmatprep.mubr.msk.f32.mxu0 %vm351_vm0, %v7350_v1 }
  0x5a   : > { %5956 = vmatmul.mubr.msk.f32.gmra.mxu1 %vm351_vm0, %v7361_v2  ;;  %5984 = vmatmul.mubr.msk.f32.gmra.mxu0 %vm351_vm0, %v7364_v3 }
  0x5b   : > { %5986 = vmatprep.mubr.msk.f32.mxu0 %vm351_vm0, %v7367_v4  ;;  %5996 = vmatprep.mubr.msk.f32.mxu1 %vm351_vm0, %v7179_v29  ;;  %v7481_v29 = vld [vmem:[%s7076_s20 + $0xf1] sm:$0xff] }
  0x5e   : > { %5987 = vmatmul.mubr.msk.f32.gmra.mxu0 %vm351_vm0, %v7378_v6  ;;  %5997 = vmatmul.mubr.msk.f32.vlgmr.msra.gmra.mxu1 %vm351_vm0, %v7195_v32  ;;  %v7495_v32 = vld [vmem:[%s7076_s20 + $0xf9] sm:$0xff] }
  0x5f   : > { %5989 = vmatprep.mubr.msk.f32.mxu0 %vm351_vm0, %v7381_v10  ;;  %5999 = vmatprep.mubr.msk.f32.mxu1 %vm351_vm0, %v7198_v33 }
  0x60   : > { %6061 = vmatpush3.msra.mxu1 %v7208_v35  ;;  %v5062_v35 = vld [vmem:[%s7076_s20 + $0xfa] sm:$0xff] }
  0x61   : > { %6062 = vmatprep.subr.mxu1 %v5063_v11 }
  0x62   : > { %5990 = vmatmul.mubr.msk.f32.gmra.mxu0 %vm351_vm0, %v7395_v16  ;;  %6000 = vmatmul.mubr.msk.f32.gmra.mxu1 %vm351_vm0, %v7214_v36 }
  0x63   : > { %6002 = vmatprep.mubr.msk.f32.mxu1 %vm351_vm0, %v7218_v38  ;;  %6030 = vmatprep.mubr.msk.f32.mxu0 %vm351_vm0, %v7090_v8  ;;  %v5190_v8 = vld [vmem:[%s9028_s1 + $0x88] sm:$0xff] }
  0x64   : > { %6063 = vmatpush3.msra.mxu1 %v5063_v11 }
  0x65   : > { %6128 = vmatprep.subr.mxu1 %v5148_v17 }
  0x66   : > { %6003 = vmatmul.mubr.msk.f32.gmra.mxu1 %vm351_vm0, %v7233_v41  ;;  %6031 = vmatmul.mubr.msk.f32.vlgmr.msra.gmra.mxu0 %vm351_vm0, %v7107_v12  ;;  %v4977_v12 = vld [vmem:[%s7076_s20 + $0xf0] sm:$0xff] }
  0x67   : > { %6095 = vmatpush3.msra.mxu0 %v7249_v45  ;;  %6005 = vmatprep.mubr.msk.f32.mxu1 %vm351_vm0, %v7241_v43  ;;  %v2733_v45 = vld [vmem:[%s9018_s3 + $0x30] sm:$0xff] }
  0x68   : > { %6033 = vmatprep.mubr.msk.f32.mxu0 %vm351_vm0, %v7115_v14  ;;  %6096 = vmatprep.subr.mxu0 %v5105_v25 }
  0x69   : > { %6097 = vmatpush3.msra.mxu0 %v5105_v25 }
  0x6a   : > { %6006 = vmatmul.mubr.msk.f32.gmra.mxu1 %vm351_vm0, %v7260_v46  ;;  %6034 = vmatmul.mubr.msk.f32.gmra.mxu0 %vm351_vm0, %v7135_v18 }
  0x6b   : > { %6008 = vmatprep.mubr.msk.f32.mxu1 %vm351_vm0, %v7266_v48  ;;  %6036 = vmatprep.mubr.msk.f32.mxu0 %vm351_vm0, %v7141_v20 }
  0x6c   : > { %6162 = vmatprep.subr.mxu0 %v5190_v8 }
  0x6e   : > { %6009 = vmatmul.mubr.msk.f32.gmra.mxu1 %vm351_vm0, %v7281_v50  ;;  %6037 = vmatmul.mubr.msk.f32.gmra.mxu0 %vm351_vm0, %v7155_v22 }
  0x6f   : > { %6011 = vmatprep.mubr.msk.f32.mxu1 %vm351_vm0, %v7287_v52  ;;  %6039 = vmatprep.mubr.msk.f32.mxu0 %vm351_vm0, %v7161_v24 }
  0x72   : > { %6012 = vmatmul.mubr.msk.f32.gmra.mxu1 %vm351_vm0, %v7301_v54  ;;  %6040 = vmatmul.mubr.msk.f32.gmra.mxu0 %vm351_vm0, %v7172_v26 }
  0x73   : > { %6014 = vmatprep.mubr.msk.f32.mxu1 %vm351_vm0, %v7307_v56  ;;  %6042 = vmatprep.mubr.msk.f32.mxu0 %vm351_vm0, %v7176_v28 }
  0x76   : > { %6015 = vmatmul.mubr.msk.f32.gmra.mxu1 %vm351_vm0, %v7321_v58  ;;  %6043 = vmatmul.mubr.msk.f32.gmra.mxu0 %vm351_vm0, %v7192_v31 }
  0x77   : > { %6017 = vmatprep.mubr.msk.f32.mxu1 %vm351_vm0, %v7327_v60  ;;  %6045 = vmatprep.mubr.msk.f32.mxu0 %vm351_vm0, %v7080_v5 }
  0x7a   : > { %6018 = vmatmul.mubr.msk.f32.gmra.mxu1 %vm351_vm0, %v7341_v62  ;;  %6046 = vmatmul.mubr.msk.f32.gmra.mxu0 %vm351_vm0, %v7087_v7 }
  0x7b   : > { %6020 = vmatprep.mubr.msk.f32.mxu1 %vm351_vm0, %v7347_v0  ;;  %6048 = vmatprep.mubr.msk.f32.mxu0 %vm351_vm0, %v7093_v9 }
  0x7e   : > { %6021 = vmatmul.mubr.msk.f32.gmra.mxu1 %vm351_vm0, %v7361_v2  ;;  %6049 = vmatmul.mubr.msk.f32.gmra.mxu0 %vm351_vm0, %v7110_v13 }
  0x7f   : > { %6023 = vmatprep.mubr.msk.f32.mxu1 %vm351_vm0, %v4977_v12  ;;  %6051 = vmatprep.mubr.msk.f32.mxu0 %vm351_vm0, %v7118_v15 }
  0x82   : > { %6024 = vmatmul.mubr.msk.f32.gmra.mxu1 %vm351_vm0, %v4978_v27  ;;  %6052 = vmatmul.mubr.msk.f32.gmra.mxu0 %vm351_vm0, %v7138_v19 }
  0x83   : > { %6054 = vmatprep.mubr.msk.f32.mxu0 %vm351_vm0, %v7144_v21  ;;  %6064 = vmatprep.mubr.msk.f32.mxu1 %vm351_vm0, %v7221_v39 }
  0x86   : > { %6055 = vmatmul.mubr.msk.f32.gmra.mxu0 %vm351_vm0, %v7158_v23  ;;  %6065 = vmatmul.mubr.msk.f32.vlgmr.msra.gmra.mxu1 %vm351_vm0, %v7236_v42 }
  0x87   : > { %6057 = vmatprep.mubr.msk.f32.mxu0 %vm351_vm0, %v7481_v29  ;;  %6067 = vmatprep.mubr.msk.f32.mxu1 %vm351_vm0, %v7244_v44 }
  0x88   : > { %6129 = vmatpush3.msra.mxu1 %v5148_v17 }
  0x89   : > { %6130 = vmatprep.subr.mxu1 %v5147_v30 }
  0x8a   : > { %6058 = vmatmul.mubr.msk.f32.gmra.mxu0 %vm351_vm0, %v7495_v32  ;;  %6068 = vmatmul.mubr.msk.f32.gmra.mxu1 %vm351_vm0, %v7263_v47 }
  0x8b   : > { %6070 = vmatprep.mubr.msk.f32.mxu1 %vm351_vm0, %v7269_v49  ;;  %6098 = vmatprep.mubr.msk.f32.mxu0 %vm351_vm0, %v7198_v33  ;;  %v5061_v33 = vld [vmem:[%s7076_s20 + $0xf2] sm:$0xff] }
  0x8c   : > { %6131 = vmatpush3.msra.mxu1 %v5147_v30 }
  0x8e   : > { %6071 = vmatmul.mubr.msk.f32.gmra.mxu1 %vm351_vm0, %v7284_v51  ;;  %6099 = vmatmul.mubr.msk.f32.vlgmr.msra.gmra.mxu0 %vm351_vm0, %v7214_v36  ;;  %v5103_v36 = vld [vmem:[%s7076_s20 + $0x108] sm:$0xff] }
  0x8f   : > { %6163 = vmatpush3.msra.mxu0 %v5190_v8  ;;  %6073 = vmatprep.mubr.msk.f32.mxu1 %vm351_vm0, %v7290_v53 }
  0x90   : > { %6101 = vmatprep.mubr.msk.f32.mxu0 %vm351_vm0, %v7218_v38  ;;  %6164 = vmatprep.subr.mxu0 %v5189_v34 }
  0x91   : > { %6165 = vmatpush3.msra.mxu0 %v5189_v34 }
  0x92   : > { %6074 = vmatmul.mubr.msk.f32.gmra.mxu1 %vm351_vm0, %v7304_v55  ;;  %6102 = vmatmul.mubr.msk.f32.gmra.mxu0 %vm351_vm0, %v7233_v41 }
  0x93   : > { %6076 = vmatprep.mubr.msk.f32.mxu1 %vm351_vm0, %v7310_v57  ;;  %6104 = vmatprep.mubr.msk.f32.mxu0 %vm351_vm0, %v7241_v43 }
  0x96   : > { %6077 = vmatmul.mubr.msk.f32.gmra.mxu1 %vm351_vm0, %v7324_v59  ;;  %6105 = vmatmul.mubr.msk.f32.gmra.mxu0 %vm351_vm0, %v7260_v46 }
  0x97   : > { %6079 = vmatprep.mubr.msk.f32.mxu1 %vm351_vm0, %v7330_v61  ;;  %6107 = vmatprep.mubr.msk.f32.mxu0 %vm351_vm0, %v7266_v48  ;;  %v2732_v48 = vld [vmem:[%s9018_s3 + $0x28] sm:$0xff] }
  0x9a   : > { %6080 = vmatmul.mubr.msk.f32.gmra.mxu1 %vm351_vm0, %v7344_v63  ;;  %6108 = vmatmul.mubr.msk.f32.gmra.mxu0 %vm351_vm0, %v7281_v50 }
  0x9b   : > { %6082 = vmatprep.mubr.msk.f32.mxu1 %vm351_vm0, %v7350_v1  ;;  %6110 = vmatprep.mubr.msk.f32.mxu0 %vm351_vm0, %v7287_v52 }
  0x9e   : > { %6083 = vmatmul.mubr.msk.f32.gmra.mxu1 %vm351_vm0, %v7364_v3  ;;  %6111 = vmatmul.mubr.msk.f32.gmra.mxu0 %vm351_vm0, %v7301_v54  ;;  %v2730_v54 = vld [vmem:[%s9018_s3 + $0x18] sm:$0xff] }
  0x9f   : > { %6085 = vmatprep.mubr.msk.f32.mxu1 %vm351_vm0, %v7367_v4  ;;  %6113 = vmatprep.mubr.msk.f32.mxu0 %vm351_vm0, %v7307_v56 }
  0xa2   : > { %6086 = vmatmul.mubr.msk.f32.gmra.mxu1 %vm351_vm0, %v7378_v6  ;;  %6114 = vmatmul.mubr.msk.f32.gmra.mxu0 %vm351_vm0, %v7321_v58 }
  0xa3   : > { %6088 = vmatprep.mubr.msk.f32.mxu1 %vm351_vm0, %v7381_v10  ;;  %6116 = vmatprep.mubr.msk.f32.mxu0 %vm351_vm0, %v7327_v60 }
  0xa6   : > { %6089 = vmatmul.mubr.msk.f32.gmra.mxu1 %vm351_vm0, %v7395_v16  ;;  %6117 = vmatmul.mubr.msk.f32.gmra.mxu0 %vm351_vm0, %v7341_v62 }
  0xa7   : > { %6091 = vmatprep.mubr.msk.f32.mxu1 %vm351_vm0, %v5061_v33  ;;  %6119 = vmatprep.mubr.msk.f32.mxu0 %vm351_vm0, %v7347_v0 }
  0xaa   : > { %6092 = vmatmul.mubr.msk.f32.gmra.mxu1 %vm351_vm0, %v5062_v35  ;;  %6120 = vmatmul.mubr.msk.f32.gmra.mxu0 %vm351_vm0, %v7361_v2 }
  0xab   : > { %6122 = vmatprep.mubr.msk.f32.mxu0 %vm351_vm0, %v4977_v12  ;;  %6132 = vmatprep.mubr.msk.f32.mxu1 %vm351_vm0, %v7115_v14  ;;  %v2742_v14 = vld [vmem:[%s9018_s3 + $0x78] sm:$0xff] }
  0xac   : > { %6196 = vmatprep.subr.mxu1 %v2742_v14 }
  0xae   : > { %6123 = vmatmul.mubr.msk.f32.gmra.mxu0 %vm351_vm0, %v4978_v27  ;;  %6133 = vmatmul.mubr.msk.f32.vlgmr.msra.gmra.mxu1 %vm351_vm0, %v7135_v18  ;;  %v2740_v18 = vld [vmem:[%s9018_s3 + $0x68] sm:$0xff] }
  0xaf   : > { %6125 = vmatprep.mubr.msk.f32.mxu0 %vm351_vm0, %v5103_v36  ;;  %6135 = vmatprep.mubr.msk.f32.mxu1 %vm351_vm0, %v7141_v20  ;;  %v2738_v20 = vld [vmem:[%s9018_s3 + $0x58] sm:$0xff] }
  0xb0   : > { %6197 = vmatpush3.msra.mxu1 %v2742_v14 }
  0xb2   : > { %6126 = vmatmul.mubr.msk.f32.gmra.mxu0 %vm351_vm0, %v5104_v37  ;;  %6136 = vmatmul.mubr.msk.f32.gmra.mxu1 %vm351_vm0, %v7155_v22 }
  0xb3   : > { %6138 = vmatprep.mubr.msk.f32.mxu1 %vm351_vm0, %v7161_v24  ;;  %6166 = vmatprep.mubr.msk.f32.mxu0 %vm351_vm0, %v7244_v44  ;;  %v2736_v24 = vld [vmem:[%s9018_s3 + $0x48] sm:$0xff] }
  0xb6   : > { %6139 = vmatmul.mubr.msk.f32.gmra.mxu1 %vm351_vm0, %v7172_v26  ;;  %6167 = vmatmul.mubr.msk.f32.vlgmr.msra.gmra.mxu0 %vm351_vm0, %v7263_v47 }
  0xb7   : > { %6141 = vmatprep.mubr.msk.f32.mxu1 %vm351_vm0, %v7176_v28  ;;  %6169 = vmatprep.mubr.msk.f32.mxu0 %vm351_vm0, %v7269_v49 }
  0xba   : > { %6142 = vmatmul.mubr.msk.f32.gmra.mxu1 %vm351_vm0, %v7192_v31  ;;  %6170 = vmatmul.mubr.msk.f32.gmra.mxu0 %vm351_vm0, %v7284_v51  ;;  %v2735_v31 = vld [vmem:[%s9018_s3 + $0x40] sm:$0xff] }
  0xbb   : > { %6144 = vmatprep.mubr.msk.f32.mxu1 %vm351_vm0, %v7080_v5  ;;  %6172 = vmatprep.mubr.msk.f32.mxu0 %vm351_vm0, %v7290_v53  ;;  %v5145_v5 = vld [vmem:[%s7076_s20 + $0x109] sm:$0xff]  ;;  %v2731_v51 = vld [vmem:[%s9018_s3 + $0x20] sm:$0xff] }
  0xbe   : > { %6145 = vmatmul.mubr.msk.f32.gmra.mxu1 %vm351_vm0, %v7087_v7  ;;  %6173 = vmatmul.mubr.msk.f32.gmra.mxu0 %vm351_vm0, %v7304_v55  ;;  %v5146_v7 = vld [vmem:[%s7076_s20 + $0x111] sm:$0xff] }
  0xbf   : > { %6147 = vmatprep.mubr.msk.f32.mxu1 %vm351_vm0, %v7093_v9  ;;  %6175 = vmatprep.mubr.msk.f32.mxu0 %vm351_vm0, %v7310_v57  ;;  %v5187_v9 = vld [vmem:[%s7076_s20 + $0x10a] sm:$0xff] }
  0xc2   : > { %6148 = vmatmul.mubr.msk.f32.gmra.mxu1 %vm351_vm0, %v7110_v13  ;;  %6176 = vmatmul.mubr.msk.f32.gmra.mxu0 %vm351_vm0, %v7324_v59  ;;  %v5188_v13 = vld [vmem:[%s7076_s20 + $0x112] sm:$0xff] }
  0xc3   : > { %6150 = vmatprep.mubr.msk.f32.mxu1 %vm351_vm0, %v7118_v15  ;;  %6178 = vmatprep.mubr.msk.f32.mxu0 %vm351_vm0, %v7330_v61  ;;  %v2741_v15 = vld [vmem:[%s9018_s3 + $0x70] sm:$0xff] }
  0xc4   : > { %6198 = vmatprep.subr.mxu1 %v2741_v15  ;;  %v2729_v61 = vld [vmem:[%s9018_s3 + $0x10] sm:$0xff] }
  0xc5   : > { %6199 = vmatpush3.msra.mxu1 %v2741_v15 }
  0xc6   : > { %6151 = vmatmul.mubr.msk.f32.gmra.mxu1 %vm351_vm0, %v7138_v19  ;;  %6179 = vmatmul.mubr.msk.f32.gmra.mxu0 %vm351_vm0, %v7344_v63  ;;  %v2739_v19 = vld [vmem:[%s9018_s3 + $0x60] sm:$0xff] }
  0xc7   : > { %6153 = vmatprep.mubr.msk.f32.mxu1 %vm351_vm0, %v7144_v21  ;;  %6181 = vmatprep.mubr.msk.f32.mxu0 %vm351_vm0, %v7350_v1  ;;  %v2737_v21 = vld [vmem:[%s9018_s3 + $0x50] sm:$0xff]  ;;  %v2728_v1 = vld [vmem:[%s9018_s3 + $0x8] sm:$0xff] }
  0xc8   : > { %6200 = vmatprep.subr.mxu1 %v2740_v18 }
  0xc9   : > { %6201 = vmatpush3.msra.mxu1 %v2740_v18 }
  0xca   : > { %6154 = vmatmul.mubr.msk.f32.gmra.mxu1 %vm351_vm0, %v7158_v23  ;;  %6182 = vmatmul.mubr.msk.f32.gmra.mxu0 %vm351_vm0, %v7364_v3 }
  0xcb   : > { %6156 = vmatprep.mubr.msk.f32.mxu1 %vm351_vm0, %v7481_v29  ;;  %6184 = vmatprep.mubr.msk.f32.mxu0 %vm351_vm0, %v7367_v4 }
  0xcc   : > { %6202 = vmatprep.subr.mxu1 %v2739_v19 }
  0xcd   : > { %6203 = vmatpush3.msra.mxu1 %v2739_v19 }
  0xce   : > { %6157 = vmatmul.mubr.msk.f32.gmra.mxu1 %vm351_vm0, %v7495_v32  ;;  %6185 = vmatmul.mubr.msk.f32.gmra.mxu0 %vm351_vm0, %v7378_v6  ;;  %v2727_v6 = vld [vmem:[%s9018_s3] sm:$0xff] }
  0xcf   : > { %6159 = vmatprep.mubr.msk.f32.mxu1 %vm351_vm0, %v5145_v5  ;;  %6187 = vmatprep.mubr.msk.f32.mxu0 %vm351_vm0, %v7381_v10 }
  0xd0   : > { %6204 = vmatprep.subr.mxu1 %v2738_v20 }
  0xd1   : > { %6205 = vmatpush3.msra.mxu1 %v2738_v20 }
  0xd2   : > { %6160 = vmatmul.mubr.msk.f32.gmra.mxu1 %vm351_vm0, %v5146_v7  ;;  %6188 = vmatmul.mubr.msk.f32.gmra.mxu0 %vm351_vm0, %v7395_v16 }
  0xd3   : > { %6190 = vmatprep.mubr.msk.f32.mxu0 %vm351_vm0, %v5061_v33  ;;  %6206 = vmatprep.subr.mxu1 %v2737_v21 }
  0xd4   : > { %6207 = vmatpush3.msra.mxu1 %v2737_v21 }
  0xd5   : > { %6208 = vmatprep.subr.mxu1 %v2736_v24 }
  0xd6   : > { %6191 = vmatmul.mubr.msk.f32.gmra.mxu0 %vm351_vm0, %v5062_v35  ;;  %6209 = vmatpush3.msra.mxu1 %v2736_v24 }
  0xd7   : > { %6193 = vmatprep.mubr.msk.f32.mxu0 %vm351_vm0, %v5187_v9  ;;  %6210 = vmatprep.subr.mxu1 %v2735_v31 }
  0xd8   : > { %6211 = vmatpush3.msra.mxu1 %v2735_v31 }
  0xd9   : > { %6212 = vmatprep.subr.mxu1 %v2734_v40 }
  0xda   : > { %6194 = vmatmul.mubr.msk.f32.gmra.mxu0 %vm351_vm0, %v5188_v13  ;;  %6213 = vmatpush3.msra.mxu1 %v2734_v40 }
  0xdb   : > { %6214 = vmatprep.subr.mxu1 %v2733_v45 }
  0xdc   : > { %6215 = vmatpush3.msra.mxu1 %v2733_v45 }
  0xdd   : > { %6216 = vmatprep.subr.mxu1 %v2732_v48 }
  0xde   : > { %6217 = vmatpush3.msra.mxu1 %v2732_v48 }
  0xdf   : > { %6218 = vmatprep.subr.mxu1 %v2731_v51 }
  0xe0   : > { %6219 = vmatpush3.msra.mxu1 %v2731_v51 }
  0xe1   : > { %6220 = vmatprep.subr.mxu1 %v2730_v54 }
  0xe2   : > { %6221 = vmatpush3.msra.mxu1 %v2730_v54 }
  0xe3   : > { %6222 = vmatprep.subr.mxu1 %v2729_v61 }
  0xe4   : > { %6223 = vmatpush3.msra.mxu1 %v2729_v61 }
  0xe5   : > { %6224 = vmatprep.subr.mxu1 %v2728_v1 }
  0xe6   : > { %v5896_v22 = vpop.f32.mrf.mxu0  ;;  %v7670_v23 = vpop.f32.mrf.mxu1  ;;  %6225 = vmatpush3.msra.mxu1 %v2728_v1 }
  0xe7   : > { %6226 = vmatprep.subr.mxu1 %v2727_v6 }
  0xe8   : > { %v478_v26 = vpop.f32.mrf.mxu0  ;;  %v7675_v28 = vpop.f32.mrf.mxu1  ;;  %6227 = vmatpush3.msra.mxu1 %v2727_v6 }
  0xea   : > { %v5899_v38 = vpop.f32.mrf.mxu0  ;;  %v7680_v39 = vpop.f32.mrf.mxu1 }
  0xec   : > { %v488_v41 = vpop.f32.mrf.mxu0  ;;  %v7685_v42 = vpop.f32.mrf.mxu1 }
  0xee   : > { %v5902_v43 = vpop.f32.mrf.mxu0  ;;  %v7687_v44 = vpop.f32.mrf.mxu1 }
  0xf0   : > { %v498_v46 = vpop.f32.mrf.mxu0  ;;  %v7692_v47 = vpop.f32.mrf.mxu1 }
  0xf2   : > { %v5905_v49 = vpop.f32.mrf.mxu0  ;;  %v7697_v50 = vpop.f32.mrf.mxu1 }
  0xf4   : > { %v508_v52 = vpop.f32.mrf.mxu0  ;;  %v7702_v53 = vpop.f32.mrf.mxu1 }
  0xf6   : > { %v5908_v55 = vpop.f32.mrf.mxu0  ;;  %v5930_v56 = vpop.f32.mrf.mxu1 }
  0xf7   : > { %v709_v57 = vadd.f32 %v5930_v56, %v5896_v22 }
  0xf8   : > { %v518_v58 = vpop.f32.mrf.mxu0  ;;  %v703_v59 = vpop.f32.mrf.mxu1 }
  0xf9   : > { %v704_v60 = vadd.f32 %v703_v59, %v478_v26 }
  0xfa   : > { %v5911_v62 = vpop.f32.mrf.mxu0  ;;  %v5933_v63 = vpop.f32.mrf.mxu1 }
  0xfb   : > { %v719_v0 = vadd.f32 %v5933_v63, %v5899_v38 }
  0xfc   : > { %v528_v2 = vpop.f32.mrf.mxu0  ;;  %v713_v3 = vpop.f32.mrf.mxu1 }
  0xfd   : > { %v714_v4 = vadd.f32 %v713_v3, %v488_v41 }
  0xfe   : > { %v5936_v10 = vpop.f32.mrf.mxu1  ;;  %v5964_v11 = vpop.f32.mrf.mxu0 }
  0xff   : > { %v729_v16 = vadd.f32 %v5936_v10, %v5902_v43  ;;  %v7716_v17 = vadd.f32 %v5964_v11, %v709_v57 }
 0x100   : > { %v723_v25 = vpop.f32.mrf.mxu1  ;;  %v951_v8 = vpop.f32.mrf.mxu0 }
 0x101   : > { %v724_v12 = vadd.f32 %v723_v25, %v498_v46  ;;  %v7718_v27 = vadd.f32 %v951_v8, %v704_v60 }
 0x102   : > { %v5939_v29 = vpop.f32.mrf.mxu1  ;;  %v5967_v30 = vpop.f32.mrf.mxu0 }
 0x103   : > { %v739_v32 = vadd.f32 %v5939_v29, %v5905_v49  ;;  %v7720_v34 = vadd.f32 %v5967_v30, %v719_v0 }
 0x104   : > { %v733_v33 = vpop.f32.mrf.mxu1  ;;  %v961_v35 = vpop.f32.mrf.mxu0 }
 0x105   : > { %v734_v36 = vadd.f32 %v733_v33, %v508_v52  ;;  %v7722_v37 = vadd.f32 %v961_v35, %v714_v4 }
 0x106   : > { %v5942_v5 = vpop.f32.mrf.mxu1  ;;  %v5970_v7 = vpop.f32.mrf.mxu0 }
 0x107   : > { %v749_v9 = vadd.f32 %v5942_v5, %v5908_v55  ;;  %v7724_v13 = vadd.f32 %v5970_v7, %v729_v16 }
 0x108   : > { %v743_v14 = vpop.f32.mrf.mxu1  ;;  %v971_v15 = vpop.f32.mrf.mxu0 }
 0x109   : > { %v744_v18 = vadd.f32 %v743_v14, %v518_v58  ;;  %v7726_v19 = vadd.f32 %v971_v15, %v724_v12 }
 0x10a   : > { %v5945_v20 = vpop.f32.mrf.mxu1  ;;  %v5973_v21 = vpop.f32.mrf.mxu0 }
 0x10b   : > { %v759_v22 = vadd.f32 %v5945_v20, %v5911_v62  ;;  %v7728_v24 = vadd.f32 %v5973_v21, %v739_v32 }
 0x10c   : > { %v753_v26 = vpop.f32.mrf.mxu1  ;;  %v981_v31 = vpop.f32.mrf.mxu0 }
 0x10d   : > { %v754_v38 = vadd.f32 %v753_v26, %v528_v2  ;;  %v7730_v40 = vadd.f32 %v981_v31, %v734_v36 }
 0x10e   : > { %v5948_v41 = vpop.f32.mrf.mxu1  ;;  %v5976_v43 = vpop.f32.mrf.mxu0 }
 0x10f   : > { %v769_v45 = vadd.f32 %v5948_v41, %v7670_v23  ;;  %v7733_v46 = vadd.f32 %v5976_v43, %v749_v9 }
 0x110   : > { %v763_v48 = vpop.f32.mrf.mxu1  ;;  %v991_v49 = vpop.f32.mrf.mxu0 }
 0x111   : > { %v764_v51 = vadd.f32 %v763_v48, %v7675_v28  ;;  %v7736_v52 = vadd.f32 %v991_v49, %v744_v18 }
 0x112   : > { %v5951_v54 = vpop.f32.mrf.mxu1  ;;  %v5979_v55 = vpop.f32.mrf.mxu0 }
 0x113   : > { %v779_v56 = vadd.f32 %v5951_v54, %v7680_v39  ;;  %v7739_v57 = vadd.f32 %v5979_v55, %v759_v22 }
 0x114   : > { %v773_v58 = vpop.f32.mrf.mxu1  ;;  %v1001_v59 = vpop.f32.mrf.mxu0 }
 0x115   : > { %v774_v60 = vadd.f32 %v773_v58, %v7685_v42  ;;  %v7742_v61 = vadd.f32 %v1001_v59, %v754_v38 }
 0x116   : > { %v5954_v23 = vpop.f32.mrf.mxu1  ;;  %v5982_v62 = vpop.f32.mrf.mxu0 }
 0x117   : > { %v789_v63 = vadd.f32 %v5954_v23, %v7687_v44  ;;  %v7745_v0 = vadd.f32 %v5982_v62, %v769_v45 }
 0x118   : > { %v783_v28 = vpop.f32.mrf.mxu1  ;;  %v1011_v1 = vpop.f32.mrf.mxu0 }
 0x119   : > { %v784_v2 = vadd.f32 %v783_v28, %v7692_v47  ;;  %v7748_v3 = vadd.f32 %v1011_v1, %v764_v51 }
 0x11a   : > { %v5957_v39 = vpop.f32.mrf.mxu1  ;;  %v5985_v4 = vpop.f32.mrf.mxu0 }
 0x11b   : > { %v799_v6 = vadd.f32 %v5957_v39, %v7697_v50  ;;  %v7751_v10 = vadd.f32 %v5985_v4, %v779_v56 }
 0x11c   : > { %v793_v42 = vpop.f32.mrf.mxu1  ;;  %v1021_v11 = vpop.f32.mrf.mxu0 }
 0x11d   : > { %v794_v16 = vadd.f32 %v793_v42, %v7702_v53  ;;  %v7754_v25 = vadd.f32 %v1021_v11, %v774_v60 }
 0x11e   : > { %v5988_v44 = vpop.f32.mrf.mxu0  ;;  %v5998_v8 = vpop.f32.mrf.mxu1 }
 0x11f   : > { %v7756_v12 = vadd.f32 %v5988_v44, %v789_v63  ;;  %v1320_v47 = vadd.f32 %v5998_v8, %v7716_v17 }
 0x120   : > { %v1031_v29 = vpop.f32.mrf.mxu0  ;;  %v1220_v30 = vpop.f32.mrf.mxu1 }
 0x121   : > { %v7759_v32 = vadd.f32 %v1031_v29, %v784_v2  ;;  %v1319_v50 = vadd.f32 %v1220_v30, %v7718_v27 }
 0x122   : > { %v5991_v33 = vpop.f32.mrf.mxu0  ;;  %v6001_v35 = vpop.f32.mrf.mxu1 }
 0x123   : > { %v7762_v36 = vadd.f32 %v5991_v33, %v799_v6  ;;  %v1322_v53 = vadd.f32 %v6001_v35, %v7720_v34 }
 0x124   : > { %v1041_v5 = vpop.f32.mrf.mxu0  ;;  %v1230_v7 = vpop.f32.mrf.mxu1 }
 0x125   : > { %v7765_v9 = vadd.f32 %v1041_v5, %v794_v16  ;;  %v1321_v14 = vadd.f32 %v1230_v7, %v7722_v37 }
 0x126   : > { %v6004_v15 = vpop.f32.mrf.mxu1  ;;  %v6032_v17 = vpop.f32.mrf.mxu0 }
 0x127   : > { %v1324_v18 = vadd.f32 %v6004_v15, %v7724_v13  ;;  %v7769_v20 = vadd.f32 %v6032_v17, %v1320_v47 }
 0x128   : > { %v1240_v21 = vpop.f32.mrf.mxu1  ;;  %v1488_v27 = vpop.f32.mrf.mxu0 }
 0x129   : > { %v1323_v22 = vadd.f32 %v1240_v21, %v7726_v19  ;;  %v7772_v26 = vadd.f32 %v1488_v27, %v1319_v50 }
 0x12a   : > { %v6007_v31 = vpop.f32.mrf.mxu1  ;;  %v6035_v34 = vpop.f32.mrf.mxu0 }
 0x12b   : > { %v1326_v38 = vadd.f32 %v6007_v31, %v7728_v24  ;;  %v7775_v41 = vadd.f32 %v6035_v34, %v1322_v53 }
 0x12c   : > { %v1250_v43 = vpop.f32.mrf.mxu1  ;;  %v1498_v37 = vpop.f32.mrf.mxu0 }
 0x12d   : > { %v1325_v45 = vadd.f32 %v1250_v43, %v7730_v40  ;;  %v7778_v48 = vadd.f32 %v1498_v37, %v1321_v14 }
 0x12e   : > { %v6010_v13 = vpop.f32.mrf.mxu1  ;;  %v6038_v49 = vpop.f32.mrf.mxu0 }
 0x12f   : > { %v1328_v51 = vadd.f32 %v6010_v13, %v7733_v46  ;;  %v7781_v54 = vadd.f32 %v6038_v49, %v1324_v18 }
 0x130   : > { %v1260_v19 = vpop.f32.mrf.mxu1  ;;  %v1508_v55 = vpop.f32.mrf.mxu0 }
 0x131   : > { %v1327_v56 = vadd.f32 %v1260_v19, %v7736_v52  ;;  %v7784_v58 = vadd.f32 %v1508_v55, %v1323_v22 }
 0x132   : > { %v6013_v24 = vpop.f32.mrf.mxu1  ;;  %v6041_v59 = vpop.f32.mrf.mxu0 }
 0x133   : > { %v1330_v60 = vadd.f32 %v6013_v24, %v7739_v57  ;;  %v7787_v23 = vadd.f32 %v6041_v59, %v1326_v38 }
 0x134   : > { %v1270_v40 = vpop.f32.mrf.mxu1  ;;  %v1518_v62 = vpop.f32.mrf.mxu0 }
 0x135   : > { %v1329_v63 = vadd.f32 %v1270_v40, %v7742_v61  ;;  %v7790_v28 = vadd.f32 %v1518_v62, %v1325_v45 }
 0x136   : > { %v6016_v46 = vpop.f32.mrf.mxu1  ;;  %v6044_v1 = vpop.f32.mrf.mxu0 }
 0x137   : > { %v1332_v2 = vadd.f32 %v6016_v46, %v7745_v0  ;;  %v7793_v39 = vadd.f32 %v6044_v1, %v1328_v51 }
 0x138   : > { %v1280_v52 = vpop.f32.mrf.mxu1  ;;  %v1528_v4 = vpop.f32.mrf.mxu0 }
 0x139   : > { %v1331_v6 = vadd.f32 %v1280_v52, %v7748_v3  ;;  %v7796_v42 = vadd.f32 %v1528_v4, %v1327_v56 }
 0x13a   : > { %v6019_v57 = vpop.f32.mrf.mxu1  ;;  %v6047_v11 = vpop.f32.mrf.mxu0 }
 0x13b   : > { %v1334_v16 = vadd.f32 %v6019_v57, %v7751_v10  ;;  %v7799_v44 = vadd.f32 %v6047_v11, %v1330_v60 }
 0x13c   : > { %v1290_v61 = vpop.f32.mrf.mxu1  ;;  %v1538_v8 = vpop.f32.mrf.mxu0 }
 0x13d   : > { %v1333_v47 = vadd.f32 %v1290_v61, %v7754_v25  ;;  %v7802_v29 = vadd.f32 %v1538_v8, %v1329_v63 }
 0x13e   : > { %v6022_v0 = vpop.f32.mrf.mxu1  ;;  %v6050_v30 = vpop.f32.mrf.mxu0 }
 0x13f   : > { %v1336_v50 = vadd.f32 %v6022_v0, %v7756_v12  ;;  %v7805_v33 = vadd.f32 %v6050_v30, %v1332_v2 }
 0x140   : > { %v1300_v3 = vpop.f32.mrf.mxu1  ;;  %v1548_v35 = vpop.f32.mrf.mxu0 }
 0x141   : > { %v1335_v53 = vadd.f32 %v1300_v3, %v7759_v32  ;;  %v7808_v5 = vadd.f32 %v1548_v35, %v1331_v6 }
 0x142   : > { %v6025_v10 = vpop.f32.mrf.mxu1  ;;  %v6053_v7 = vpop.f32.mrf.mxu0 }
 0x143   : > { %v1338_v14 = vadd.f32 %v6025_v10, %v7762_v36  ;;  %v7811_v15 = vadd.f32 %v6053_v7, %v1334_v16 }
 0x144   : > { %v1310_v25 = vpop.f32.mrf.mxu1  ;;  %v1558_v17 = vpop.f32.mrf.mxu0 }
 0x145   : > { %v1337_v18 = vadd.f32 %v1310_v25, %v7765_v9  ;;  %v7814_v21 = vadd.f32 %v1558_v17, %v1333_v47 }
 0x146   : > { %v6056_v12 = vpop.f32.mrf.mxu0  ;;  %v6066_v27 = vpop.f32.mrf.mxu1 }
 0x147   : > { %v7816_v22 = vadd.f32 %v6056_v12, %v1336_v50  ;;  %v1856_v12 = vadd.f32 %v6066_v27, %v7769_v20  ;;  %v7887_v27 = vld [vmem:[%s9017_s2] ss:$0 sm:$0xff] }
 0x148   : > { %v1568_v31 = vpop.f32.mrf.mxu0  ;;  %v1756_v32 = vpop.f32.mrf.mxu1 }
 0x149   : > { %9030 = vst [vmem:[#allocation6_spill] sm:$0xff] %v7816_v22  ;;  %v7818_v34 = vadd.f32 %v1568_v31, %v1335_v53 }
 0x14a   : > { %v6059_v38 = vpop.f32.mrf.mxu0  ;;  %v6069_v43 = vpop.f32.mrf.mxu1 }
 0x14b   : > { %9031 = vst [vmem:[#allocation7_spill] sm:$0xff] %v7818_v34  ;;  %v7820_v37 = vadd.f32 %v6059_v38, %v1338_v14 }
 0x14c   : > { %v1578_v36 = vpop.f32.mrf.mxu0  ;;  %v1766_v45 = vpop.f32.mrf.mxu1 }
 0x14d   : > { %9032 = vst [vmem:[#allocation8_spill] sm:$0xff] %v7820_v37  ;;  %v7822_v13 = vadd.f32 %v1578_v36, %v1337_v18  ;;  %v1855_v36 = vadd.f32 %v1756_v32, %v7772_v26 }
 0x14e   : > { %v6072_v49 = vpop.f32.mrf.mxu1  ;;  %v6100_v9 = vpop.f32.mrf.mxu0 }
 0x14f   : > { %9033 = vst [vmem:[#allocation9_spill] sm:$0xff] %v7822_v13  ;;  %v2125_v13 = vadd.f32 %v6100_v9, %v1856_v12  ;;  %v1860_v9 = vadd.f32 %v6072_v49, %v7781_v54 }
 0x150   : > { %v1776_v51 = vpop.f32.mrf.mxu1  ;;  %v2025_v19 = vpop.f32.mrf.mxu0 }
 0x152   : > { %v7824_v55 = vpop.f32.mrf.mxu1  ;;  %v6103_v56 = vpop.f32.mrf.mxu0 }
 0x154   : > { %v7826_v24 = vpop.f32.mrf.mxu1  ;;  %v2035_v59 = vpop.f32.mrf.mxu0 }
 0x156   : > { %v7828_v60 = vpop.f32.mrf.mxu1  ;;  %v6106_v40 = vpop.f32.mrf.mxu0 }
 0x158   : > { %v7830_v62 = vpop.f32.mrf.mxu1  ;;  %v2045_v63 = vpop.f32.mrf.mxu0 }
 0x15a   : > { %v7832_v46 = vpop.f32.mrf.mxu1  ;;  %v7834_v1 = vpop.f32.mrf.mxu0 }
 0x15c   : > { %v7836_v2 = vpop.f32.mrf.mxu1  ;;  %v7838_v52 = vpop.f32.mrf.mxu0 }
 0x15e   : > { %v7840_v4 = vpop.f32.mrf.mxu1  ;;  %v7842_v6 = vpop.f32.mrf.mxu0 }
 0x160   : > { %v7844_v57 = vpop.f32.mrf.mxu1  ;;  %v7846_v11 = vpop.f32.mrf.mxu0 }
 0x162   : > { %v7848_v16 = vpop.f32.mrf.mxu1  ;;  %v7850_v61 = vpop.f32.mrf.mxu0 }
 0x164   : > { %v7852_v8 = vpop.f32.mrf.mxu1  ;;  %v7854_v47 = vpop.f32.mrf.mxu0 }
 0x166   : > { %v7856_v0 = vpop.f32.mrf.mxu1  ;;  %v7858_v30 = vpop.f32.mrf.mxu0 }
 0x167   : > { %9034 = vst [vmem:[#allocation10_spill] sm:$0xff] %v7856_v0 }
 0x168   : > { %v7860_v50 = vpop.f32.mrf.mxu1  ;;  %v7862_v3 = vpop.f32.mrf.mxu0 }
 0x169   : > { %9035 = vst [vmem:[#allocation11_spill] sm:$0xff] %v7860_v50  ;;  %v2124_v50 = vadd.f32 %v2025_v19, %v1855_v36 }
 0x16a   : > { %v7864_v35 = vpop.f32.mrf.mxu1  ;;  %v7866_v53 = vpop.f32.mrf.mxu0 }
 0x16b   : > { %9036 = vst [vmem:[#allocation12_spill] sm:$0xff] %v7864_v35 }
 0x16c   : > { %v7868_v10 = vpop.f32.mrf.mxu1  ;;  %v7870_v7 = vpop.f32.mrf.mxu0 }
 0x16d   : > { %9037 = vst [vmem:[#allocation13_spill] sm:$0xff] %v7868_v10  ;;  %9038 = vst [vmem:[#allocation14_spill] sm:$0xff] %v7870_v7  ;;  %v1858_v10 = vadd.f32 %v6069_v43, %v7775_v41 }
 0x16e   : > { %v7872_v14 = vpop.f32.mrf.mxu0  ;;  %v6134_v25 = vpop.f32.mrf.mxu1 }
 0x16f   : > { %9039 = vst [vmem:[#allocation15_spill] sm:$0xff] %v7872_v14  ;;  %v2393_v34 = vadd.f32 %v6134_v25, %v2125_v13  ;;  %v2127_v0 = vadd.f32 %v6103_v56, %v1858_v10  ;;  %v1859_v13 = vadd.f32 %v1776_v51, %v7784_v58  ;;  %v2129_v56 = vadd.f32 %v6106_v40, %v1860_v9 }
 0x170   : > { %v7874_v17 = vpop.f32.mrf.mxu0  ;;  %v2293_v18 = vpop.f32.mrf.mxu1  ;;  %v1861_v58 = vadd.f32 %v7826_v24, %v7790_v28  ;;  %v1863_v9 = vadd.f32 %v7830_v62, %v7796_v42 }
 0x171   : > { %9040 = vst [vmem:[#allocation16_spill] sm:$0xff] %v7874_v17  ;;  %v1857_v17 = vadd.f32 %v1766_v45, %v7778_v48  ;;  %v2392_v22 = vadd.f32 %v2293_v18, %v2124_v50  ;;  %v2128_v54 = vadd.f32 %v2045_v63, %v1859_v13 }
 0x172   : > { %v7877_v31 = vpop.f32.mrf.mxu0  ;;  %v6137_v38 = vpop.f32.mrf.mxu1  ;;  %v2130_v28 = vadd.f32 %v7838_v52, %v1861_v58  ;;  %v1866_v52 = vadd.f32 %v7832_v46, %v7799_v44  ;;  %v2132_v42 = vadd.f32 %v7846_v11, %v1863_v9  ;;  %v1868_v11 = vadd.f32 %v7840_v4, %v7805_v33  ;;  %v9041_v9 = vld [vmem:[#allocation6_spill] sm:$0xff] }
 0x173   : > { %v2126_v12 = vadd.f32 %v2035_v59, %v1857_v17  ;;  %v2395_v41 = vadd.f32 %v6137_v38, %v2127_v0  ;;  %v1867_v58 = vadd.f32 %v7844_v57, %v7808_v5 }
 0x174   : > { %v7880_v35 = vpop.f32.mrf.mxu0  ;;  %v2303_v37 = vpop.f32.mrf.mxu1 }
 0x175   : > { %v2136_v5 = vadd.f32 %v7862_v3, %v1867_v58  ;;  %v9042_v3 = vld [vmem:[#allocation10_spill] sm:$0xff] }
 0x176   : > { %v6140_v14 = vpop.f32.mrf.mxu1  ;;  %v6168_v7 = vpop.f32.mrf.mxu0 }
 0x177   : > { %v2661_v20 = vadd.f32 %v6168_v7, %v2393_v34  ;;  %v2394_v34 = vadd.f32 %v2303_v37, %v2126_v12  ;;  %v1862_v7 = vadd.f32 %v7824_v55, %v7787_v23  ;;  %v2397_v49 = vadd.f32 %v6140_v14, %v2129_v56 }
 0x178   : > { %v2313_v26 = vpop.f32.mrf.mxu1  ;;  %v2561_v32 = vpop.f32.mrf.mxu0  ;;  %v1864_v55 = vadd.f32 %v7828_v60, %v7793_v39 }
 0x179   : > { %v2660_v43 = vadd.f32 %v2561_v32, %v2392_v22  ;;  %v2688_v19 = vadd.f32 %v7887_v27, %v2661_v20  ;;  %v2131_v17 = vadd.f32 %v7834_v1, %v1862_v7  ;;  %v2396_v38 = vadd.f32 %v2313_v26, %v2128_v54 }
 0x17a   : > { %v6143_v48 = vpop.f32.mrf.mxu1  ;;  %v6171_v45 = vpop.f32.mrf.mxu0 }
 0x17b   : > { %v2687_v50 = vadd.f32 %v7887_v27, %v2660_v43  ;;  %v2663_v10 = vadd.f32 %v6171_v45, %v2395_v41  ;;  %v2708_v51 = vmax.f32 %v2688_v19, 0.0  ;;  %v2399_v24 = vadd.f32 %v6143_v48, %v2131_v17 }
 0x17c   : > { %v2323_v25 = vpop.f32.mrf.mxu1  ;;  %v2571_v18 = vpop.f32.mrf.mxu0  ;;  %v2133_v43 = vadd.f32 %v7842_v6, %v1864_v55 }
 0x17d   : > { %v2707_v59 = vmax.f32 %v2687_v50, 0.0  ;;  %v2662_v22 = vadd.f32 %v2571_v18, %v2394_v34  ;;  %v2690_v0 = vadd.f32 %v7887_v27, %v2663_v10  ;;  %v2398_v13 = vadd.f32 %v2323_v25, %v2130_v28 }
 0x17e   : > { %v6146_v40 = vpop.f32.mrf.mxu1  ;;  %v6174_v37 = vpop.f32.mrf.mxu0  ;;  %v1865_v34 = vadd.f32 %v7836_v2, %v7802_v29  ;;  %v2135_v25 = vadd.f32 %v7850_v61, %v1866_v52 }
 0x17f   : > { %v2689_v36 = vadd.f32 %v7887_v27, %v2662_v22  ;;  %v2665_v23 = vadd.f32 %v6174_v37, %v2397_v49  ;;  %6228 = vmatprep.mubr.f32.mxu1 %v2707_v59  ;;  %v2710_v1 = vmax.f32 %v2690_v0, 0.0  ;;  %v2401_v62 = vadd.f32 %v6146_v40, %v2133_v43 }
 0x180   : > { %v2333_v63 = vpop.f32.mrf.mxu1  ;;  %v2581_v14 = vpop.f32.mrf.mxu0  ;;  %6229 = vmatmul.mubr.f32.vlgmr.msra.gmra.mxu1 %v2708_v51  ;;  %v2134_v29 = vadd.f32 %v7854_v47, %v1865_v34  ;;  %v2137_v37 = vadd.f32 %v7858_v30, %v1868_v11  ;;  %v1870_v47 = vadd.f32 %v7848_v16, %v7811_v15 }
 0x181   : > { %v2709_v20 = vmax.f32 %v2689_v36, 0.0  ;;  %v2664_v32 = vadd.f32 %v2581_v14, %v2396_v38  ;;  %v2692_v26 = vadd.f32 %v7887_v27, %v2665_v23  ;;  %v2400_v18 = vadd.f32 %v2333_v63, %v2132_v42  ;;  %v9046_v42 = vld [vmem:[#allocation15_spill] sm:$0xff] }
 0x182   : > { %v6149_v12 = vpop.f32.mrf.mxu1  ;;  %v6177_v41 = vpop.f32.mrf.mxu0  ;;  %v1869_v63 = vadd.f32 %v7852_v8, %v7814_v21 }
 0x183   : > { %v2691_v39 = vadd.f32 %v7887_v27, %v2664_v32  ;;  %v2667_v60 = vadd.f32 %v6177_v41, %v2399_v24  ;;  %6231 = vmatprep.mubr.f32.mxu1 %v2709_v20  ;;  %v2712_v6 = vmax.f32 %v2692_v26, 0.0  ;;  %v2403_v2 = vadd.f32 %v6149_v12, %v2135_v25  ;;  %v9043_v41 = vld [vmem:[#allocation14_spill] sm:$0xff] }
 0x184   : > { %v2343_v19 = vpop.f32.mrf.mxu1  ;;  %v2591_v48 = vpop.f32.mrf.mxu0  ;;  %6232 = vmatmul.mubr.f32.gmra.mxu1 %v2710_v1  ;;  %v2139_v20 = vadd.f32 %v7866_v53, %v1870_v47  ;;  %v1872_v1 = vadd.f32 %v9042_v3, %v9041_v9  ;;  %v2138_v21 = vadd.f32 %v9043_v41, %v1869_v63 }
 0x185   : > { %v2711_v45 = vmax.f32 %v2691_v39, 0.0  ;;  %v2666_v56 = vadd.f32 %v2591_v48, %v2398_v13  ;;  %v2694_v50 = vadd.f32 %v7887_v27, %v2667_v60  ;;  %v2402_v17 = vadd.f32 %v2343_v19, %v2134_v29  ;;  %v9044_v39 = vld [vmem:[#allocation7_spill] sm:$0xff]  ;;  %v9051_v29 = vld [vmem:[#allocation13_spill] sm:$0xff] }
 0x186   : > { %v6152_v10 = vpop.f32.mrf.mxu1  ;;  %v6180_v7 = vpop.f32.mrf.mxu0  ;;  %v9045_v60 = vld [vmem:[#allocation11_spill] sm:$0xff] }
 0x187   : > { %v2693_v44 = vadd.f32 %v7887_v27, %v2666_v56  ;;  %v2669_v46 = vadd.f32 %v6180_v7, %v2401_v62  ;;  %6234 = vmatprep.mubr.f32.mxu1 %v2711_v45  ;;  %v2714_v61 = vmax.f32 %v2694_v50, 0.0  ;;  %v2405_v57 = vadd.f32 %v6152_v10, %v2137_v37  ;;  %v9048_v50 = vld [vmem:[#allocation12_spill] sm:$0xff] }
 0x188   : > { %v2353_v54 = vpop.f32.mrf.mxu1  ;;  %v2601_v49 = vpop.f32.mrf.mxu0  ;;  %6235 = vmatmul.mubr.f32.gmra.mxu1 %v2712_v6  ;;  %v1871_v52 = vadd.f32 %v9045_v60, %v9044_v39  ;;  %v2141_v62 = vadd.f32 %v9046_v42, %v1872_v1  ;;  %v9047_v6 = vld [vmem:[#allocation8_spill] sm:$0xff] }
 0x189   : > { %v2713_v59 = vmax.f32 %v2693_v44, 0.0  ;;  %v2668_v22 = vadd.f32 %v2601_v49, %v2400_v18  ;;  %v2696_v51 = vadd.f32 %v7887_v27, %v2669_v46  ;;  %v2404_v32 = vadd.f32 %v2353_v54, %v2136_v5  ;;  %v9049_v18 = vld [vmem:[#allocation16_spill] sm:$0xff]  ;;  %v9050_v49 = vld [vmem:[#allocation9_spill] sm:$0xff] }
 0x18a   : > { %v6155_v0 = vpop.f32.mrf.mxu1  ;;  %v6183_v40 = vpop.f32.mrf.mxu0  ;;  %v1874_v10 = vadd.f32 %v9048_v50, %v9047_v6  ;;  %v2140_v44 = vadd.f32 %v9049_v18, %v1871_v52 }
 0x18b   : > { %v2695_v33 = vadd.f32 %v7887_v27, %v2668_v22  ;;  %v2671_v4 = vadd.f32 %v6183_v40, %v2403_v2  ;;  %6237 = vmatprep.mubr.f32.mxu1 %v2713_v59  ;;  %v2716_v30 = vmax.f32 %v2696_v51, 0.0  ;;  %v2407_v8 = vadd.f32 %v6155_v0, %v2139_v20 }
 0x18c   : > { %v2363_v38 = vpop.f32.mrf.mxu1  ;;  %v2611_v36 = vpop.f32.mrf.mxu0  ;;  %6238 = vmatmul.mubr.f32.gmra.mxu1 %v2714_v61  ;;  %v1873_v2 = vadd.f32 %v9051_v29, %v9050_v49  ;;  %v2143_v61 = vadd.f32 %v7877_v31, %v1874_v10 }
 0x18d   : > { %v2715_v23 = vmax.f32 %v2695_v33, 0.0  ;;  %v2670_v55 = vadd.f32 %v2611_v36, %v2402_v17  ;;  %v2698_v14 = vadd.f32 %v7887_v27, %v2671_v4  ;;  %v2406_v45 = vadd.f32 %v2363_v38, %v2138_v21 }
 0x18e   : > { %v6158_v28 = vpop.f32.mrf.mxu1  ;;  %v6186_v24 = vpop.f32.mrf.mxu0  ;;  %v2142_v33 = vadd.f32 %v7880_v35, %v1873_v2 }
 0x18f   : > { %v2697_v15 = vadd.f32 %v7887_v27, %v2670_v55  ;;  %v2673_v16 = vadd.f32 %v6186_v24, %v2405_v57  ;;  %6240 = vmatprep.mubr.f32.mxu1 %v2715_v23  ;;  %v2718_v53 = vmax.f32 %v2698_v14, 0.0  ;;  %v2409_v46 = vadd.f32 %v6158_v28, %v2141_v62 }
 0x190   : > { %v2373_v26 = vpop.f32.mrf.mxu1  ;;  %v2621_v12 = vpop.f32.mrf.mxu0  ;;  %6241 = vmatmul.mubr.f32.gmra.mxu1 %v2716_v30 }
 0x191   : > { %v2717_v43 = vmax.f32 %v2697_v15, 0.0  ;;  %v2672_v13 = vadd.f32 %v2621_v12, %v2404_v32  ;;  %v2700_v19 = vadd.f32 %v7887_v27, %v2673_v16  ;;  %v2408_v51 = vadd.f32 %v2373_v26, %v2140_v44 }
 0x192   : > { %v6189_v48 = vpop.f32.mrf.mxu0  ;;  %v6161_v7 = vpop.f32.mrf.mxu1  ;;  %v6937_v15 = vmov 0.0  }
 0x193   : > { %v2699_v56 = vadd.f32 %v7887_v27, %v2672_v13  ;;  %v2675_v34 = vadd.f32 %v6189_v48, %v2407_v8  ;;  %6243 = vmatprep.mubr.f32.mxu1 %v2717_v43  ;;  %v2720_v59 = vmax.f32 %v2700_v19, 0.0  ;;  %v2411_v4 = vadd.f32 %v6161_v7, %v2143_v61  ;;  %2955 = vst [vmem:[#allocation2] sm:$0x1] %v6937_v15 }
 0x194   : > { %v2631_v25 = vpop.f32.mrf.mxu0  ;;  %6244 = vmatmul.mubr.f32.gmra.mxu1 %v2718_v53  ;;  %v2383_v37 = vpop.f32.mrf.mxu1  ;;  %2956 = vst [vmem:[#allocation2 + $0x18] sm:$0x1] %v6937_v15  ;;  %2957 = vst [vmem:[#allocation2 + $0x30] sm:$0x1] %v6937_v15 }
 0x195   : > { %v2719_v11 = vmax.f32 %v2699_v56, 0.0  ;;  %v2674_v54 = vadd.f32 %v2631_v25, %v2406_v45  ;;  %v2702_v22 = vadd.f32 %v7887_v27, %v2675_v34  ;;  %v2410_v23 = vadd.f32 %v2383_v37, %v2142_v33  ;;  %2958 = vst [vmem:[#allocation2 + $0x48] sm:$0x1] %v6937_v15  ;;  %2959 = vst [vmem:[#allocation2 + $0x60] sm:$0x1] %v6937_v15 }
 0x196   : > { %v6192_v58 = vpop.f32.mrf.mxu0  ;;  %2960 = vst [vmem:[#allocation2 + $0x78] sm:$0x1] %v6937_v15  ;;  %2961 = vst [vmem:[#allocation2 + $0x90] sm:$0x1] %v6937_v15 }
 0x197   : > { %v2701_v0 = vadd.f32 %v7887_v27, %v2674_v54  ;;  %v2677_v40 = vadd.f32 %v6192_v58, %v2409_v46  ;;  %6246 = vmatprep.mubr.f32.mxu1 %v2719_v11  ;;  %v2722_v36 = vmax.f32 %v2702_v22, 0.0  ;;  %2962 = vst [vmem:[#allocation2 + $0xa8] sm:$0x1] %v6937_v15  ;;  %2963 = vst [vmem:[#allocation2 + $0xc0] sm:$0x1] %v6937_v15 }
 0x198   : > { %v2641_v17 = vpop.f32.mrf.mxu0  ;;  %6247 = vmatmul.mubr.f32.gmra.mxu1 %v2720_v59  ;;  %2964 = vst [vmem:[#allocation2 + $0xd8] sm:$0x1] %v6937_v15  ;;  %2965 = vst [vmem:[#allocation2 + $0x11] sm:$0x1] %v6937_v15 }
 0x199   : > { %v2721_v47 = vmax.f32 %v2701_v0, 0.0  ;;  %v2676_v38 = vadd.f32 %v2641_v17, %v2408_v51  ;;  %v2704_v5 = vadd.f32 %v7887_v27, %v2677_v40  ;;  %2966 = vst [vmem:[#allocation2 + $0x29] sm:$0x1] %v6937_v15  ;;  %2967 = vst [vmem:[#allocation2 + $0x41] sm:$0x1] %v6937_v15 }
 0x19a   : > { %v6195_v57 = vpop.f32.mrf.mxu0  ;;  %2968 = vst [vmem:[#allocation2 + $0x59] sm:$0x1] %v6937_v15  ;;  %2969 = vst [vmem:[#allocation2 + $0x71] sm:$0x1] %v6937_v15 }
 0x19b   : > { %v2703_v31 = vadd.f32 %v7887_v27, %v2676_v38  ;;  %v2679_v55 = vadd.f32 %v6195_v57, %v2411_v4  ;;  %6249 = vmatprep.mubr.f32.mxu1 %v2721_v47  ;;  %v2724_v28 = vmax.f32 %v2704_v5, 0.0  ;;  %2970 = vst [vmem:[#allocation2 + $0x89] sm:$0x1] %v6937_v15  ;;  %2971 = vst [vmem:[#allocation2 + $0xa1] sm:$0x1] %v6937_v15 }
 0x19c   : > { %v2651_v63 = vpop.f32.mrf.mxu0  ;;  %6250 = vmatmul.mubr.f32.gmra.mxu1 %v2722_v36  ;;  %2972 = vst [vmem:[#allocation2 + $0xb9] sm:$0x1] %v6937_v15  ;;  %2973 = vst [vmem:[#allocation2 + $0xd1] sm:$0x1] %v6937_v15 }
 0x19d   : > { %v2723_v30 = vmax.f32 %v2703_v31, 0.0  ;;  %v2678_v14 = vadd.f32 %v2651_v63, %v2410_v23  ;;  %v2706_v24 = vadd.f32 %v7887_v27, %v2679_v55  ;;  %2974 = vst [vmem:[#allocation2 + $0xe9] sm:$0x1] %v6937_v15 }
 0x19f   : > { %v2705_v35 = vadd.f32 %v7887_v27, %v2678_v14  ;;  %6252 = vmatprep.mubr.f32.mxu1 %v2723_v30  ;;  %v2726_v32 = vmax.f32 %v2706_v24, 0.0  ;;  %v7956_v27 = vld [vmem:[%s9019_s4] ss:$0 sm:$0xff] }
 0x1a0   : > { %6253 = vmatmul.mubr.f32.gmra.mxu1 %v2724_v28 }
 0x1a1   : > { %v2725_v20 = vmax.f32 %v2705_v35, 0.0 }
 0x1a3   : > { %6255 = vmatprep.mubr.f32.mxu1 %v2725_v20 }
 0x1a4   : > { %6256 = vmatmul.mubr.f32.gmra.mxu1 %v2726_v32 }
 0x240   : > { %v6230_v16 = vpop.f32.mrf.mxu1 }
 0x241   : > { %v2822_v9 = vadd.f32 %v6230_v16, %v7956_v27 }
 0x242   : > { %v2816_v3 = vpop.f32.mrf.mxu1 }
 0x243   : > { %v2916_v1 = vmax.f32 %v2822_v9, 0.0  ;;  %v2817_v26 = vadd.f32 %v7956_v27, %v2816_v3 }
 0x244   : > { %v6233_v12 = vpop.f32.mrf.mxu1 }
 0x245   : > { %2936 = vst [vmem:[#allocation2 + $0x9] sm:$0xff] %v2916_v1  ;;  %v2915_v41 = vmax.f32 %v2817_v26, 0.0  ;;  %v2832_v21 = vadd.f32 %v6233_v12, %v7956_v27 }
 0x246   : > { %v2826_v8 = vpop.f32.mrf.mxu1 }
 0x247   : > { %2935 = vst [vmem:[#allocation2 + $0x1] sm:$0xff] %v2915_v41  ;;  %v2918_v43 = vmax.f32 %v2832_v21, 0.0  ;;  %v2827_v13 = vadd.f32 %v7956_v27, %v2826_v8 }
 0x248   : > { %v6236_v39 = vpop.f32.mrf.mxu1 }
 0x249   : > { %2938 = vst [vmem:[#allocation2 + $0x21] sm:$0xff] %v2918_v43  ;;  %v2917_v60 = vmax.f32 %v2827_v13, 0.0  ;;  %v2842_v52 = vadd.f32 %v6236_v39, %v7956_v27 }
 0x24a   : > { %v2836_v53 = vpop.f32.mrf.mxu1 }
 0x24b   : > { %2937 = vst [vmem:[#allocation2 + $0x19] sm:$0xff] %v2917_v60  ;;  %v2920_v19 = vmax.f32 %v2842_v52, 0.0  ;;  %v2837_v48 = vadd.f32 %v7956_v27, %v2836_v53 }
 0x24c   : > { %v6239_v42 = vpop.f32.mrf.mxu1 }
 0x24d   : > { %2940 = vst [vmem:[#allocation2 + $0x39] sm:$0xff] %v2920_v19  ;;  %v2919_v62 = vmax.f32 %v2837_v48, 0.0  ;;  %v2852_v45 = vadd.f32 %v6239_v42, %v7956_v27 }
 0x24e   : > { %v2846_v56 = vpop.f32.mrf.mxu1 }
 0x24f   : > { %2939 = vst [vmem:[#allocation2 + $0x31] sm:$0xff] %v2919_v62  ;;  %v2922_v34 = vmax.f32 %v2852_v45, 0.0  ;;  %v2847_v6 = vadd.f32 %v7956_v27, %v2846_v56 }
 0x250   : > { %v6242_v50 = vpop.f32.mrf.mxu1 }
 0x251   : > { %2942 = vst [vmem:[#allocation2 + $0x51] sm:$0xff] %v2922_v34  ;;  %v2921_v10 = vmax.f32 %v2847_v6, 0.0  ;;  %v2862_v7 = vadd.f32 %v6242_v50, %v7956_v27 }
 0x252   : > { %v2856_v25 = vpop.f32.mrf.mxu1 }
 0x253   : > { %2941 = vst [vmem:[#allocation2 + $0x49] sm:$0xff] %v2921_v10  ;;  %v2924_v18 = vmax.f32 %v2862_v7, 0.0  ;;  %v2857_v44 = vadd.f32 %v7956_v27, %v2856_v25 }
 0x254   : > { %v6245_v46 = vpop.f32.mrf.mxu1 }
 0x255   : > { %2944 = vst [vmem:[#allocation2 + $0x69] sm:$0xff] %v2924_v18  ;;  %v2923_v11 = vmax.f32 %v2857_v44, 0.0  ;;  %v2872_v54 = vadd.f32 %v6245_v46, %v7956_v27 }
 0x256   : > { %v2866_v49 = vpop.f32.mrf.mxu1 }
 0x257   : > { %2943 = vst [vmem:[#allocation2 + $0x61] sm:$0xff] %v2923_v11  ;;  %v2926_v29 = vmax.f32 %v2872_v54, 0.0  ;;  %v2867_v2 = vadd.f32 %v7956_v27, %v2866_v49 }
 0x258   : > { %v6248_v59 = vpop.f32.mrf.mxu1 }
 0x259   : > { %2946 = vst [vmem:[#allocation2 + $0x81] sm:$0xff] %v2926_v29  ;;  %v2925_v22 = vmax.f32 %v2867_v2, 0.0  ;;  %v2882_v58 = vadd.f32 %v6248_v59, %v7956_v27 }
 0x25a   : > { %v2876_v61 = vpop.f32.mrf.mxu1 }
 0x25b   : > { %2945 = vst [vmem:[#allocation2 + $0x79] sm:$0xff] %v2925_v22  ;;  %v2928_v51 = vmax.f32 %v2882_v58, 0.0  ;;  %v2877_v0 = vadd.f32 %v7956_v27, %v2876_v61 }
 0x25c   : > { %v6251_v40 = vpop.f32.mrf.mxu1 }
 0x25d   : > { %2948 = vst [vmem:[#allocation2 + $0x99] sm:$0xff] %v2928_v51  ;;  %v2927_v37 = vmax.f32 %v2877_v0, 0.0  ;;  %v2892_v17 = vadd.f32 %v6251_v40, %v7956_v27 }
 0x25e   : > { %v2886_v33 = vpop.f32.mrf.mxu1 }
 0x25f   : > { %2947 = vst [vmem:[#allocation2 + $0x91] sm:$0xff] %v2927_v37  ;;  %v2930_v4 = vmax.f32 %v2892_v17, 0.0  ;;  %v2887_v47 = vadd.f32 %v7956_v27, %v2886_v33 }
 0x260   : > { %v6254_v38 = vpop.f32.mrf.mxu1 }
 0x261   : > { %2950 = vst [vmem:[#allocation2 + $0xb1] sm:$0xff] %v2930_v4  ;;  %v2929_v36 = vmax.f32 %v2887_v47, 0.0  ;;  %v2902_v5 = vadd.f32 %v6254_v38, %v7956_v27 }
 0x262   : > { %v2896_v57 = vpop.f32.mrf.mxu1 }
 0x263   : > { %2949 = vst [vmem:[#allocation2 + $0xa9] sm:$0xff] %v2929_v36  ;;  %v2932_v23 = vmax.f32 %v2902_v5, 0.0  ;;  %v2897_v31 = vadd.f32 %v7956_v27, %v2896_v57 }
 0x264   : > { %v6257_v55 = vpop.f32.mrf.mxu1 }
 0x265   : > { %2952 = vst [vmem:[#allocation2 + $0xc9] sm:$0xff] %v2932_v23  ;;  %v2931_v63 = vmax.f32 %v2897_v31, 0.0  ;;  %v2912_v30 = vadd.f32 %v6257_v55, %v7956_v27 }
 0x266   : > { %v2906_v14 = vpop.f32.mrf.mxu1 }
 0x267   : > { %2951 = vst [vmem:[#allocation2 + $0xc1] sm:$0xff] %v2931_v63  ;;  %v2934_v28 = vmax.f32 %v2912_v30, 0.0  ;;  %v2907_v24 = vadd.f32 %v7956_v27, %v2906_v14  ;;  %2978 = sbr.rel (%p5213_p13) target bundleno = 623 (0x26f), region = 52 }
 0x269   : > { %2954 = vst [vmem:[#allocation2 + $0xe1] sm:$0xff] %v2934_v28  ;;  %v2933_v35 = vmax.f32 %v2907_v24, 0.0 }
 0x26b   : > { %2953 = vst [vmem:[#allocation2 + $0xd9] sm:$0xff] %v2933_v35 }
 0x26c   : > { %v6938_v20 = vmov 0.0  }
 0x26d   : > { %2979 = vst [vmem:[#allocation2] sm:$0xff] %v6938_v20  ;;  %2980 = vst [vmem:[#allocation2 + $0x8] sm:$0xff] %v6938_v20 }
 0x26e   : > { %2981 = vst [vmem:[#allocation2 + $0x10] sm:$0x3] %v6938_v20 }
 0x26f PF: > { %p5214_p0 = scmp.ne.s32.totalorder %s6919_s27, 1 }
 0x271   : > { %2985 = sbr.rel (%p5214_p0) target bundleno = 633 (0x279), region = 56 }
 0x276   : > { %v6939_v32 = vmov 0.0  }
 0x277   : > { %2987 = vst [vmem:[#allocation2 + $0xd8] sm:$0xff] %v6939_v32  ;;  %2988 = vst [vmem:[#allocation2 + $0xe0] sm:$0xff] %v6939_v32 }
 0x278   : > { %2989 = vst [vmem:[#allocation2 + $0xe8] sm:$0x3] %v6939_v32 }
 0x279 PF: > { %v5230_v15 = vld [vmem:[%s9020_s5 + $0xf8] sm:$0xff]  ;;  %v5229_v16 = vld [vmem:[%s9020_s5 + $0xf0] sm:$0xff]  ;;  %v5228_v3 = vld [vmem:[%s9020_s5 + $0xe8] sm:$0xff]  ;;  %s5367_s17 = sshll.u32 %s6919_s27, 4  ;;  %s5363_s18 = sshll.u32 %s6923_s28, 5 }
 0x27a   : > { %v3021_v27 = vld [vmem:[%s9020_s5 + $0x78] sm:$0xff]  ;;  %6258 = vmatprep.subr.mxu0 %v5230_v15  ;;  %v3020_v9 = vld [vmem:[%s9020_s5 + $0x70] sm:$0xff]  ;;  %v3019_v1 = vld [vmem:[%s9020_s5 + $0x68] sm:$0xff]  ;;  %s4806_s13 = sadd.s32 %s5367_s17, %s5363_s18  ;;  %s4809_s28 = sshll.u32 %s7979_s16, 4  ;;  %s8956_s28 = int_to_ptr.vmem [resolvable:$true] %s4809_s28 }
 0x27b   : > { %6314 = vmatprep.subr.mxu1 %v3021_v27  ;;  %6259 = vmatpush3.msra.mxu0 %v5230_v15  ;;  %v5227_v26 = vld [vmem:[%s9020_s5 + $0xe0] sm:$0xff]  ;;  %v5226_v41 = vld [vmem:[%s9020_s5 + $0xd8] sm:$0xff]  ;;  %v5225_v8 = vld [vmem:[%s9020_s5 + $0xd0] sm:$0xff]  ;;  %s5364_s27 = sshll.u32 %s4806_s13, 7  ;;  %s6843_s1 = scalar_lea.vmem %s8956_s28, 2048 }
 0x27c   : > { %6315 = vmatpush3.msra.mxu1 %v3021_v27  ;;  %6260 = vmatprep.subr.mxu0 %v5229_v16  ;;  %v3018_v12 = vld [vmem:[%s9020_s5 + $0x60] sm:$0xff]  ;;  %v3017_v21 = vld [vmem:[%s9020_s5 + $0x58] sm:$0xff]  ;;  %v3016_v43 = vld [vmem:[%s9020_s5 + $0x50] sm:$0xff]  ;;  %s8954_s23 = scalar_lea.hbm %s9022_s7, %s5364_s27  ;;  %p6844_p1 = scmp.ne.s32.totalorder %s8956_s28, %s6843_s1 }
 0x27d   : > { %6316 = vmatprep.subr.mxu1 %v3020_v9  ;;  %6261 = vmatpush3.msra.mxu0 %v5229_v16  ;;  %v5224_v13 = vld [vmem:[%s9020_s5 + $0xc8] sm:$0xff]  ;;  %v5223_v60 = vld [vmem:[%s9020_s5 + $0xc0] sm:$0xff]  ;;  %v5222_v53 = vld [vmem:[%s9020_s5 + $0xb8] sm:$0xff]  ;;  %s6940_s9 = smov [#allocation3]  }
 0x27e   : > { %6317 = vmatpush3.msra.mxu1 %v3020_v9  ;;  %6262 = vmatprep.subr.mxu0 %v5228_v3  ;;  %v3015_v39 = vld [vmem:[%s9020_s5 + $0x48] sm:$0xff]  ;;  %v3014_v52 = vld [vmem:[%s9020_s5 + $0x40] sm:$0xff]  ;;  %v3013_v19 = vld [vmem:[%s9020_s5 + $0x38] sm:$0xff]  ;;  %p6845_p2 = pnand %p6844_p1, %p7034_p3  ;;  %s6847_s10 = sshll.u32 %s6940_s9, 4  ;;  %s6848_s10 = int_to_ptr.vmem [resolvable:$false] %s6847_s10 }
 0x27f   : > { %6318 = vmatprep.subr.mxu1 %v3019_v1  ;;  %6263 = vmatpush3.msra.mxu0 %v5228_v3  ;;  %v5221_v48 = vld [vmem:[%s9020_s5 + $0xb0] sm:$0xff]  ;;  %v5220_v62 = vld [vmem:[%s9020_s5 + $0xa8] sm:$0xff]  ;;  %v5219_v56 = vld [vmem:[%s9020_s5 + $0xa0] sm:$0xff]  ;;  %s6849_s17 = scalar_lea.vmem %s6848_s10, 4096  ;;  %p6850_p5 = scmp.lt.s32.totalorder %s8956_s28, %s6848_s10 }
 0x280   : > { %6319 = vmatpush3.msra.mxu1 %v3019_v1  ;;  %6264 = vmatprep.subr.mxu0 %v5227_v26  ;;  %v3012_v42 = vld [vmem:[%s9020_s5 + $0x30] sm:$0xff]  ;;  %v3011_v45 = vld [vmem:[%s9020_s5 + $0x28] sm:$0xff]  ;;  %v3010_v34 = vld [vmem:[%s9020_s5 + $0x20] sm:$0xff]  ;;  %p6846_p4 = pneg %p6845_p2  ;;  %p6851_p6 = scmp.lt.s32.totalorder %s6849_s17, %s6843_s1 }
 0x281   : > { %6320 = vmatprep.subr.mxu1 %v3018_v12  ;;  %6265 = vmatpush3.msra.mxu0 %v5227_v26  ;;  %v5218_v6 = vld [vmem:[%s9020_s5 + $0x98] sm:$0xff]  ;;  %v5217_v10 = vld [vmem:[%s9020_s5 + $0x90] sm:$0xff]  ;;  %v5216_v25 = vld [vmem:[%s9020_s5 + $0x88] sm:$0xff] }
 0x282   : > { %6321 = vmatpush3.msra.mxu1 %v3018_v12  ;;  %6266 = vmatprep.subr.mxu0 %v5226_v41  ;;  %v3009_v50 = vld [vmem:[%s9020_s5 + $0x18] sm:$0xff]  ;;  %v3008_v7 = vld [vmem:[%s9020_s5 + $0x10] sm:$0xff]  ;;  %v3007_v18 = vld [vmem:[%s9020_s5 + $0x8] sm:$0xff]  ;;  %p6852_p7 = por %p6851_p6, %p6850_p5 }
 0x283   : > { %6322 = vmatprep.subr.mxu1 %v3017_v21  ;;  %6267 = vmatpush3.msra.mxu0 %v5226_v41  ;;  %v5215_v44 = vld [vmem:[%s9020_s5 + $0x80] sm:$0xff]  ;;  %v3023_v49 = vld [vmem:[#allocation2 + $0x9] sm:$0xff]  ;;  %v5246_v2 = vld [vmem:[%s9020_s5 + $0x178] sm:$0xff] }
 0x284   : > { %6323 = vmatpush3.msra.mxu1 %v3017_v21  ;;  %6268 = vmatprep.subr.mxu0 %v5225_v8  ;;  %v3006_v46 = vld [vmem:[%s9020_s5] sm:$0xff]  ;;  %v2991_v29 = vld [vmem:[#allocation2 + $0x8] sm:$0xff]  ;;  %v5262_v59 = vld [vmem:[%s9020_s5 + $0x1f8] sm:$0xff]  ;;  %p6853_p9 = pnand %p6852_p7, %p6846_p4 }
 0x285   : > { %6324 = vmatprep.subr.mxu1 %v3016_v43  ;;  %6269 = vmatpush3.msra.mxu0 %v5225_v8  ;;  %v3022_v11 = vld [vmem:[#allocation2 + $0x1] sm:$0xff]  ;;  %v8085_v22 = vld [vmem:[#allocation2 + $0x19] sm:$0xff]  ;;  %v5245_v58 = vld [vmem:[%s9020_s5 + $0x170] sm:$0xff] }
 0x286   : > { %6325 = vmatpush3.msra.mxu1 %v3016_v43  ;;  %6270 = vmatprep.subr.mxu0 %v5224_v13  ;;  %v2990_v54 = vld [vmem:[#allocation2] sm:$0xff]  ;;  %v8090_v61 = vld [vmem:[#allocation2 + $0x18] sm:$0xff]  ;;  %v5244_v40 = vld [vmem:[%s9020_s5 + $0x168] sm:$0xff] }
 0x287   : > { %6326 = vmatprep.subr.mxu1 %v3015_v39  ;;  %6271 = vmatpush3.msra.mxu0 %v5224_v13  ;;  %v8093_v51 = vld [vmem:[#allocation2 + $0x21] sm:$0xff]  ;;  %v5261_v37 = vld [vmem:[%s9020_s5 + $0x1f0] sm:$0xff]  ;;  %v8116_v38 = vld [vmem:[#allocation2 + $0x39] sm:$0xff] }
 0x288   : > { %6327 = vmatpush3.msra.mxu1 %v3015_v39  ;;  %6272 = vmatprep.subr.mxu0 %v5223_v60  ;;  %v8095_v0 = vld [vmem:[#allocation2 + $0x20] sm:$0xff]  ;;  %v5260_v33 = vld [vmem:[%s9020_s5 + $0x1e8] sm:$0xff]  ;;  %v8112_v4 = vld [vmem:[#allocation2 + $0x31] sm:$0xff] }
 0x289   : > { %6328 = vmatprep.subr.mxu1 %v3014_v52  ;;  %6273 = vmatpush3.msra.mxu0 %v5223_v60  ;;  %v5243_v17 = vld [vmem:[%s9020_s5 + $0x160] sm:$0xff]  ;;  %v8114_v47 = vld [vmem:[#allocation2 + $0x30] sm:$0xff]  ;;  %v8118_v36 = vld [vmem:[#allocation2 + $0x38] sm:$0xff] }
 0x28a   : > { %6329 = vmatpush3.msra.mxu1 %v3014_v52  ;;  %6274 = vmatprep.subr.mxu0 %v5222_v53  ;;  %v5242_v5 = vld [vmem:[%s9020_s5 + $0x158] sm:$0xff]  ;;  %v5259_v57 = vld [vmem:[%s9020_s5 + $0x1e0] sm:$0xff]  ;;  %v5241_v23 = vld [vmem:[%s9020_s5 + $0x150] sm:$0xff] }
 0x28b   : > { %6330 = vmatprep.subr.mxu1 %v3013_v19  ;;  %6275 = vmatpush3.msra.mxu0 %v5222_v53  ;;  %v5258_v31 = vld [vmem:[%s9020_s5 + $0x1d8] sm:$0xff]  ;;  %v8136_v55 = vld [vmem:[#allocation2 + $0x49] sm:$0xff]  ;;  %v5239_v35 = vld [vmem:[%s9020_s5 + $0x140] sm:$0xff] }
 0x28c   : > { %6331 = vmatpush3.msra.mxu1 %v3013_v19  ;;  %6276 = vmatprep.subr.mxu0 %v5221_v48  ;;  %v8138_v63 = vld [vmem:[#allocation2 + $0x48] sm:$0xff]  ;;  %v8140_v30 = vld [vmem:[#allocation2 + $0x51] sm:$0xff]  ;;  %v8162_v15 = vld [vmem:[#allocation2 + $0x60] sm:$0xff] }
 0x28d   : > { %6332 = vmatprep.subr.mxu1 %v3012_v42  ;;  %6277 = vmatpush3.msra.mxu0 %v5221_v48  ;;  %v8142_v14 = vld [vmem:[#allocation2 + $0x50] sm:$0xff]  ;;  %v5240_v28 = vld [vmem:[%s9020_s5 + $0x148] sm:$0xff]  ;;  %v5238_v9 = vld [vmem:[%s9020_s5 + $0x138] sm:$0xff] }
 0x28e   : > { %6333 = vmatpush3.msra.mxu1 %v3012_v42  ;;  %6278 = vmatprep.subr.mxu0 %v5220_v62  ;;  %v5257_v24 = vld [vmem:[%s9020_s5 + $0x1d0] sm:$0xff]  ;;  %v5256_v20 = vld [vmem:[%s9020_s5 + $0x1c8] sm:$0xff]  ;;  %v5255_v3 = vld [vmem:[%s9020_s5 + $0x1c0] sm:$0xff] }
 0x28f   : > { %6334 = vmatprep.subr.mxu1 %v3011_v45  ;;  %6279 = vmatpush3.msra.mxu0 %v5220_v62  ;;  %v8160_v32 = vld [vmem:[#allocation2 + $0x61] sm:$0xff]  ;;  %v8164_v27 = vld [vmem:[#allocation2 + $0x69] sm:$0xff]  ;;  %v5254_v26 = vld [vmem:[%s9020_s5 + $0x1b8] sm:$0xff] }
 0x290   : > { %6335 = vmatpush3.msra.mxu1 %v3011_v45  ;;  %6280 = vmatprep.subr.mxu0 %v5219_v56  ;;  %v8166_v16 = vld [vmem:[#allocation2 + $0x68] sm:$0xff]  ;;  %v5237_v1 = vld [vmem:[%s9020_s5 + $0x130] sm:$0xff]  ;;  %v8184_v12 = vld [vmem:[#allocation2 + $0x79] sm:$0xff] }
 0x291   : > { %6336 = vmatprep.subr.mxu1 %v3010_v34  ;;  %6281 = vmatpush3.msra.mxu0 %v5219_v56  ;;  %v8186_v41 = vld [vmem:[#allocation2 + $0x78] sm:$0xff]  ;;  %v8188_v21 = vld [vmem:[#allocation2 + $0x81] sm:$0xff]  ;;  %v5253_v13 = vld [vmem:[%s9020_s5 + $0x1b0] sm:$0xff] }
 0x292   : > { %6337 = vmatpush3.msra.mxu1 %v3010_v34  ;;  %6282 = vmatprep.subr.mxu0 %v5218_v6  ;;  %v8190_v8 = vld [vmem:[#allocation2 + $0x80] sm:$0xff]  ;;  %v5236_v43 = vld [vmem:[%s9020_s5 + $0x128] sm:$0xff]  ;;  %v8208_v52 = vld [vmem:[#allocation2 + $0x91] sm:$0xff] }
 0x293   : > { %6338 = vmatprep.subr.mxu1 %v3009_v50  ;;  %6283 = vmatpush3.msra.mxu0 %v5218_v6  ;;  %v5235_v39 = vld [vmem:[%s9020_s5 + $0x120] sm:$0xff]  ;;  %v5252_v60 = vld [vmem:[%s9020_s5 + $0x1a8] sm:$0xff]  ;;  %v8210_v53 = vld [vmem:[#allocation2 + $0x90] sm:$0xff] }
 0x294   : > { %6339 = vmatpush3.msra.mxu1 %v3009_v50  ;;  %6284 = vmatprep.subr.mxu0 %v5217_v10  ;;  %v8212_v19 = vld [vmem:[#allocation2 + $0x99] sm:$0xff]  ;;  %v5233_v45 = vld [vmem:[%s9020_s5 + $0x110] sm:$0xff]  ;;  %v8234_v6 = vld [vmem:[#allocation2 + $0xa8] sm:$0xff] }
 0x295   : > { %6340 = vmatprep.subr.mxu1 %v3008_v7  ;;  %6285 = vmatpush3.msra.mxu0 %v5217_v10  ;;  %v8214_v48 = vld [vmem:[#allocation2 + $0x98] sm:$0xff]  ;;  %v5251_v62 = vld [vmem:[%s9020_s5 + $0x1a0] sm:$0xff]  ;;  %v8232_v34 = vld [vmem:[#allocation2 + $0xa9] sm:$0xff] }
 0x296   : > { %6341 = vmatpush3.msra.mxu1 %v3008_v7  ;;  %6286 = vmatprep.subr.mxu0 %v5216_v25  ;;  %v5234_v42 = vld [vmem:[%s9020_s5 + $0x118] sm:$0xff]  ;;  %v8238_v10 = vld [vmem:[#allocation2 + $0xb0] sm:$0xff]  ;;  %v5232_v7 = vld [vmem:[%s9020_s5 + $0x108] sm:$0xff] }
 0x297   : > { %6342 = vmatprep.subr.mxu1 %v3007_v18  ;;  %6287 = vmatpush3.msra.mxu0 %v5216_v25  ;;  %v5250_v56 = vld [vmem:[%s9020_s5 + $0x198] sm:$0xff]  ;;  %v5249_v25 = vld [vmem:[%s9020_s5 + $0x190] sm:$0xff] }
 0x298   : > { %6343 = vmatpush3.msra.mxu1 %v3007_v18  ;;  %6288 = vmatprep.subr.mxu0 %v5215_v44  ;;  %v8236_v50 = vld [vmem:[#allocation2 + $0xb1] sm:$0xff]  ;;  %v5231_v18 = vld [vmem:[%s9020_s5 + $0x100] sm:$0xff] }
 0x299   : > { %6344 = vmatprep.subr.mxu1 %v3006_v46  ;;  %6289 = vmatpush3.msra.mxu0 %v5215_v44  ;;  %v5248_v44 = vld [vmem:[%s9020_s5 + $0x188] sm:$0xff] }
 0x29a   : > { %6290 = vmatprep.mubr.f32.mxu0 %v3022_v11  ;;  %6345 = vmatpush3.msra.mxu1 %v3006_v46  ;;  %v3345_v46 = vld [vmem:[#allocation2 + $0x2] sm:$0xff]  ;;  %v3346_v11 = vld [vmem:[#allocation2 + $0xa] sm:$0xff] }
 0x29b   : > { %6346 = vmatprep.mubr.f32.mxu1 %v2990_v54  ;;  %6291 = vmatmul.mubr.f32.vlgmr.msra.gmra.mxu0 %v3023_v49  ;;  %v5247_v54 = vld [vmem:[%s9020_s5 + $0x180] sm:$0xff]  ;;  %v5278_v49 = vld [vmem:[%s9020_s5 + $0x278] sm:$0xff] }
 0x29c   : > { %6347 = vmatmul.mubr.f32.vlgmr.msra.gmra.mxu1 %v2991_v29  ;;  %6370 = vmatprep.subr.mxu0 %v5246_v2  ;;  %v5277_v29 = vld [vmem:[%s9020_s5 + $0x270] sm:$0xff] }
 0x29d   : > { %6426 = vmatprep.subr.mxu1 %v5262_v59  ;;  %6371 = vmatpush3.msra.mxu0 %v5246_v2  ;;  %v5294_v2 = vld [vmem:[%s9020_s5 + $0x2f8] sm:$0xff] }
 0x29e   : > { %6293 = vmatprep.mubr.f32.mxu0 %v8085_v22  ;;  %6372 = vmatprep.subr.mxu0 %v5245_v58 }
 0x29f   : > { %6349 = vmatprep.mubr.f32.mxu1 %v8090_v61  ;;  %6373 = vmatpush3.msra.mxu0 %v5245_v58  ;;  %v8272_v58 = vld [vmem:[#allocation2 + $0x22] sm:$0xff] }
 0x2a0   : > { %6427 = vmatpush3.msra.mxu1 %v5262_v59  ;;  %6294 = vmatmul.mubr.f32.gmra.mxu0 %v8093_v51  ;;  %v8269_v59 = vld [vmem:[#allocation2 + $0x1a] sm:$0xff] }
 0x2a1   : > { %6350 = vmatmul.mubr.f32.gmra.mxu1 %v8095_v0  ;;  %6374 = vmatprep.subr.mxu0 %v5244_v40 }
 0x2a2   : > { %6428 = vmatprep.subr.mxu1 %v5261_v37  ;;  %6375 = vmatpush3.msra.mxu0 %v5244_v40  ;;  %v5276_v40 = vld [vmem:[%s9020_s5 + $0x268] sm:$0xff] }
 0x2a3   : > { %6429 = vmatpush3.msra.mxu1 %v5261_v37  ;;  %6376 = vmatprep.subr.mxu0 %v5243_v17  ;;  %v5293_v37 = vld [vmem:[%s9020_s5 + $0x2f0] sm:$0xff] }
 0x2a4   : > { %6430 = vmatprep.subr.mxu1 %v5260_v33  ;;  %6296 = vmatprep.mubr.f32.mxu0 %v8112_v4 }
 0x2a5   : > { %6352 = vmatprep.mubr.f32.mxu1 %v8114_v47  ;;  %6377 = vmatpush3.msra.mxu0 %v5243_v17  ;;  %v8289_v17 = vld [vmem:[#allocation2 + $0x32] sm:$0xff] }
 0x2a6   : > { %6431 = vmatpush3.msra.mxu1 %v5260_v33  ;;  %6297 = vmatmul.mubr.f32.gmra.mxu0 %v8116_v38  ;;  %v8291_v33 = vld [vmem:[#allocation2 + $0x3a] sm:$0xff] }
 0x2a7   : > { %6353 = vmatmul.mubr.f32.gmra.mxu1 %v8118_v36  ;;  %6378 = vmatprep.subr.mxu0 %v5242_v5 }
 0x2a8   : > { %6432 = vmatprep.subr.mxu1 %v5259_v57  ;;  %6379 = vmatpush3.msra.mxu0 %v5242_v5  ;;  %v5274_v5 = vld [vmem:[%s9020_s5 + $0x258] sm:$0xff] }
 0x2a9   : > { %6433 = vmatpush3.msra.mxu1 %v5259_v57  ;;  %6380 = vmatprep.subr.mxu0 %v5241_v23  ;;  %v5291_v57 = vld [vmem:[%s9020_s5 + $0x2e0] sm:$0xff] }
 0x2aa   : > { %6434 = vmatprep.subr.mxu1 %v5258_v31  ;;  %6299 = vmatprep.mubr.f32.mxu0 %v8136_v55 }
 0x2ab   : > { %6355 = vmatprep.mubr.f32.mxu1 %v8138_v63  ;;  %6381 = vmatpush3.msra.mxu0 %v5241_v23  ;;  %v5273_v23 = vld [vmem:[%s9020_s5 + $0x250] sm:$0xff] }
 0x2ac   : > { %6435 = vmatpush3.msra.mxu1 %v5258_v31  ;;  %6300 = vmatmul.mubr.f32.gmra.mxu0 %v8140_v30  ;;  %v5290_v31 = vld [vmem:[%s9020_s5 + $0x2d8] sm:$0xff] }
 0x2ad   : > { %6356 = vmatmul.mubr.f32.gmra.mxu1 %v8142_v14  ;;  %6382 = vmatprep.subr.mxu0 %v5240_v28 }
 0x2ae   : > { %6436 = vmatprep.subr.mxu1 %v5257_v24  ;;  %6383 = vmatpush3.msra.mxu0 %v5240_v28  ;;  %v8309_v28 = vld [vmem:[#allocation2 + $0x4a] sm:$0xff] }
 0x2af   : > { %6437 = vmatpush3.msra.mxu1 %v5257_v24  ;;  %6384 = vmatprep.subr.mxu0 %v5239_v35  ;;  %v8311_v24 = vld [vmem:[#allocation2 + $0x52] sm:$0xff] }
 0x2b0   : > { %6438 = vmatprep.subr.mxu1 %v5256_v20  ;;  %6302 = vmatprep.mubr.f32.mxu0 %v8160_v32 }
 0x2b1   : > { %6358 = vmatprep.mubr.f32.mxu1 %v8162_v15  ;;  %6385 = vmatpush3.msra.mxu0 %v5239_v35  ;;  %v5272_v35 = vld [vmem:[%s9020_s5 + $0x248] sm:$0xff] }
 0x2b2   : > { %6439 = vmatpush3.msra.mxu1 %v5256_v20  ;;  %6303 = vmatmul.mubr.f32.gmra.mxu0 %v8164_v27  ;;  %v5289_v20 = vld [vmem:[%s9020_s5 + $0x2d0] sm:$0xff] }
 0x2b3   : > { %6359 = vmatmul.mubr.f32.gmra.mxu1 %v8166_v16  ;;  %6386 = vmatprep.subr.mxu0 %v5238_v9 }
 0x2b4   : > { %6440 = vmatprep.subr.mxu1 %v5255_v3  ;;  %6387 = vmatpush3.msra.mxu0 %v5238_v9  ;;  %v5271_v9 = vld [vmem:[%s9020_s5 + $0x240] sm:$0xff] }
 0x2b5   : > { %6441 = vmatpush3.msra.mxu1 %v5255_v3  ;;  %6388 = vmatprep.subr.mxu0 %v5237_v1  ;;  %v5288_v3 = vld [vmem:[%s9020_s5 + $0x2c8] sm:$0xff] }
 0x2b6   : > { %6442 = vmatprep.subr.mxu1 %v5254_v26  ;;  %6305 = vmatprep.mubr.f32.mxu0 %v8184_v12 }
 0x2b7   : > { %6361 = vmatprep.mubr.f32.mxu1 %v8186_v41  ;;  %6389 = vmatpush3.msra.mxu0 %v5237_v1  ;;  %v8329_v1 = vld [vmem:[#allocation2 + $0x62] sm:$0xff] }
 0x2b8   : > { %6443 = vmatpush3.msra.mxu1 %v5254_v26  ;;  %6306 = vmatmul.mubr.f32.gmra.mxu0 %v8188_v21  ;;  %v8331_v26 = vld [vmem:[#allocation2 + $0x6a] sm:$0xff] }
 0x2b9   : > { %6362 = vmatmul.mubr.f32.gmra.mxu1 %v8190_v8  ;;  %6390 = vmatprep.subr.mxu0 %v5236_v43 }
 0x2ba   : > { %6444 = vmatprep.subr.mxu1 %v5253_v13  ;;  %6391 = vmatpush3.msra.mxu0 %v5236_v43  ;;  %v5270_v43 = vld [vmem:[%s9020_s5 + $0x238] sm:$0xff] }
 0x2bb   : > { %6445 = vmatpush3.msra.mxu1 %v5253_v13  ;;  %6392 = vmatprep.subr.mxu0 %v5235_v39  ;;  %v5287_v13 = vld [vmem:[%s9020_s5 + $0x2c0] sm:$0xff] }
 0x2bc   : > { %6446 = vmatprep.subr.mxu1 %v5252_v60  ;;  %6308 = vmatprep.mubr.f32.mxu0 %v8208_v52 }
 0x2bd   : > { %6364 = vmatprep.mubr.f32.mxu1 %v8210_v53  ;;  %6393 = vmatpush3.msra.mxu0 %v5235_v39  ;;  %v5269_v39 = vld [vmem:[%s9020_s5 + $0x230] sm:$0xff] }
 0x2be   : > { %6447 = vmatpush3.msra.mxu1 %v5252_v60  ;;  %6309 = vmatmul.mubr.f32.gmra.mxu0 %v8212_v19  ;;  %v5286_v60 = vld [vmem:[%s9020_s5 + $0x2b8] sm:$0xff] }
 0x2bf   : > { %6365 = vmatmul.mubr.f32.gmra.mxu1 %v8214_v48  ;;  %6394 = vmatprep.subr.mxu0 %v5234_v42 }
 0x2c0   : > { %6448 = vmatprep.subr.mxu1 %v5251_v62  ;;  %6395 = vmatpush3.msra.mxu0 %v5234_v42  ;;  %v8349_v42 = vld [vmem:[#allocation2 + $0x7a] sm:$0xff] }
 0x2c1   : > { %6449 = vmatpush3.msra.mxu1 %v5251_v62  ;;  %6396 = vmatprep.subr.mxu0 %v5233_v45  ;;  %v8351_v62 = vld [vmem:[#allocation2 + $0x82] sm:$0xff] }
 0x2c2   : > { %6450 = vmatprep.subr.mxu1 %v5250_v56  ;;  %6311 = vmatprep.mubr.f32.mxu0 %v8232_v34 }
 0x2c3   : > { %6367 = vmatprep.mubr.f32.mxu1 %v8234_v6  ;;  %6397 = vmatpush3.msra.mxu0 %v5233_v45  ;;  %v5268_v45 = vld [vmem:[%s9020_s5 + $0x228] sm:$0xff] }
 0x2c4   : > { %6451 = vmatpush3.msra.mxu1 %v5250_v56  ;;  %6312 = vmatmul.mubr.f32.gmra.mxu0 %v8236_v50  ;;  %v5285_v56 = vld [vmem:[%s9020_s5 + $0x2b0] sm:$0xff] }
 0x2c5   : > { %6368 = vmatmul.mubr.f32.gmra.mxu1 %v8238_v10  ;;  %6398 = vmatprep.subr.mxu0 %v5232_v7 }
 0x2c6   : > { %6452 = vmatprep.subr.mxu1 %v5249_v25  ;;  %6399 = vmatpush3.msra.mxu0 %v5232_v7  ;;  %v5267_v7 = vld [vmem:[%s9020_s5 + $0x220] sm:$0xff] }
 0x2c7   : > { %6453 = vmatpush3.msra.mxu1 %v5249_v25  ;;  %6400 = vmatprep.subr.mxu0 %v5231_v18  ;;  %v5284_v25 = vld [vmem:[%s9020_s5 + $0x2a8] sm:$0xff] }
 0x2c8   : > { %6454 = vmatprep.subr.mxu1 %v5248_v44  ;;  %6401 = vmatpush3.msra.mxu0 %v5231_v18  ;;  %v8369_v18 = vld [vmem:[#allocation2 + $0x92] sm:$0xff] }
 0x2c9   : > { %6402 = vmatprep.mubr.f32.mxu0 %v3345_v46  ;;  %6455 = vmatpush3.msra.mxu1 %v5248_v44  ;;  %v8371_v44 = vld [vmem:[#allocation2 + $0x9a] sm:$0xff] }
 0x2ca   : > { %6403 = vmatmul.mubr.f32.vlgmr.msra.gmra.mxu0 %v3346_v11  ;;  %6456 = vmatprep.subr.mxu1 %v5247_v54  ;;  %v5266_v46 = vld [vmem:[%s9020_s5 + $0x218] sm:$0xff]  ;;  %v5283_v11 = vld [vmem:[%s9020_s5 + $0x2a0] sm:$0xff] }
 0x2cb   : > { %6482 = vmatprep.subr.mxu0 %v5278_v49  ;;  %6457 = vmatpush3.msra.mxu1 %v5247_v54  ;;  %v5265_v54 = vld [vmem:[%s9020_s5 + $0x210] sm:$0xff] }
 0x2cc   : > { %6458 = vmatprep.mubr.f32.mxu1 %v8090_v61  ;;  %6483 = vmatpush3.msra.mxu0 %v5278_v49  ;;  %v5275_v61 = vld [vmem:[%s9020_s5 + $0x260] sm:$0xff]  ;;  %v5282_v49 = vld [vmem:[%s9020_s5 + $0x298] sm:$0xff] }
 0x2cd   : > { %6459 = vmatmul.mubr.f32.vlgmr.msra.gmra.mxu1 %v8095_v0  ;;  %6484 = vmatprep.subr.mxu0 %v5277_v29  ;;  %v5292_v0 = vld [vmem:[%s9020_s5 + $0x2e8] sm:$0xff] }
 0x2ce   : > { %6538 = vmatprep.subr.mxu1 %v5294_v2  ;;  %6405 = vmatprep.mubr.f32.mxu0 %v8269_v59 }
 0x2cf   : > { %6485 = vmatpush3.msra.mxu0 %v5277_v29  ;;  %6539 = vmatpush3.msra.mxu1 %v5294_v2  ;;  %v8389_v29 = vld [vmem:[#allocation2 + $0xaa] sm:$0xff]  ;;  %v8391_v2 = vld [vmem:[#allocation2 + $0xb2] sm:$0xff] }
 0x2d0   : > { %6406 = vmatmul.mubr.f32.gmra.mxu0 %v8272_v58  ;;  %6486 = vmatprep.subr.mxu0 %v5276_v40 }
 0x2d1   : > { %6540 = vmatprep.subr.mxu1 %v5293_v37  ;;  %6461 = vmatprep.mubr.f32.mxu1 %v8114_v47 }
 0x2d2   : > { %6487 = vmatpush3.msra.mxu0 %v5276_v40  ;;  %6541 = vmatpush3.msra.mxu1 %v5293_v37  ;;  %v5264_v40 = vld [vmem:[%s9020_s5 + $0x208] sm:$0xff]  ;;  %v5281_v37 = vld [vmem:[%s9020_s5 + $0x290] sm:$0xff] }
 0x2d3   : > { %6488 = vmatprep.subr.mxu0 %v5275_v61  ;;  %6462 = vmatmul.mubr.f32.gmra.mxu1 %v8118_v36 }
 0x2d4   : > { %6542 = vmatprep.subr.mxu1 %v5292_v0  ;;  %6408 = vmatprep.mubr.f32.mxu0 %v8289_v17 }
 0x2d5   : > { %6489 = vmatpush3.msra.mxu0 %v5275_v61  ;;  %6543 = vmatpush3.msra.mxu1 %v5292_v0  ;;  %v8401_v61 = vld [vmem:[#allocation2 + $0xc0] sm:$0xff] }
 0x2d6   : > { %6409 = vmatmul.mubr.f32.gmra.mxu0 %v8291_v33  ;;  %6490 = vmatprep.subr.mxu0 %v5274_v5  ;;  %v5263_v0 = vld [vmem:[%s9020_s5 + $0x200] sm:$0xff] }
 0x2d7   : > { %6544 = vmatprep.subr.mxu1 %v5291_v57  ;;  %6464 = vmatprep.mubr.f32.mxu1 %v8138_v63 }
 0x2d8   : > { %6491 = vmatpush3.msra.mxu0 %v5274_v5  ;;  %6545 = vmatpush3.msra.mxu1 %v5291_v57  ;;  %v8407_v5 = vld [vmem:[#allocation2 + $0xc8] sm:$0xff] }
 0x2d9   : > { %6492 = vmatprep.subr.mxu0 %v5273_v23  ;;  %6465 = vmatmul.mubr.f32.gmra.mxu1 %v8142_v14  ;;  %v5280_v57 = vld [vmem:[%s9020_s5 + $0x288] sm:$0xff] }
 0x2da   : > { %6546 = vmatprep.subr.mxu1 %v5290_v31  ;;  %6411 = vmatprep.mubr.f32.mxu0 %v8309_v28 }
 0x2db   : > { %6493 = vmatpush3.msra.mxu0 %v5273_v23  ;;  %6547 = vmatpush3.msra.mxu1 %v5290_v31  ;;  %v5279_v23 = vld [vmem:[%s9020_s5 + $0x280] sm:$0xff]  ;;  %v5310_v31 = vld [vmem:[%s9020_s5 + $0x378] sm:$0xff] }
 0x2dc   : > { %6412 = vmatmul.mubr.f32.gmra.mxu0 %v8311_v24  ;;  %6494 = vmatprep.subr.mxu0 %v5272_v35 }
 0x2dd   : > { %6548 = vmatprep.subr.mxu1 %v5289_v20  ;;  %6467 = vmatprep.mubr.f32.mxu1 %v8162_v15 }
 0x2de   : > { %6495 = vmatpush3.msra.mxu0 %v5272_v35  ;;  %6549 = vmatpush3.msra.mxu1 %v5289_v20  ;;  %v5309_v35 = vld [vmem:[%s9020_s5 + $0x370] sm:$0xff]  ;;  %v5326_v20 = vld [vmem:[%s9020_s5 + $0x3f8] sm:$0xff] }
 0x2df   : > { %6496 = vmatprep.subr.mxu0 %v5271_v9  ;;  %6468 = vmatmul.mubr.f32.gmra.mxu1 %v8166_v16 }
 0x2e0   : > { %6550 = vmatprep.subr.mxu1 %v5288_v3  ;;  %6414 = vmatprep.mubr.f32.mxu0 %v8329_v1 }
 0x2e1   : > { %6497 = vmatpush3.msra.mxu0 %v5271_v9  ;;  %6551 = vmatpush3.msra.mxu1 %v5288_v3  ;;  %v5306_v9 = vld [vmem:[%s9020_s5 + $0x358] sm:$0xff]  ;;  %v5323_v3 = vld [vmem:[%s9020_s5 + $0x3e0] sm:$0xff] }
 0x2e2   : > { %6415 = vmatmul.mubr.f32.gmra.mxu0 %v8331_v26  ;;  %6498 = vmatprep.subr.mxu0 %v5270_v43 }
 0x2e3   : > { %6552 = vmatprep.subr.mxu1 %v5287_v13  ;;  %6470 = vmatprep.mubr.f32.mxu1 %v8186_v41 }
 0x2e4   : > { %6499 = vmatpush3.msra.mxu0 %v5270_v43  ;;  %6553 = vmatpush3.msra.mxu1 %v5287_v13  ;;  %v5305_v43 = vld [vmem:[%s9020_s5 + $0x350] sm:$0xff]  ;;  %v5322_v13 = vld [vmem:[%s9020_s5 + $0x3d8] sm:$0xff] }
 0x2e5   : > { %6500 = vmatprep.subr.mxu0 %v5269_v39  ;;  %6471 = vmatmul.mubr.f32.gmra.mxu1 %v8190_v8 }
 0x2e6   : > { %6554 = vmatprep.subr.mxu1 %v5286_v60  ;;  %6417 = vmatprep.mubr.f32.mxu0 %v8349_v42 }
 0x2e7   : > { %6501 = vmatpush3.msra.mxu0 %v5269_v39  ;;  %6555 = vmatpush3.msra.mxu1 %v5286_v60  ;;  %v5304_v39 = vld [vmem:[%s9020_s5 + $0x348] sm:$0xff]  ;;  %v5321_v60 = vld [vmem:[%s9020_s5 + $0x3d0] sm:$0xff] }
 0x2e8   : > { %6418 = vmatmul.mubr.f32.gmra.mxu0 %v8351_v62  ;;  %6502 = vmatprep.subr.mxu0 %v5268_v45 }
 0x2e9   : > { %6556 = vmatprep.subr.mxu1 %v5285_v56  ;;  %6473 = vmatprep.mubr.f32.mxu1 %v8210_v53 }
 0x2ea   : > { %6503 = vmatpush3.msra.mxu0 %v5268_v45  ;;  %6557 = vmatpush3.msra.mxu1 %v5285_v56  ;;  %v5303_v45 = vld [vmem:[%s9020_s5 + $0x340] sm:$0xff]  ;;  %v5320_v56 = vld [vmem:[%s9020_s5 + $0x3c8] sm:$0xff] }
 0x2eb   : > { %6504 = vmatprep.subr.mxu0 %v5267_v7  ;;  %6474 = vmatmul.mubr.f32.gmra.mxu1 %v8214_v48 }
 0x2ec   : > { %6558 = vmatprep.subr.mxu1 %v5284_v25  ;;  %6420 = vmatprep.mubr.f32.mxu0 %v8369_v18 }
 0x2ed   : > { %6505 = vmatpush3.msra.mxu0 %v5267_v7  ;;  %6559 = vmatpush3.msra.mxu1 %v5284_v25  ;;  %v5302_v7 = vld [vmem:[%s9020_s5 + $0x338] sm:$0xff]  ;;  %v5319_v25 = vld [vmem:[%s9020_s5 + $0x3c0] sm:$0xff] }
 0x2ee   : > { %6421 = vmatmul.mubr.f32.gmra.mxu0 %v8371_v44  ;;  %6506 = vmatprep.subr.mxu0 %v5266_v46 }
 0x2ef   : > { %6560 = vmatprep.subr.mxu1 %v5283_v11  ;;  %6476 = vmatprep.mubr.f32.mxu1 %v8234_v6 }
 0x2f0   : > { %6507 = vmatpush3.msra.mxu0 %v5266_v46  ;;  %6561 = vmatpush3.msra.mxu1 %v5283_v11  ;;  %v5301_v46 = vld [vmem:[%s9020_s5 + $0x330] sm:$0xff]  ;;  %v5318_v11 = vld [vmem:[%s9020_s5 + $0x3b8] sm:$0xff] }
 0x2f1   : > { %6508 = vmatprep.subr.mxu0 %v5265_v54  ;;  %6477 = vmatmul.mubr.f32.gmra.mxu1 %v8238_v10 }
 0x2f2   : > { %6562 = vmatprep.subr.mxu1 %v5282_v49  ;;  %6423 = vmatprep.mubr.f32.mxu0 %v8389_v29 }
 0x2f3   : > { %6509 = vmatpush3.msra.mxu0 %v5265_v54  ;;  %6563 = vmatpush3.msra.mxu1 %v5282_v49  ;;  %v5300_v54 = vld [vmem:[%s9020_s5 + $0x328] sm:$0xff]  ;;  %v5317_v49 = vld [vmem:[%s9020_s5 + $0x3b0] sm:$0xff] }
 0x2f4   : > { %6424 = vmatmul.mubr.f32.gmra.mxu0 %v8391_v2  ;;  %6510 = vmatprep.subr.mxu0 %v5264_v40 }
 0x2f5   : > { %6564 = vmatprep.subr.mxu1 %v5281_v37  ;;  %6479 = vmatprep.mubr.f32.mxu1 %v8401_v61 }
 0x2f6   : > { %6511 = vmatpush3.msra.mxu0 %v5264_v40  ;;  %6565 = vmatpush3.msra.mxu1 %v5281_v37  ;;  %v5299_v40 = vld [vmem:[%s9020_s5 + $0x320] sm:$0xff]  ;;  %v5316_v37 = vld [vmem:[%s9020_s5 + $0x3a8] sm:$0xff] }
 0x2f7   : > { %6512 = vmatprep.subr.mxu0 %v5263_v0  ;;  %6480 = vmatmul.mubr.f32.gmra.mxu1 %v8407_v5 }
 0x2f8   : > { %6566 = vmatprep.subr.mxu1 %v5280_v57  ;;  %6513 = vmatpush3.msra.mxu0 %v5263_v0  ;;  %v5298_v0 = vld [vmem:[%s9020_s5 + $0x318] sm:$0xff] }
 0x2f9   : > { %6514 = vmatprep.mubr.f32.mxu0 %v8085_v22  ;;  %6567 = vmatpush3.msra.mxu1 %v5280_v57  ;;  %v5308_v22 = vld [vmem:[%s9020_s5 + $0x368] sm:$0xff]  ;;  %v5315_v57 = vld [vmem:[%s9020_s5 + $0x3a0] sm:$0xff] }
 0x2fa   : > { %6515 = vmatmul.mubr.f32.vlgmr.msra.gmra.mxu0 %v8093_v51  ;;  %6568 = vmatprep.subr.mxu1 %v5279_v23  ;;  %v5325_v51 = vld [vmem:[%s9020_s5 + $0x3f0] sm:$0xff] }
 0x2fb   : > { %6594 = vmatprep.subr.mxu0 %v5310_v31  ;;  %6569 = vmatpush3.msra.mxu1 %v5279_v23  ;;  %v5297_v23 = vld [vmem:[%s9020_s5 + $0x310] sm:$0xff] }
 0x2fc   : > { %6570 = vmatprep.mubr.f32.mxu1 %v8269_v59  ;;  %6595 = vmatpush3.msra.mxu0 %v5310_v31  ;;  %v5307_v59 = vld [vmem:[%s9020_s5 + $0x360] sm:$0xff]  ;;  %v5314_v31 = vld [vmem:[%s9020_s5 + $0x398] sm:$0xff] }
 0x2fd   : > { %6571 = vmatmul.mubr.f32.vlgmr.msra.gmra.mxu1 %v8272_v58  ;;  %6596 = vmatprep.subr.mxu0 %v5309_v35  ;;  %v5324_v58 = vld [vmem:[%s9020_s5 + $0x3e8] sm:$0xff] }
 0x2fe   : > { %6650 = vmatprep.subr.mxu1 %v5326_v20  ;;  %6517 = vmatprep.mubr.f32.mxu0 %v8112_v4 }
 0x2ff   : > { %6597 = vmatpush3.msra.mxu0 %v5309_v35  ;;  %6651 = vmatpush3.msra.mxu1 %v5326_v20  ;;  %v8525_v35 = vld [vmem:[#allocation2 + $0xc1] sm:$0xff]  ;;  %v8527_v20 = vld [vmem:[#allocation2 + $0xc9] sm:$0xff] }
 0x300   : > { %6518 = vmatmul.mubr.f32.gmra.mxu0 %v8116_v38  ;;  %6598 = vmatprep.subr.mxu0 %v5308_v22 }
 0x301   : > { %6652 = vmatprep.subr.mxu1 %v5325_v51  ;;  %6573 = vmatprep.mubr.f32.mxu1 %v8289_v17 }
 0x302   : > { %6599 = vmatpush3.msra.mxu0 %v5308_v22  ;;  %6653 = vmatpush3.msra.mxu1 %v5325_v51  ;;  %v5296_v22 = vld [vmem:[%s9020_s5 + $0x308] sm:$0xff]  ;;  %v5313_v51 = vld [vmem:[%s9020_s5 + $0x390] sm:$0xff] }
 0x303   : > { %6600 = vmatprep.subr.mxu0 %v5307_v59  ;;  %6574 = vmatmul.mubr.f32.gmra.mxu1 %v8291_v33 }
 0x304   : > { %6654 = vmatprep.subr.mxu1 %v5324_v58  ;;  %6520 = vmatprep.mubr.f32.mxu0 %v8136_v55 }
 0x305   : > { %6601 = vmatpush3.msra.mxu0 %v5307_v59  ;;  %6655 = vmatpush3.msra.mxu1 %v5324_v58  ;;  %v8537_v59 = vld [vmem:[#allocation2 + $0xc2] sm:$0xff] }
 0x306   : > { %6521 = vmatmul.mubr.f32.gmra.mxu0 %v8140_v30  ;;  %6602 = vmatprep.subr.mxu0 %v5306_v9  ;;  %v5295_v58 = vld [vmem:[%s9020_s5 + $0x300] sm:$0xff] }
 0x307   : > { %6656 = vmatprep.subr.mxu1 %v5323_v3  ;;  %6576 = vmatprep.mubr.f32.mxu1 %v8309_v28 }
 0x308   : > { %6603 = vmatpush3.msra.mxu0 %v5306_v9  ;;  %6657 = vmatpush3.msra.mxu1 %v5323_v3  ;;  %v8543_v9 = vld [vmem:[#allocation2 + $0xca] sm:$0xff] }
 0x309   : > { %6604 = vmatprep.subr.mxu0 %v5305_v43  ;;  %6577 = vmatmul.mubr.f32.gmra.mxu1 %v8311_v24  ;;  %v5312_v3 = vld [vmem:[%s9020_s5 + $0x388] sm:$0xff] }
 0x30a   : > { %6658 = vmatprep.subr.mxu1 %v5322_v13  ;;  %6523 = vmatprep.mubr.f32.mxu0 %v8160_v32 }
 0x30b   : > { %6605 = vmatpush3.msra.mxu0 %v5305_v43  ;;  %6659 = vmatpush3.msra.mxu1 %v5322_v13  ;;  %v5311_v43 = vld [vmem:[%s9020_s5 + $0x380] sm:$0xff]  ;;  %v5342_v13 = vld [vmem:[%s9020_s5 + $0x478] sm:$0xff] }
 0x30c   : > { %6524 = vmatmul.mubr.f32.gmra.mxu0 %v8164_v27  ;;  %6606 = vmatprep.subr.mxu0 %v5304_v39 }
 0x30d   : > { %6660 = vmatprep.subr.mxu1 %v5321_v60  ;;  %6579 = vmatprep.mubr.f32.mxu1 %v8329_v1 }
 0x30e   : > { %6607 = vmatpush3.msra.mxu0 %v5304_v39  ;;  %6661 = vmatpush3.msra.mxu1 %v5321_v60  ;;  %v5341_v39 = vld [vmem:[%s9020_s5 + $0x470] sm:$0xff]  ;;  %v5340_v60 = vld [vmem:[%s9020_s5 + $0x468] sm:$0xff] }
 0x30f   : > { %6608 = vmatprep.subr.mxu0 %v5303_v45  ;;  %6580 = vmatmul.mubr.f32.gmra.mxu1 %v8331_v26 }
 0x310   : > { %6662 = vmatprep.subr.mxu1 %v5320_v56  ;;  %6526 = vmatprep.mubr.f32.mxu0 %v8184_v12 }
 0x311   : > { %6609 = vmatpush3.msra.mxu0 %v5303_v45  ;;  %6663 = vmatpush3.msra.mxu1 %v5320_v56 }
 0x312   : > { %6527 = vmatmul.mubr.f32.gmra.mxu0 %v8188_v21  ;;  %6610 = vmatprep.subr.mxu0 %v5302_v7 }
 0x313   : > { %6664 = vmatprep.subr.mxu1 %v5319_v25  ;;  %6582 = vmatprep.mubr.f32.mxu1 %v8349_v42 }
 0x314   : > { %6611 = vmatpush3.msra.mxu0 %v5302_v7  ;;  %6665 = vmatpush3.msra.mxu1 %v5319_v25 }
 0x315   : > { %6612 = vmatprep.subr.mxu0 %v5301_v46  ;;  %6583 = vmatmul.mubr.f32.gmra.mxu1 %v8351_v62 }
 0x316   : > { %6666 = vmatprep.subr.mxu1 %v5318_v11  ;;  %6529 = vmatprep.mubr.f32.mxu0 %v8208_v52 }
 0x317   : > { %6613 = vmatpush3.msra.mxu0 %v5301_v46  ;;  %6667 = vmatpush3.msra.mxu1 %v5318_v11 }
 0x318   : > { %6530 = vmatmul.mubr.f32.gmra.mxu0 %v8212_v19  ;;  %6614 = vmatprep.subr.mxu0 %v5300_v54 }
 0x319   : > { %6668 = vmatprep.subr.mxu1 %v5317_v49  ;;  %6585 = vmatprep.mubr.f32.mxu1 %v8369_v18 }
 0x31a   : > { %6615 = vmatpush3.msra.mxu0 %v5300_v54  ;;  %6669 = vmatpush3.msra.mxu1 %v5317_v49 }
 0x31b   : > { %6616 = vmatprep.subr.mxu0 %v5299_v40  ;;  %6586 = vmatmul.mubr.f32.gmra.mxu1 %v8371_v44 }
 0x31c   : > { %6670 = vmatprep.subr.mxu1 %v5316_v37  ;;  %6532 = vmatprep.mubr.f32.mxu0 %v8232_v34 }
 0x31d   : > { %6617 = vmatpush3.msra.mxu0 %v5299_v40  ;;  %6671 = vmatpush3.msra.mxu1 %v5316_v37 }
 0x31e   : > { %6533 = vmatmul.mubr.f32.gmra.mxu0 %v8236_v50  ;;  %6618 = vmatprep.subr.mxu0 %v5298_v0 }
 0x31f   : > { %6672 = vmatprep.subr.mxu1 %v5315_v57  ;;  %6588 = vmatprep.mubr.f32.mxu1 %v8389_v29 }
 0x320   : > { %6619 = vmatpush3.msra.mxu0 %v5298_v0  ;;  %6673 = vmatpush3.msra.mxu1 %v5315_v57 }
 0x321   : > { %6620 = vmatprep.subr.mxu0 %v5297_v23  ;;  %6589 = vmatmul.mubr.f32.gmra.mxu1 %v8391_v2 }
 0x322   : > { %6674 = vmatprep.subr.mxu1 %v5314_v31  ;;  %6535 = vmatprep.mubr.f32.mxu0 %v8525_v35 }
 0x323   : > { %6621 = vmatpush3.msra.mxu0 %v5297_v23  ;;  %6675 = vmatpush3.msra.mxu1 %v5314_v31 }
 0x324   : > { %6536 = vmatmul.mubr.f32.gmra.mxu0 %v8527_v20  ;;  %6622 = vmatprep.subr.mxu0 %v5296_v22 }
 0x325   : > { %6676 = vmatprep.subr.mxu1 %v5313_v51  ;;  %6591 = vmatprep.mubr.f32.mxu1 %v8537_v59 }
 0x326   : > { %6623 = vmatpush3.msra.mxu0 %v5296_v22  ;;  %6677 = vmatpush3.msra.mxu1 %v5313_v51 }
 0x327   : > { %6624 = vmatprep.subr.mxu0 %v5295_v58  ;;  %6592 = vmatmul.mubr.f32.gmra.mxu1 %v8543_v9 }
 0x328   : > { %6678 = vmatprep.subr.mxu1 %v5312_v3  ;;  %6625 = vmatpush3.msra.mxu0 %v5295_v58 }
 0x329   : > { %6626 = vmatprep.mubr.f32.mxu0 %v8114_v47  ;;  %6679 = vmatpush3.msra.mxu1 %v5312_v3  ;;  %v5339_v47 = vld [vmem:[%s9020_s5 + $0x460] sm:$0xff] }
 0x32a   : > { %6627 = vmatmul.mubr.f32.vlgmr.msra.gmra.mxu0 %v8118_v36  ;;  %6680 = vmatprep.subr.mxu1 %v5311_v43  ;;  %v5336_v36 = vld [vmem:[%s9020_s5 + $0x448] sm:$0xff] }
 0x32b   : > { %6706 = vmatprep.subr.mxu0 %v5342_v13  ;;  %6681 = vmatpush3.msra.mxu1 %v5311_v43 }
 0x32c   : > { %6682 = vmatprep.mubr.f32.mxu1 %v8112_v4  ;;  %6707 = vmatpush3.msra.mxu0 %v5342_v13  ;;  %v5338_v4 = vld [vmem:[%s9020_s5 + $0x458] sm:$0xff] }
 0x32d   : > { %6683 = vmatmul.mubr.f32.vlgmr.msra.gmra.mxu1 %v8116_v38  ;;  %6708 = vmatprep.subr.mxu0 %v5341_v39  ;;  %v5337_v38 = vld [vmem:[%s9020_s5 + $0x450] sm:$0xff] }
 0x32e   : > { %6629 = vmatprep.mubr.f32.mxu0 %v8138_v63  ;;  %6709 = vmatpush3.msra.mxu0 %v5341_v39  ;;  %v5334_v63 = vld [vmem:[%s9020_s5 + $0x438] sm:$0xff] }
 0x32f   : > { %6685 = vmatprep.mubr.f32.mxu1 %v8136_v55  ;;  %6630 = vmatmul.mubr.f32.gmra.mxu0 %v8142_v14  ;;  %v5335_v55 = vld [vmem:[%s9020_s5 + $0x440] sm:$0xff]  ;;  %v5332_v14 = vld [vmem:[%s9020_s5 + $0x428] sm:$0xff] }
 0x330   : > { %6710 = vmatprep.subr.mxu0 %v5340_v60  ;;  %6632 = vmatprep.mubr.f32.mxu0 %v8162_v15  ;;  %v5330_v15 = vld [vmem:[%s9020_s5 + $0x418] sm:$0xff] }
 0x331   : > { %6711 = vmatpush3.msra.mxu0 %v5340_v60  ;;  %6686 = vmatmul.mubr.f32.gmra.mxu1 %v8140_v30  ;;  %v5333_v30 = vld [vmem:[%s9020_s5 + $0x430] sm:$0xff] }
 0x332   : > { %6712 = vmatprep.subr.mxu0 %v5339_v47  ;;  %6688 = vmatprep.mubr.f32.mxu1 %v8160_v32  ;;  %v5331_v32 = vld [vmem:[%s9020_s5 + $0x420] sm:$0xff] }
 0x333   : > { %6713 = vmatpush3.msra.mxu0 %v5339_v47 }
 0x334   : > { %6633 = vmatmul.mubr.f32.gmra.mxu0 %v8166_v16  ;;  %6714 = vmatprep.subr.mxu0 %v5338_v4  ;;  %v4137_v16 = vld [vmem:[#allocation2 + $0xd8] sm:$0xff] }
 0x335   : > { %6715 = vmatpush3.msra.mxu0 %v5338_v4  ;;  %6689 = vmatmul.mubr.f32.gmra.mxu1 %v8164_v27  ;;  %v5329_v27 = vld [vmem:[%s9020_s5 + $0x410] sm:$0xff] }
 0x336   : > { %6716 = vmatprep.subr.mxu0 %v5337_v38  ;;  %6635 = vmatprep.mubr.f32.mxu0 %v8186_v41  ;;  %v4138_v41 = vld [vmem:[#allocation2 + $0xe0] sm:$0xff] }
 0x337   : > { %6717 = vmatpush3.msra.mxu0 %v5337_v38  ;;  %6691 = vmatprep.mubr.f32.mxu1 %v8184_v12  ;;  %v4331_v12 = vld [vmem:[#allocation2 + $0xd9] sm:$0xff] }
 0x338   : > { %6636 = vmatmul.mubr.f32.gmra.mxu0 %v8190_v8  ;;  %6718 = vmatprep.subr.mxu0 %v5336_v36  ;;  %v4332_v8 = vld [vmem:[#allocation2 + $0xe1] sm:$0xff] }
 0x339   : > { %6719 = vmatpush3.msra.mxu0 %v5336_v36  ;;  %6692 = vmatmul.mubr.f32.gmra.mxu1 %v8188_v21  ;;  %v5328_v21 = vld [vmem:[%s9020_s5 + $0x408] sm:$0xff] }
 0x33a   : > { %6720 = vmatprep.subr.mxu0 %v5335_v55  ;;  %6638 = vmatprep.mubr.f32.mxu0 %v8210_v53 }
 0x33b   : > { %6721 = vmatpush3.msra.mxu0 %v5335_v55  ;;  %6694 = vmatprep.mubr.f32.mxu1 %v8208_v52  ;;  %v5327_v52 = vld [vmem:[%s9020_s5 + $0x400] sm:$0xff] }
 0x33c   : > { %6639 = vmatmul.mubr.f32.gmra.mxu0 %v8214_v48  ;;  %6722 = vmatprep.subr.mxu0 %v5334_v63 }
 0x33d   : > { %6723 = vmatpush3.msra.mxu0 %v5334_v63  ;;  %6695 = vmatmul.mubr.f32.gmra.mxu1 %v8212_v19 }
 0x33e   : > { %6724 = vmatprep.subr.mxu0 %v5333_v30  ;;  %6641 = vmatprep.mubr.f32.mxu0 %v8234_v6 }
 0x33f   : > { %6725 = vmatpush3.msra.mxu0 %v5333_v30  ;;  %6697 = vmatprep.mubr.f32.mxu1 %v8232_v34 }
 0x340   : > { %6642 = vmatmul.mubr.f32.gmra.mxu0 %v8238_v10  ;;  %6726 = vmatprep.subr.mxu0 %v5332_v14 }
 0x341   : > { %6727 = vmatpush3.msra.mxu0 %v5332_v14  ;;  %6698 = vmatmul.mubr.f32.gmra.mxu1 %v8236_v50 }
 0x342   : > { %6728 = vmatprep.subr.mxu0 %v5331_v32  ;;  %6644 = vmatprep.mubr.f32.mxu0 %v8401_v61 }
 0x343   : > { %6729 = vmatpush3.msra.mxu0 %v5331_v32  ;;  %6700 = vmatprep.mubr.f32.mxu1 %v8525_v35 }
 0x344   : > { %6645 = vmatmul.mubr.f32.gmra.mxu0 %v8407_v5  ;;  %6730 = vmatprep.subr.mxu0 %v5330_v15 }
 0x345   : > { %6731 = vmatpush3.msra.mxu0 %v5330_v15  ;;  %6701 = vmatmul.mubr.f32.gmra.mxu1 %v8527_v20 }
 0x346   : > { %6732 = vmatprep.subr.mxu0 %v5329_v27  ;;  %6647 = vmatprep.mubr.f32.mxu0 %v4137_v16 }
 0x347   : > { %6733 = vmatpush3.msra.mxu0 %v5329_v27  ;;  %6703 = vmatprep.mubr.f32.mxu1 %v4331_v12 }
 0x348   : > { %6648 = vmatmul.mubr.f32.gmra.mxu0 %v4138_v41  ;;  %6734 = vmatprep.subr.mxu0 %v5328_v21 }
 0x349   : > { %6735 = vmatpush3.msra.mxu0 %v5328_v21  ;;  %6704 = vmatmul.mubr.f32.gmra.mxu1 %v4332_v8 }
 0x34a   : > { %6736 = vmatprep.subr.mxu0 %v5327_v52  ;;  %6738 = vmatprep.mubr.f32.mxu0 %v8289_v17 }
 0x34b   : > { %6737 = vmatpush3.msra.mxu0 %v5327_v52 }
 0x34c   : > { %6739 = vmatmul.mubr.f32.vlgmr.msra.gmra.mxu0 %v8291_v33  ;;  %v4525_v33 = vld [vmem:[#allocation2 + $0xda] sm:$0xff] }
 0x34d   : > { %6741 = vmatprep.mubr.f32.mxu0 %v8309_v28 }
 0x350   : > { %6742 = vmatmul.mubr.f32.gmra.mxu0 %v8311_v24 }
 0x351   : > { %6744 = vmatprep.mubr.f32.mxu0 %v8329_v1 }
 0x354   : > { %6745 = vmatmul.mubr.f32.gmra.mxu0 %v8331_v26 }
 0x355   : > { %6747 = vmatprep.mubr.f32.mxu0 %v8349_v42  ;;  %v4526_v42 = vld [vmem:[#allocation2 + $0xe2] sm:$0xff] }
 0x358   : > { %6748 = vmatmul.mubr.f32.gmra.mxu0 %v8351_v62 }
 0x359   : > { %6750 = vmatprep.mubr.f32.mxu0 %v8369_v18 }
 0x35b   : > { %v6292_v53 = vpop.f32.mrf.mxu0 }
 0x35c   : > { %6751 = vmatmul.mubr.f32.gmra.mxu0 %v8371_v44  ;;  %v6348_v19 = vpop.f32.mrf.mxu1 }
 0x35d   : > { %6753 = vmatprep.mubr.f32.mxu0 %v8389_v29  ;;  %v3272_v48 = vadd.f32 %v6348_v19, %v6292_v53  ;;  %v3121_v34 = vpop.f32.mrf.mxu0 }
 0x35e   : > { %v3266_v6 = vpop.f32.mrf.mxu1 }
 0x35f   : > { %v3267_v50 = vadd.f32 %v3266_v6, %v3121_v34 }
 0x360   : > { %6754 = vmatmul.mubr.f32.gmra.mxu0 %v8391_v2  ;;  %v6295_v10 = vpop.f32.mrf.mxu0 }
 0x361   : > { %6756 = vmatprep.mubr.f32.mxu0 %v8537_v59  ;;  %v6351_v17 = vpop.f32.mrf.mxu1 }
 0x362   : > { %v3282_v28 = vadd.f32 %v6351_v17, %v6295_v10  ;;  %v3131_v24 = vpop.f32.mrf.mxu0 }
 0x363   : > { %v3276_v1 = vpop.f32.mrf.mxu1 }
 0x364   : > { %6757 = vmatmul.mubr.f32.gmra.mxu0 %v8543_v9  ;;  %v3277_v26 = vadd.f32 %v3276_v1, %v3131_v24 }
 0x365   : > { %6759 = vmatprep.mubr.f32.mxu0 %v4525_v33 }
 0x366   : > { %v6298_v62 = vpop.f32.mrf.mxu0 }
 0x367   : > { %v6354_v18 = vpop.f32.mrf.mxu1 }
 0x368   : > { %6760 = vmatmul.mubr.f32.gmra.mxu0 %v4526_v42  ;;  %v3292_v44 = vadd.f32 %v6354_v18, %v6298_v62  ;;  %v3141_v29 = vpop.f32.mrf.mxu0 }
 0x369   : > { %v3286_v61 = vpop.f32.mrf.mxu1 }
 0x36a   : > { %v3287_v2 = vadd.f32 %v3286_v61, %v3141_v29 }
 0x36c   : > { %v6301_v5 = vpop.f32.mrf.mxu0 }
 0x36d   : > { %v6357_v45 = vpop.f32.mrf.mxu1 }
 0x36e   : > { %v3302_v56 = vadd.f32 %v6357_v45, %v6301_v5  ;;  %v3151_v7 = vpop.f32.mrf.mxu0 }
 0x36f   : > { %v3296_v25 = vpop.f32.mrf.mxu1 }
 0x370   : > { %v3297_v46 = vadd.f32 %v3296_v25, %v3151_v7 }
 0x372   : > { %v6304_v11 = vpop.f32.mrf.mxu0 }
 0x373   : > { %v6360_v54 = vpop.f32.mrf.mxu1 }
 0x374   : > { %v3312_v49 = vadd.f32 %v6360_v54, %v6304_v11  ;;  %v3161_v40 = vpop.f32.mrf.mxu0 }
 0x375   : > { %v3306_v37 = vpop.f32.mrf.mxu1 }
 0x376   : > { %v3307_v0 = vadd.f32 %v3306_v37, %v3161_v40 }
 0x378   : > { %v6307_v57 = vpop.f32.mrf.mxu0 }
 0x379   : > { %v6363_v23 = vpop.f32.mrf.mxu1 }
 0x37a   : > { %v3322_v31 = vadd.f32 %v6363_v23, %v6307_v57  ;;  %v3171_v35 = vpop.f32.mrf.mxu0 }
 0x37b   : > { %v3316_v20 = vpop.f32.mrf.mxu1 }
 0x37c   : > { %v3317_v22 = vadd.f32 %v3316_v20, %v3171_v35 }
 0x37e   : > { %v6310_v51 = vpop.f32.mrf.mxu0 }
 0x37f   : > { %v6366_v59 = vpop.f32.mrf.mxu1 }
 0x380   : > { %v3332_v58 = vadd.f32 %v6366_v59, %v6310_v51  ;;  %v3181_v9 = vpop.f32.mrf.mxu0 }
 0x381   : > { %v3326_v3 = vpop.f32.mrf.mxu1 }
 0x382   : > { %v3327_v43 = vadd.f32 %v3326_v3, %v3181_v9 }
 0x384   : > { %v6313_v13 = vpop.f32.mrf.mxu0 }
 0x385   : > { %v6369_v39 = vpop.f32.mrf.mxu1 }
 0x386   : > { %v3342_v60 = vadd.f32 %v6369_v39, %v6313_v13  ;;  %v3191_v47 = vpop.f32.mrf.mxu0 }
 0x387   : > { %v3336_v4 = vpop.f32.mrf.mxu1 }
 0x388   : > { %v3337_v38 = vadd.f32 %v3336_v4, %v3191_v47 }
 0x38a   : > { %v6404_v36 = vpop.f32.mrf.mxu0 }
 0x38b   : > { %v8643_v55 = vadd.f32 %v6404_v36, %v3272_v48 }
 0x38c   : > { %v3444_v63 = vpop.f32.mrf.mxu0 }
 0x38d   : > { %v8645_v30 = vadd.f32 %v3444_v63, %v3267_v50  ;;  %v8647_v14 = vpop.f32.mrf.mxu1 }
 0x38f   : > { %v8649_v15 = vpop.f32.mrf.mxu1 }
 0x390   : > { %v6407_v32 = vpop.f32.mrf.mxu0 }
 0x391   : > { %v8651_v27 = vadd.f32 %v6407_v32, %v3282_v28 }
 0x392   : > { %v3454_v16 = vpop.f32.mrf.mxu0 }
 0x393   : > { %v8653_v12 = vadd.f32 %v3454_v16, %v3277_v26  ;;  %v8655_v41 = vpop.f32.mrf.mxu1 }
 0x395   : > { %v8657_v8 = vpop.f32.mrf.mxu1 }
 0x396   : > { %v6410_v21 = vpop.f32.mrf.mxu0 }
 0x397   : > { %v8659_v52 = vadd.f32 %v6410_v21, %v3292_v44 }
 0x398   : > { %v3464_v53 = vpop.f32.mrf.mxu0 }
 0x399   : > { %v8661_v19 = vadd.f32 %v3464_v53, %v3287_v2  ;;  %v8663_v48 = vpop.f32.mrf.mxu1 }
 0x39b   : > { %v8665_v6 = vpop.f32.mrf.mxu1 }
 0x39c   : > { %v6413_v34 = vpop.f32.mrf.mxu0 }
 0x39d   : > { %v8667_v50 = vadd.f32 %v6413_v34, %v3302_v56 }
 0x39e   : > { %v3474_v10 = vpop.f32.mrf.mxu0 }
 0x39f   : > { %v8669_v17 = vadd.f32 %v3474_v10, %v3297_v46  ;;  %v8671_v33 = vpop.f32.mrf.mxu1 }
 0x3a1   : > { %v8673_v24 = vpop.f32.mrf.mxu1 }
 0x3a2   : > { %v6416_v28 = vpop.f32.mrf.mxu0 }
 0x3a3   : > { %v8675_v1 = vadd.f32 %v6416_v28, %v3312_v49 }
 0x3a4   : > { %v3484_v26 = vpop.f32.mrf.mxu0 }
 0x3a5   : > { %v8677_v42 = vadd.f32 %v3484_v26, %v3307_v0  ;;  %v8679_v62 = vpop.f32.mrf.mxu1 }
 0x3a7   : > { %v8681_v44 = vpop.f32.mrf.mxu1 }
 0x3a8   : > { %v6419_v18 = vpop.f32.mrf.mxu0 }
 0x3a9   : > { %v8683_v29 = vadd.f32 %v6419_v18, %v3322_v31 }
 0x3aa   : > { %v3494_v61 = vpop.f32.mrf.mxu0 }
 0x3ab   : > { %v8685_v2 = vadd.f32 %v3494_v61, %v3317_v22  ;;  %v8687_v5 = vpop.f32.mrf.mxu1 }
 0x3ad   : > { %v8689_v56 = vpop.f32.mrf.mxu1 }
 0x3ae   : > { %v6422_v45 = vpop.f32.mrf.mxu0 }
 0x3af   : > { %v8691_v7 = vadd.f32 %v6422_v45, %v3332_v58 }
 0x3b0   : > { %v3504_v25 = vpop.f32.mrf.mxu0 }
 0x3b1   : > { %v8693_v46 = vadd.f32 %v3504_v25, %v3327_v43  ;;  %v8695_v11 = vpop.f32.mrf.mxu1 }
 0x3b3   : > { %v8697_v49 = vpop.f32.mrf.mxu1 }
 0x3b4   : > { %v6425_v54 = vpop.f32.mrf.mxu0 }
 0x3b5   : > { %v8699_v40 = vadd.f32 %v6425_v54, %v3342_v60 }
 0x3b6   : > { %v3514_v37 = vpop.f32.mrf.mxu0 }
 0x3b7   : > { %v8701_v0 = vadd.f32 %v3514_v37, %v3337_v38  ;;  %v8703_v57 = vpop.f32.mrf.mxu1 }
 0x3b9   : > { %v8705_v23 = vpop.f32.mrf.mxu1 }
 0x3ba   : > { %v6516_v31 = vpop.f32.mrf.mxu0 }
 0x3bc   : > { %v3833_v35 = vpop.f32.mrf.mxu0 }
 0x3bd   : > { %v6572_v20 = vpop.f32.mrf.mxu1 }
 0x3bf   : > { %v4027_v51 = vpop.f32.mrf.mxu1 }
 0x3c0   : > { %v6519_v22 = vpop.f32.mrf.mxu0 }
 0x3c2   : > { %v3843_v59 = vpop.f32.mrf.mxu0 }
 0x3c3   : > { %v8707_v58 = vpop.f32.mrf.mxu1 }
 0x3c5   : > { %v8709_v3 = vpop.f32.mrf.mxu1 }
 0x3c6   : > { %v6522_v9 = vpop.f32.mrf.mxu0 }
 0x3c8   : > { %v8711_v43 = vpop.f32.mrf.mxu0 }
 0x3c9   : > { %v8713_v13 = vpop.f32.mrf.mxu1 }
 0x3cb   : > { %v8717_v60 = vpop.f32.mrf.mxu1 }
 0x3cc   : > { %v8715_v39 = vpop.f32.mrf.mxu0 }
 0x3ce   : > { %v8719_v47 = vpop.f32.mrf.mxu0 }
 0x3cf   : > { %v8721_v4 = vpop.f32.mrf.mxu1 }
 0x3d0   : > { %9052 = vst [vmem:[#allocation6_spill] sm:$0xff] %v8721_v4 }
 0x3d1   : > { %v8725_v36 = vpop.f32.mrf.mxu1 }
 0x3d2   : > { %v8723_v38 = vpop.f32.mrf.mxu0  ;;  %9054 = vst [vmem:[#allocation14_spill] sm:$0xff] %v8725_v36 }
 0x3d3   : > { %9053 = vst [vmem:[#allocation10_spill] sm:$0xff] %v8723_v38  ;;  %v3719_v38 = vadd.f32 %v8647_v14, %v8643_v55 }
 0x3d4   : > { %v8727_v63 = vpop.f32.mrf.mxu0 }
 0x3d5   : > { %9055 = vst [vmem:[#allocation7_spill] sm:$0xff] %v8727_v63  ;;  %v8729_v32 = vpop.f32.mrf.mxu1 }
 0x3d6   : > { %9056 = vst [vmem:[#allocation11_spill] sm:$0xff] %v8729_v32 }
 0x3d7   : > { %v8733_v21 = vpop.f32.mrf.mxu1 }
 0x3d8   : > { %v8731_v16 = vpop.f32.mrf.mxu0  ;;  %9058 = vst [vmem:[#allocation8_spill] sm:$0xff] %v8733_v21 }
 0x3d9   : > { %9057 = vst [vmem:[#allocation15_spill] sm:$0xff] %v8731_v16 }
 0x3da   : > { %v8735_v53 = vpop.f32.mrf.mxu0 }
 0x3db   : > { %9059 = vst [vmem:[#allocation12_spill] sm:$0xff] %v8735_v53  ;;  %v8737_v34 = vpop.f32.mrf.mxu1 }
 0x3dc   : > { %9060 = vst [vmem:[#allocation16_spill] sm:$0xff] %v8737_v34 }
 0x3dd   : > { %v8741_v28 = vpop.f32.mrf.mxu1 }
 0x3de   : > { %v8739_v10 = vpop.f32.mrf.mxu0  ;;  %9062 = vst [vmem:[#allocation13_spill] sm:$0xff] %v8741_v28 }
 0x3df   : > { %9061 = vst [vmem:[#allocation9_spill] sm:$0xff] %v8739_v10 }
 0x3e0   : > { %v8743_v26 = vpop.f32.mrf.mxu0 }
 0x3e1   : > { %9063 = vst [vmem:[#allocation17_spill] sm:$0xff] %v8743_v26  ;;  %v8745_v18 = vpop.f32.mrf.mxu1 }
 0x3e2   : > { %9064 = vst [vmem:[#allocation18_spill] sm:$0xff] %v8745_v18 }
 0x3e3   : > { %v8749_v45 = vpop.f32.mrf.mxu1 }
 0x3e4   : > { %v8747_v61 = vpop.f32.mrf.mxu0  ;;  %9066 = vst [vmem:[#allocation20_spill] sm:$0xff] %v8749_v45 }
 0x3e5   : > { %9065 = vst [vmem:[#allocation19_spill] sm:$0xff] %v8747_v61 }
 0x3e6   : > { %v8751_v25 = vpop.f32.mrf.mxu0 }
 0x3e7   : > { %9067 = vst [vmem:[#allocation21_spill] sm:$0xff] %v8751_v25  ;;  %v8753_v54 = vpop.f32.mrf.mxu1 }
 0x3e8   : > { %9068 = vst [vmem:[#allocation22_spill] sm:$0xff] %v8753_v54 }
 0x3e9   : > { %v8755_v37 = vpop.f32.mrf.mxu1 }
 0x3ea   : > { %9069 = vst [vmem:[#allocation23_spill] sm:$0xff] %v8755_v37  ;;  %v6628_v53 = vpop.f32.mrf.mxu0 }
 0x3ec   : > { %v4222_v34 = vpop.f32.mrf.mxu0 }
 0x3ed   : > { %v6684_v21 = vpop.f32.mrf.mxu1 }
 0x3ef   : > { %v4416_v10 = vpop.f32.mrf.mxu1  ;;  %v6631_v16 = vpop.f32.mrf.mxu0 }
 0x3f1   : > { %v6687_v28 = vpop.f32.mrf.mxu1  ;;  %v4232_v32 = vpop.f32.mrf.mxu0 }
 0x3f3   : > { %v8757_v63 = vpop.f32.mrf.mxu1 }
 0x3f4   : > { %v6634_v26 = vpop.f32.mrf.mxu0  ;;  %9070 = vst [vmem:[#allocation24_spill] sm:$0xff] %v8757_v63  ;;  %v3718_v63 = vadd.f32 %v8649_v15, %v8645_v30  ;;  %v3723_v30 = vadd.f32 %v8663_v48, %v8659_v52  ;;  %v3724_v52 = vadd.f32 %v8673_v24, %v8669_v17  ;;  %v3727_v48 = vadd.f32 %v8679_v62, %v8675_v1 }
 0x3f5   : > { %v8763_v45 = vpop.f32.mrf.mxu1  ;;  %v3728_v17 = vadd.f32 %v8689_v56, %v8685_v2  ;;  %v3731_v62 = vadd.f32 %v8695_v11, %v8691_v7  ;;  %v8831_v2 = vadd.f32 %v8697_v49, %v8693_v46  ;;  %v8838_v7 = vadd.f32 %v8703_v57, %v8699_v40  ;;  %v9080_v49 = vld [vmem:[#allocation6_spill] sm:$0xff] }
 0x3f6   : > { %v8759_v18 = vpop.f32.mrf.mxu0  ;;  %9073 = vst [vmem:[#allocation27_spill] sm:$0xff] %v8763_v45  ;;  %v3918_v56 = vadd.f32 %v8719_v47, %v3724_v52  ;;  %v8843_v46 = vadd.f32 %v8705_v23, %v8701_v0  ;;  %v9085_v23 = vld [vmem:[#allocation7_spill] sm:$0xff] }
 0x3f7   : > { %9071 = vst [vmem:[#allocation25_spill] sm:$0xff] %v8759_v18  ;;  %v8769_v37 = vpop.f32.mrf.mxu1  ;;  %v3913_v18 = vadd.f32 %v6516_v31, %v3719_v38  ;;  %v9088_v52 = vld [vmem:[#allocation11_spill] sm:$0xff] }
 0x3f8   : > { %v8761_v61 = vpop.f32.mrf.mxu0  ;;  %9076 = vst [vmem:[#allocation30_spill] sm:$0xff] %v8769_v37 }
 0x3f9   : > { %9072 = vst [vmem:[#allocation26_spill] sm:$0xff] %v8761_v61  ;;  %v8779_v61 = vpop.f32.mrf.mxu1  ;;  %v4107_v55 = vadd.f32 %v6572_v20, %v3913_v18 }
 0x3fa   : > { %v8765_v25 = vpop.f32.mrf.mxu0 }
 0x3fb   : > { %9074 = vst [vmem:[#allocation28_spill] sm:$0xff] %v8765_v25  ;;  %v3912_v25 = vadd.f32 %v3833_v35, %v3718_v63 }
 0x3fc   : > { %v8767_v54 = vpop.f32.mrf.mxu0 }
 0x3fd   : > { %9075 = vst [vmem:[#allocation29_spill] sm:$0xff] %v8767_v54  ;;  %v3721_v54 = vadd.f32 %v8655_v41, %v8651_v27  ;;  %v4106_v31 = vadd.f32 %v4027_v51, %v3912_v25  ;;  %v3722_v27 = vadd.f32 %v8665_v6, %v8661_v19  ;;  %v3917_v41 = vadd.f32 %v6522_v9, %v3723_v30  ;;  %v9084_v25 = vld [vmem:[#allocation14_spill] sm:$0xff] }
 0x3fe   : > { %v8771_v36 = vpop.f32.mrf.mxu0  ;;  %v3726_v6 = vadd.f32 %v8681_v44, %v8677_v42  ;;  %v8823_v42 = vld [vmem:[%s9021_s6] ss:$0 sm:$0xff]  ;;  %v4112_v0 = vadd.f32 %v9084_v25, %v3918_v56 }
 0x3ff   : > { %9077 = vst [vmem:[#allocation31_spill] sm:$0xff] %v8771_v36  ;;  %v3720_v36 = vadd.f32 %v8657_v8, %v8653_v12  ;;  %v3915_v14 = vadd.f32 %v6519_v22, %v3721_v54  ;;  %v4301_v8 = vadd.f32 %v4222_v34, %v4106_v31  ;;  %v3725_v22 = vadd.f32 %v8671_v33, %v8667_v50  ;;  %v5344_v34 = vld [vmem:[%s7076_s20 + $0x31] sm:$0xff] }
 0x400   : > { %v8775_v4 = vpop.f32.mrf.mxu0  ;;  %v3916_v51 = vadd.f32 %v8711_v43, %v3722_v27  ;;  %v3729_v50 = vadd.f32 %v8687_v5, %v8683_v29  ;;  %v4111_v33 = vadd.f32 %v8713_v13, %v3917_v41  ;;  %v3920_v54 = vadd.f32 %v9085_v23, %v3726_v6  ;;  %v9087_v30 = vld [vmem:[#allocation26_spill] sm:$0xff] }
 0x401   : > { %9078 = vst [vmem:[#allocation32_spill] sm:$0xff] %v8775_v4  ;;  %v8789_v4 = vpop.f32.mrf.mxu1  ;;  %v3914_v38 = vadd.f32 %v3843_v59, %v3720_v36  ;;  %v4109_v12 = vadd.f32 %v8707_v58, %v3915_v14  ;;  %v3919_v24 = vadd.f32 %v8715_v39, %v3725_v22  ;;  %v4495_v44 = vadd.f32 %v4416_v10, %v4301_v8  ;;  %v5345_v39 = vld [vmem:[%s7076_s20 + $0x39] sm:$0xff] }
 0x402   : > { %v8781_v45 = vpop.f32.mrf.mxu0  ;;  %v4110_v5 = vadd.f32 %v8717_v60, %v3916_v51  ;;  %v4306_v13 = vadd.f32 %v6634_v26, %v4111_v33  ;;  %v9083_v26 = vld [vmem:[#allocation24_spill] sm:$0xff]  ;;  %v9089_v51 = vld [vmem:[#allocation15_spill] sm:$0xff] }
 0x403   : > { %9079 = vst [vmem:[#allocation33_spill] sm:$0xff] %v8781_v45  ;;  %v4302_v45 = vadd.f32 %v6628_v53, %v4107_v55  ;;  %v8800_v20 = vpop.f32.mrf.mxu1  ;;  %v4108_v59 = vadd.f32 %v8709_v3, %v3914_v38  ;;  %v4304_v9 = vadd.f32 %v6631_v16, %v4109_v12  ;;  %v4113_v60 = vadd.f32 %v9080_v49, %v3919_v24  ;;  %v9081_v16 = vld [vmem:[#allocation10_spill] sm:$0xff]  ;;  %v9086_v55 = vld [vmem:[#allocation27_spill] sm:$0xff]  ;;  %v9091_v6 = vld [vmem:[#allocation28_spill] sm:$0xff] }
 0x404   : > { %v8785_v37 = vpop.f32.mrf.mxu0  ;;  %v3921_v47 = vadd.f32 %v9081_v16, %v3727_v48  ;;  %v4500_v14 = vadd.f32 %v9086_v55, %v4306_v13  ;;  %v5347_v38 = vld [vmem:[%s7076_s20 + $0x51] sm:$0xff]  ;;  %v4307_v33 = vadd.f32 %v9091_v6, %v4112_v0  ;;  %v5346_v24 = vld [vmem:[%s7076_s20 + $0x49] sm:$0xff]  ;;  %v9092_v13 = vld [vmem:[#allocation8_spill] sm:$0xff] }
 0x405   : > { %v4496_v58 = vadd.f32 %v6684_v21, %v4302_v45  ;;  %v4303_v3 = vadd.f32 %v4232_v32, %v4108_v59  ;;  %v8827_v43 = vpop.f32.mrf.mxu1  ;;  %v4498_v11 = vadd.f32 %v6687_v28, %v4304_v9  ;;  %v9082_v21 = vld [vmem:[#allocation25_spill] sm:$0xff]  ;;  %v4308_v31 = vadd.f32 %v9087_v30, %v4113_v60 }
 0x406   : > { %v8793_v15 = vpop.f32.mrf.mxu0  ;;  %v4305_v53 = vadd.f32 %v9082_v21, %v4110_v5  ;;  %v4115_v48 = vadd.f32 %v9088_v52, %v3921_v47  ;;  %v3923_v59 = vadd.f32 %v9089_v51, %v3729_v50  ;;  %v9093_v50 = vld [vmem:[#allocation12_spill] sm:$0xff]  ;;  %v5349_v49 = vld [vmem:[%s7076_s20 + $0x69] sm:$0xff] }
 0x407   : > { %v4497_v40 = vadd.f32 %v9083_v26, %v4303_v3  ;;  %v8850_v57 = vpop.f32.mrf.mxu1  ;;  %v9096_v26 = vld [vmem:[#allocation9_spill] sm:$0xff]  ;;  %v9101_v51 = vld [vmem:[#allocation18_spill] sm:$0xff] }
 0x408   : > { %v8797_v35 = vpop.f32.mrf.mxu0 }
 0x40a   : > { %v8809_v19 = vpop.f32.mrf.mxu0 }
 0x40c   : > { %v6740_v1 = vpop.f32.mrf.mxu0 }
 0x40d   : > { %v4690_v29 = vadd.f32 %v6740_v1, %v4496_v58  ;;  %v9090_v58 = vld [vmem:[#allocation30_spill] sm:$0xff] }
 0x40e   : > { %v4610_v36 = vpop.f32.mrf.mxu0  ;;  %v4499_v9 = vadd.f32 %v9090_v58, %v4305_v53  ;;  %v9102_v58 = vld [vmem:[#allocation19_spill] sm:$0xff] }
 0x40f   : > { %v4713_v63 = vadd.f32 %v8823_v42, %v4690_v29  ;;  %v4689_v32 = vadd.f32 %v4610_v36, %v4495_v44  ;;  %v8864_v44 = vpop.f32.mrf.mxu1  ;;  %v3922_v36 = vadd.f32 %v9093_v50, %v3728_v17  ;;  %v4501_v17 = vadd.f32 %v8789_v4, %v4307_v33  ;;  %v5350_v33 = vld [vmem:[%s7076_s20 + $0x79] sm:$0xff] }
 0x410   : > { %v6743_v10 = vpop.f32.mrf.mxu0 }
 0x411   : > { %v4745_v28 = vadd.f32 %v5345_v39, %v4713_v63  ;;  %v4712_v18 = vadd.f32 %v8823_v42, %v4689_v32  ;;  %v4692_v45 = vadd.f32 %v6743_v10, %v4498_v11  ;;  %v4114_v39 = vadd.f32 %v9092_v13, %v3920_v54  ;;  %v9094_v63 = vld [vmem:[#allocation29_spill] sm:$0xff]  ;;  %v6702_v25 = vpop.f32.mrf.mxu1  ;;  %v9104_v13 = vld [vmem:[#allocation20_spill] sm:$0xff] }
 0x412   : > { %v4620_v27 = vpop.f32.mrf.mxu0  ;;  %v4502_v11 = vadd.f32 %v8779_v61, %v4308_v31  ;;  %v4310_v32 = vadd.f32 %v9094_v63, %v4115_v48  ;;  %v9097_v61 = vld [vmem:[#allocation31_spill] sm:$0xff] }
 0x413   : > { %v4761_v41 = vmax.f32 %v4745_v28, 0.0  ;;  %v4744_v12 = vadd.f32 %v5344_v34, %v4712_v18  ;;  %v4715_v8 = vadd.f32 %v8823_v42, %v4692_v45  ;;  %v4691_v22 = vadd.f32 %v4620_v27, %v4497_v40  ;;  %v9095_v34 = vld [vmem:[#allocation16_spill] sm:$0xff] }
 0x414   : > { %v6746_v1 = vpop.f32.mrf.mxu0  ;;  %v4117_v10 = vadd.f32 %v9095_v34, %v3923_v59  ;;  %v3925_v40 = vadd.f32 %v9096_v26, %v3731_v62  ;;  %v4309_v28 = vadd.f32 %v9097_v61, %v4114_v39  ;;  %v5348_v18 = vld [vmem:[%s7076_s20 + $0x61] sm:$0xff]  ;;  %v4504_v4 = vadd.f32 %v8800_v20, %v4310_v32  ;;  %v9107_v61 = vld [vmem:[#allocation23_spill] sm:$0xff] }
 0x415   : > { %4777 = vst.msk [vmem:[%s7979_s16 + $0x8] sm:$0xff] %vm351_vm0, %v4761_v41  ;;  %v4760_v3 = vmax.f32 %v4744_v12, 0.0  ;;  %v4747_v29 = vadd.f32 %v5347_v38, %v4715_v8  ;;  %v4714_v5 = vadd.f32 %v8823_v42, %v4691_v22  ;;  %v4694_v56 = vadd.f32 %v6746_v1, %v4500_v14  ;;  %v9098_v14 = vld [vmem:[#allocation13_spill] sm:$0xff]  ;;  %v9100_v38 = vld [vmem:[#allocation32_spill] sm:$0xff]  ;;  %v4476_v1 = vpop.f32.mrf.mxu1 }
 0x416   : > { %v4630_v60 = vpop.f32.mrf.mxu0  ;;  %v4116_v30 = vadd.f32 %v9098_v14, %v3922_v36  ;;  %v9099_v62 = vld [vmem:[#allocation17_spill] sm:$0xff]  ;;  %v4312_v27 = vadd.f32 %v9100_v38, %v4117_v10  ;;  %v4119_v59 = vadd.f32 %v9101_v51, %v3925_v40  ;;  %v4503_v20 = vadd.f32 %v8827_v43, %v4309_v28 }
 0x417   : > { %4776 = vst.msk [vmem:[%s7979_s16] sm:$0xff] %vm351_vm0, %v4760_v3  ;;  %v4763_v16 = vmax.f32 %v4747_v29, 0.0  ;;  %v4746_v47 = vadd.f32 %v5346_v24, %v4714_v5  ;;  %v4717_v21 = vadd.f32 %v8823_v42, %v4694_v56  ;;  %v4693_v53 = vadd.f32 %v4630_v60, %v4499_v9  ;;  %v5351_v41 = vld [vmem:[%s7076_s20 + $0x81] sm:$0xff] }
 0x418   : > { %v6749_v45 = vpop.f32.mrf.mxu0  ;;  %v3924_v31 = vadd.f32 %v9099_v62, %v8831_v2  ;;  %v3927_v2 = vadd.f32 %v9102_v58, %v8838_v7  ;;  %v9103_v9 = vld [vmem:[#allocation33_spill] sm:$0xff]  ;;  %v4506_v43 = vadd.f32 %v8850_v57, %v4312_v27  ;;  %v4314_v36 = vadd.f32 %v8785_v37, %v4119_v59  ;;  %v5352_v57 = vld [vmem:[%s7076_s20 + $0x91] sm:$0xff]  ;;  %v6705_v37 = vpop.f32.mrf.mxu1 }
 0x419   : > { %4779 = vst.msk [vmem:[%s7979_s16 + $0x18] sm:$0xff] %vm351_vm0, %v4763_v16  ;;  %v4762_v0 = vmax.f32 %v4746_v47, 0.0  ;;  %v4749_v23 = vadd.f32 %v5349_v49, %v4717_v21  ;;  %v4716_v54 = vadd.f32 %v8823_v42, %v4693_v53  ;;  %v4696_v55 = vadd.f32 %v6749_v45, %v4502_v11  ;;  %v9105_v7 = vld [vmem:[#allocation21_spill] sm:$0xff]  ;;  %v5353_v11 = vld [vmem:[%s7076_s20 + $0x99] sm:$0xff]  ;;  %v9106_v47 = vld [vmem:[#allocation22_spill] sm:$0xff] }
 0x41a   : > { %v4640_v12 = vpop.f32.mrf.mxu0  ;;  %v4311_v6 = vadd.f32 %v9103_v9, %v4116_v30  ;;  %v4118_v39 = vadd.f32 %v9104_v13, %v3924_v31  ;;  %v3926_v50 = vadd.f32 %v9105_v7, %v8843_v46  ;;  %v4121_v21 = vadd.f32 %v9106_v47, %v3927_v2  ;;  %v5354_v62 = vld [vmem:[%s7076_s20 + $0xa9] sm:$0xff]  ;;  %v5356_v59 = vld [vmem:[%s7076_s20 + $0xc1] sm:$0xff] }
 0x41b   : > { %4778 = vst.msk [vmem:[%s7979_s16 + $0x10] sm:$0xff] %vm351_vm0, %v4762_v0  ;;  %v4765_v8 = vmax.f32 %v4749_v23, 0.0  ;;  %v4748_v22 = vadd.f32 %v5348_v18, %v4716_v54  ;;  %v4719_v52 = vadd.f32 %v8823_v42, %v4696_v55  ;;  %v4695_v48 = vadd.f32 %v4640_v12, %v4501_v17  ;;  %v5357_v12 = vld [vmem:[%s7076_s20 + $0xc9] sm:$0xff] }
 0x41c   : > { %v6752_v24 = vpop.f32.mrf.mxu0  ;;  %v4505_v46 = vadd.f32 %v8864_v44, %v4311_v6  ;;  %v4313_v53 = vadd.f32 %v8793_v15, %v4118_v39  ;;  %v4120_v28 = vadd.f32 %v9107_v61, %v3926_v50  ;;  %v4508_v18 = vadd.f32 %v6702_v25, %v4314_v36  ;;  %v5355_v44 = vld [vmem:[%s7076_s20 + $0xb1] sm:$0xff]  ;;  %v4486_v25 = vpop.f32.mrf.mxu1 }
 0x41d   : > { %4781 = vst.msk [vmem:[%s7979_s16 + $0x28] sm:$0xff] %vm351_vm0, %v4765_v8  ;;  %v4764_v3 = vmax.f32 %v4748_v22, 0.0  ;;  %v4751_v29 = vadd.f32 %v5351_v41, %v4719_v52  ;;  %v4718_v5 = vadd.f32 %v8823_v42, %v4695_v48  ;;  %v4698_v56 = vadd.f32 %v6752_v24, %v4504_v4 }
 0x41e   : > { %v4650_v63 = vpop.f32.mrf.mxu0  ;;  %v4316_v45 = vadd.f32 %v8797_v35, %v4121_v21  ;;  %v4507_v14 = vadd.f32 %v4476_v1, %v4313_v53  ;;  %v4315_v30 = vadd.f32 %v8809_v19, %v4120_v28 }
 0x41f   : > { %4780 = vst.msk [vmem:[%s7979_s16 + $0x20] sm:$0xff] %vm351_vm0, %v4764_v3  ;;  %v4767_v32 = vmax.f32 %v4751_v29, 0.0  ;;  %v4750_v49 = vadd.f32 %v5350_v33, %v4718_v5  ;;  %v4721_v60 = vadd.f32 %v8823_v42, %v4698_v56  ;;  %v4697_v16 = vadd.f32 %v4650_v63, %v4503_v20  ;;  %v5359_v33 = vld [vmem:[%s7076_s20 + $0xe1] sm:$0xff]  ;;  %v5358_v56 = vld [vmem:[%s7076_s20 + $0xd9] sm:$0xff]  ;;  %s9108_s20 = sand.u32 1, %s6911_s25  }
 0x420   : > { %v6755_v34 = vpop.f32.mrf.mxu0  ;;  %v4510_v41 = vadd.f32 %v6705_v37, %v4316_v45  ;;  %v4509_v51 = vadd.f32 %v4486_v25, %v4315_v30  ;;  %s8964_s0 = scalar_lea.sflag [#allocation4], %s9108_s20 }
 0x421   : > { %4783 = vst.msk [vmem:[%s7979_s16 + $0x38] sm:$0xff] %vm351_vm0, %v4767_v32  ;;  %v4766_v10 = vmax.f32 %v4750_v49, 0.0  ;;  %v4753_v26 = vadd.f32 %v5353_v11, %v4721_v60  ;;  %v4720_v40 = vadd.f32 %v8823_v42, %v4697_v16  ;;  %v4700_v17 = vadd.f32 %v6755_v34, %v4506_v43 }
 0x422   : > { %v4660_v0 = vpop.f32.mrf.mxu0 }
 0x423   : > { %4782 = vst.msk [vmem:[%s7979_s16 + $0x30] sm:$0xff] %vm351_vm0, %v4766_v10  ;;  %v4769_v15 = vmax.f32 %v4753_v26, 0.0  ;;  %v4752_v23 = vadd.f32 %v5352_v57, %v4720_v40  ;;  %v4723_v54 = vadd.f32 %v8823_v42, %v4700_v17  ;;  %v4699_v55 = vadd.f32 %v4660_v0, %v4505_v46 }
 0x424   : > { %v6758_v31 = vpop.f32.mrf.mxu0 }
 0x425   : > { %4785 = vst.msk [vmem:[%s7979_s16 + $0x48] sm:$0xff] %vm351_vm0, %v4769_v15  ;;  %v4768_v35 = vmax.f32 %v4752_v23, 0.0  ;;  %v4755_v4 = vadd.f32 %v5355_v44, %v4723_v54  ;;  %v4722_v38 = vadd.f32 %v8823_v42, %v4699_v55  ;;  %v4702_v27 = vadd.f32 %v6758_v31, %v4508_v18 }
 0x426   : > { %v4670_v8 = vpop.f32.mrf.mxu0 }
 0x427   : > { %4784 = vst.msk [vmem:[%s7979_s16 + $0x40] sm:$0xff] %vm351_vm0, %v4768_v35  ;;  %v4771_v19 = vmax.f32 %v4755_v4, 0.0  ;;  %v4754_v22 = vadd.f32 %v5354_v62, %v4722_v38  ;;  %v4725_v52 = vadd.f32 %v8823_v42, %v4702_v27  ;;  %v4701_v48 = vadd.f32 %v4670_v8, %v4507_v14 }
 0x428   : > { %v6761_v58 = vpop.f32.mrf.mxu0 }
 0x429   : > { %4787 = vst.msk [vmem:[%s7979_s16 + $0x58] sm:$0xff] %vm351_vm0, %v4771_v19  ;;  %v4770_v2 = vmax.f32 %v4754_v22, 0.0  ;;  %v4757_v20 = vadd.f32 %v5357_v12, %v4725_v52  ;;  %v4724_v9 = vadd.f32 %v8823_v42, %v4701_v48  ;;  %v4704_v6 = vadd.f32 %v6761_v58, %v4510_v41 }
 0x42a   : > { %v4680_v24 = vpop.f32.mrf.mxu0 }
 0x42b   : > { %4786 = vst.msk [vmem:[%s7979_s16 + $0x50] sm:$0xff] %vm351_vm0, %v4770_v2  ;;  %v4773_v1 = vmax.f32 %v4757_v20, 0.0  ;;  %v4756_v3 = vadd.f32 %v5356_v59, %v4724_v9  ;;  %v4727_v29 = vadd.f32 %v8823_v42, %v4704_v6  ;;  %v4703_v5 = vadd.f32 %v4680_v24, %v4509_v51 }
 0x42d   : > { %4789 = vst.msk [vmem:[%s7979_s16 + $0x68] sm:$0xff] %vm351_vm0, %v4773_v1  ;;  %v4772_v13 = vmax.f32 %v4756_v3, 0.0  ;;  %v4759_v39 = vadd.f32 %v5359_v33, %v4727_v29  ;;  %v4726_v7 = vadd.f32 %v8823_v42, %v4703_v5 }
 0x42f   : > { %4788 = vst.msk [vmem:[%s7979_s16 + $0x60] sm:$0xff] %vm351_vm0, %v4772_v13  ;;  %v4775_v50 = vmax.f32 %v4759_v39, 0.0  ;;  %v4758_v43 = vadd.f32 %v5358_v56, %v4726_v7 }
 0x431   : > { %4791 = vst.msk [vmem:[%s7979_s16 + $0x78] sm:$0xff] %vm351_vm0, %v4775_v50  ;;  %v4774_v36 = vmax.f32 %v4758_v43, 0.0 }
 0x433   : > { %4790 = vst.msk [vmem:[%s7979_s16 + $0x70] sm:$0xff] %vm351_vm0, %v4774_v36 }
 0x434   : > { %6856 = shalt.err (!%p6853_p9)
}
 0x435   : > { %s6857_s16 = scalar_lea.hbm %s8954_s23, 2048  ;;  %s6861_s27 = scalar_lea.hbm %s9022_s7, 8192 }
 0x436   : > { %p6858_p10 = scmp.ne.s32.totalorder %s8954_s23, %s6857_s16  ;;  %p6862_p13 = scmp.lt.s32.totalorder %s8954_s23, %s9022_s7 }
 0x437   : > { %p6863_p0 = scmp.lt.s32.totalorder %s6861_s27, %s6857_s16 }
 0x438   : > { %p6859_p11 = pnand %p6858_p10, %p7034_p3 }
 0x439   : > { %p6864_p1 = por %p6863_p0, %p6862_p13 }
 0x43a   : > { %p6860_p12 = pneg %p6859_p11 }
 0x43c   : > { %p6865_p2 = pnand %p6864_p1, %p6860_p12 }
 0x43e   : > { %6868 = shalt.err (!%p6865_p2)
}
 0x43f   : > { %s6941_s20 = smov 128   ;;  %s6942_s1 = smov 8  }
 0x440   : > { %6767 = dma.vmem_to_hbm [thread:$0]  (%p7034_p3), %s8956_s28, 2048, %s8954_s23, %s8964_s0, %s6941_s20, %s6941_s20, %s6942_s1  }
 0x441 PF: > { %p6773_p4 = scmp.ge.s32.totalorder %s6935_s8, 2  ;;  %s4824_s9 = sand.u32 1, %s6907_s24  }
 0x442   : > { %s4825_s10 = scalar_lea.sflag [#allocation4], %s4824_s9 }
 0x443   : > { %p6770_p5 = pnand %p6773_p4, %p7043_p8 }
 0x445   : > { %p6771_p6 = pneg %p6770_p5 }
 0x447   : > { %6902 = dma.done.wait (%p6771_p6), %s4825_s10, 2048  }
 0x448   : > { %6904 = vsyncadd (%p6771_p6), %s4825_s10, 4294965248  ;;  %s20_s8 = sadd.s32 1, %s6935_s8   ;;  %s9109_s24 = smov %s6911_s25 }
 0x449   : > { %p17_p7 = scmp.ge.s32.totalorder %s20_s8, 6   ;;  %s9110_s25 = smov %s6915_s26 }
 0x44a   : > { %s9111_s26 = smov %s7052_s19  ;;  %s9112_s27 = smov %s6927_s29 }
 0x44b   : > { %s9113_s28 = smov %s6931_s30  ;;  %s9114_s29 = smov %s9117_s11 }
 0x44c   : > { %s9115_s30 = smov %s9121_s12  ;;  %19 = sbr.rel (!%p17_p7) target bundleno = 8 (0x8), region = 112 }
 0x451   :  { %4830 = vsyncpa [#allocation4], 1 }
 0x452   :  { %4832 = vsyncpa [#allocation4 + $0x1], 1 }

</bundles_post_ra>
